<compile_context>
chip_gen: v5e
topology: v5e:2x2
jax: 0.10.0
libtpu: 0.0.40
codegen_flags: <defaults>
</compile_context>

<pallas_src>
import functools

import jax
import jax.numpy as jnp
from jax.experimental import pallas as pl
from jax.experimental.pallas import tpu as pltpu


def conv_block_kernel(x_ref, w_ref, b_ref, o_ref, xp_scr, patch_scr, y_scr, *,
                      NB, H, W, KH, KW, Cin, Cp, P, ph_l, pw_l, slope):
    """One batch tile (NB images) per grid step.

    x_ref    : (NB, H, W, Cin)         bf16 input tile (unpadded)
    w_ref    : (KH*KW*Cin, Cp)         bf16 im2col weights (Cout zero-padded to Cp)
    b_ref    : (1, Cp)                 f32 bias (zero-padded)
    o_ref    : (NB, H//P, W//P, Cp)    bf16 pooled output tile (lane-dense)
    xp_scr   : (NB, H+KH-1, W+KW-1, Cin) bf16 'same'-padded input scratch
    patch_scr: (NB*H*W, KH*KW*Cin)     bf16 im2col patch scratch
    y_scr    : (NB, H//P, W, Cp)       f32 H-pooled conv+LeakyReLU staging scratch
    """
    Hp, Wp = H + KH - 1, W + KW - 1
    Ho, Wo = H // P, W // P
    M = NB * H * W
    ph_r, pw_r = KH - 1 - ph_l, KW - 1 - pw_l

    # ---- 'same' zero padding in VMEM: zero only the thin halo strips ----
    # (interior is fully rewritten each step; halo re-zeroed each step so this is
    #  correct regardless of how the grid axis is sharded across cores)
    if ph_l > 0:
        xp_scr[:, :ph_l, :, :] = jnp.zeros((NB, ph_l, Wp, Cin), xp_scr.dtype)
    if ph_r > 0:
        xp_scr[:, ph_l + H:, :, :] = jnp.zeros((NB, ph_r, Wp, Cin), xp_scr.dtype)
    if pw_l > 0:
        xp_scr[:, :, :pw_l, :] = jnp.zeros((NB, Hp, pw_l, Cin), xp_scr.dtype)
    if pw_r > 0:
        xp_scr[:, :, pw_l + W:, :] = jnp.zeros((NB, Hp, pw_r, Cin), xp_scr.dtype)
    xp_scr[:, ph_l:ph_l + H, pw_l:pw_l + W, :] = x_ref[...]          # bf16 -> bf16

    # ---- im2col into a bf16 VMEM scratch (one small store per tap, no concat) ----
    t = 0
    for dy in range(KH):
        for dx in range(KW):
            tap = xp_scr[:, dy:dy + H, dx:dx + W, :]                  # (NB,H,W,Cin)
            patch_scr[:, t * Cin:(t + 1) * Cin] = tap.reshape(M, Cin)
            t += 1

    # ---- single MXU matmul, f32 accumulation (K = KH*KW*Cin; MXU not the bottleneck) ----
    acc = jnp.dot(patch_scr[...], w_ref[...],
                  preferred_element_type=jnp.float32)                 # (M, Cp) f32

    # ---- bias + LeakyReLU(0.3) on full 128-lane vregs, f32 ----
    acc = acc + b_ref[...]
    acc = jnp.where(acc >= 0, acc, slope * acc)

    # ---- MaxPool2d(P): H first, in registers (untiled-dim max, pure VPU; the
    #      reshape is layout-preserving since W % 8 == 0), stage the P x smaller
    #      result, then W via strided sublane reads (Cout stays on lanes) ----
    y_scr[...] = jnp.max(acc.reshape(NB, Ho, P, W, Cp), axis=2)       # (NB,Ho,W,Cp)

    pooled = y_scr[:, :, pl.ds(0, Wo, stride=P), :]                   # (NB,Ho,Wo,Cp)
    for px in range(1, P):
        pooled = jnp.maximum(pooled, y_scr[:, :, pl.ds(px, Wo, stride=P), :])
    o_ref[...] = pooled.astype(o_ref.dtype)                           # bf16 store


def _tpu_vmem_bytes():
    """Physical per-core VMEM (generation-aware); conservative fallback = 64 MiB."""
    try:
        return int(pltpu.get_tpu_info().vmem_capacity_bytes)
    except Exception:
        return 64 << 20


def _pick_batch_block(N, per_image_bytes, budget_bytes):
    """Largest divisor of N whose per-step footprint fits the budget while keeping
    >= 2 grid entries (so a core-sharded grid can feed both v7x TensorCores)."""
    best = 1
    for nb in range(1, N + 1):
        if N % nb:
            continue
        if nb * per_image_bytes > budget_bytes:
            break
        if N == 1 or N // nb >= 2:
            best = nb
    return best


def conv_block(x_nchw, w_hwio, b, pool, *, batch_block=None):
    """ConvBlock forward: (N, Cin, H, W) -> (N, Cout, H//pool, W//pool)."""
    N, Cin, H, W = x_nchw.shape
    KH, KW, wCin, Cout = w_hwio.shape
    assert wCin == Cin
    P = int(pool)
    # TODO(synk): PyTorch MaxPool2d silently floors non-divisible sizes; unsupported here.
    assert H % P == 0 and W % P == 0

    out_dtype = x_nchw.dtype
    Kraw = KH * KW * Cin
    Cp = max(128, ((Cout + 127) // 128) * 128)        # lane-dense output channels
    Hp, Wp = H + KH - 1, W + KW - 1
    Ho, Wo = H // P, W // P
    # PyTorch 'same': left = floor((k-1)/2), right = ceil((k-1)/2)  (matches lax SAME).
    ph_l, pw_l = (KH - 1) // 2, (KW - 1) // 2

    # NHWC activations, bf16 on the wire (halves input HBM/DMA bytes).
    x_nhwc = jnp.transpose(x_nchw, (0, 2, 3, 1)).astype(jnp.bfloat16)

    # im2col weights: (KH, KW, Cin, Cout) -> (KH*KW*Cin, Cp), Cout zero-padded.
    w2d = w_hwio.reshape(Kraw, Cout).astype(jnp.bfloat16)
    w2d = jnp.pad(w2d, ((0, 0), (0, Cp - Cout)))
    b2d = jnp.pad(b.astype(jnp.float32), (0, Cp - Cout)).reshape(1, Cp)

    # Generation-aware VMEM budgeting (v5e/v6e: 128 MiB, v7x: 64 MiB physical).
    phys_vmem = _tpu_vmem_bytes()
    vmem_limit = int(min(phys_vmem * 3 // 4, 100 << 20))

    if batch_block is None:
        per_img = (2 * H * W * Cin * 2                 # double-buffered bf16 input block
                   + 2 * Ho * Wo * Cp * 2              # double-buffered bf16 output block
                   + Hp * Wp * Cin * 2                 # xp_scr (bf16)
                   + H * W * max(Kraw, 128) * 2        # patch_scr (bf16, lane-padded)
                   + H * W * Cp * 4                    # f32 matmul accumulator (live/spill)
                   + Ho * W * Cp * 4)                  # y_scr (f32, H-pooled)
        fixed = 2 * Kraw * Cp * 2 + 2 * Cp * 4 + (2 << 20)   # weights/bias buffers + slack
        batch_block = _pick_batch_block(N, per_img, vmem_limit - fixed)
    NB = batch_block
    assert N % NB == 0

    kern = functools.partial(
        conv_block_kernel, NB=NB, H=H, W=W, KH=KH, KW=KW, Cin=Cin, Cp=Cp, P=P,
        ph_l=ph_l, pw_l=pw_l, slope=0.3)

    out = pl.pallas_call(
        kern,
        out_shape=jax.ShapeDtypeStruct((N, Ho, Wo, Cp), jnp.bfloat16),
        grid=(N // NB,),
        in_specs=[
            pl.BlockSpec((NB, H, W, Cin), lambda n: (n, 0, 0, 0)),
            pl.BlockSpec((Kraw, Cp), lambda n: (0, 0)),
            pl.BlockSpec((1, Cp), lambda n: (0, 0)),
        ],
        out_specs=pl.BlockSpec((NB, Ho, Wo, Cp), lambda n: (n, 0, 0, 0)),
        scratch_shapes=[
            pltpu.VMEM((NB, Hp, Wp, Cin), jnp.bfloat16),   # 'same'-padded input
            pltpu.VMEM((NB * H * W, Kraw), jnp.bfloat16),  # im2col patch matrix
            pltpu.VMEM((NB, Ho, W, Cp), jnp.float32),      # H-pooled staging
        ],
        compiler_params=pltpu.CompilerParams(
            dimension_semantics=("parallel",),
            vmem_limit_bytes=vmem_limit,
        ),
    )(x_nhwc, w2d, b2d)

    # Drop padded channels, upcast from the bf16 wire format, back to NCHW.
    return jnp.transpose(out[..., :Cout], (0, 3, 1, 2)).astype(out_dtype)


if __name__ == "__main__":
    key = jax.random.PRNGKey(0)
    N, Cin, H, W = 2, 4, 16, 16            # input (NCHW)
    Cout, K, P = 8, 3, 2                   # out_channels, kernel_size, pool_kernel

    kx, kw_key, kb_key = jax.random.split(key, 3)
    x = jax.random.normal(kx, (N, Cin, H, W), jnp.float32)

    # Deterministic init mirroring PyTorch Conv2d default: U(-b, b), b = 1/sqrt(fan_in)
    fan_in = Cin * K * K
    bound = 1.0 / (fan_in ** 0.5)
    w_oihw = jax.random.uniform(kw_key, (Cout, Cin, K, K), jnp.float32, -bound, bound)
    bias = jax.random.uniform(kb_key, (Cout,), jnp.float32, -bound, bound)
    w_hwio = jnp.transpose(w_oihw, (2, 3, 1, 0))

    y = jax.block_until_ready(conv_block(x, w_hwio, bias, P))

    # Plain-JAX reference using the same bf16 matmul operands / f32 accumulation.
    x_nhwc = jnp.transpose(x, (0, 2, 3, 1)).astype(jnp.bfloat16)
    ref = jax.lax.conv_general_dilated(
        x_nhwc, w_hwio.astype(jnp.bfloat16), (1, 1), "SAME",
        dimension_numbers=("NHWC", "HWIO", "NHWC"),
        preferred_element_type=jnp.float32) + bias
    ref = jnp.where(ref >= 0, ref, 0.3 * ref)
    ref = jax.lax.reduce_window(ref, -jnp.inf, jax.lax.max,
                                (1, P, P, 1), (1, P, P, 1), "VALID")
    ref = jnp.transpose(ref, (0, 3, 1, 2)).astype(jnp.float32)

    assert y.shape == (N, Cout, H // P, W // P), y.shape
    assert jnp.allclose(y, ref, atol=1e-2, rtol=1e-2), float(jnp.abs(y - ref).max())
    print("KERNEL_OK")
</pallas_src>

<mosaic_0001>
module attributes {stable_mosaic.version = 11 : i64} {
  func.func @conv_block_kernel(%arg0: i32, %arg1: memref<1x16x16x4xbf16, #tpu.memory_space<vmem>>, %arg2: memref<36x128xbf16, #tpu.memory_space<vmem>>, %arg3: memref<1x128xf32, #tpu.memory_space<vmem>>, %arg4: memref<1x8x8x128xbf16, #tpu.memory_space<vmem>>, %arg5: memref<1x18x18x4xbf16, #tpu.memory_space<vmem>>, %arg6: memref<256x36xbf16, #tpu.memory_space<vmem>>, %arg7: memref<1x8x16x128xf32, #tpu.memory_space<vmem>>) attributes {dimension_semantics = [#tpu.dimension_semantics<parallel>], iteration_bounds = array<i64: 2>, scalar_prefetch = 0 : i64, scratch_operands = 3 : i64, tpu.core_type = #tpu.core_type<tc>, window_params = [{transform_indices = @transform_0, window_bounds = array<i64: 1, 16, 16, 4>}, {pipeline_mode = #tpu.pipeline_mode<synchronous>, transform_indices = @transform_1, window_bounds = array<i64: 36, 128>}, {pipeline_mode = #tpu.pipeline_mode<synchronous>, transform_indices = @transform_2, window_bounds = array<i64: 1, 128>}, {transform_indices = @transform_3, window_bounds = array<i64: 1, 8, 8, 128>}]} {
    %cst = arith.constant 0.000000e+00 : bf16
    %0 = vector.broadcast %cst : bf16 to vector<1x1x18x4xbf16>
    %c0 = arith.constant 0 : index
    %c0_0 = arith.constant 0 : index
    %c0_1 = arith.constant 0 : index
    %c0_2 = arith.constant 0 : index
    %1 = vector.load %arg5[%c0, %c0_0, %c0_1, %c0_2] : memref<1x18x18x4xbf16, #tpu.memory_space<vmem>>, vector<1x1x18x4xbf16>
    tpu.vector_store %arg5[%c0, %c0_0, %c0_1, %c0_2], %0 {strides = array<i32>} : memref<1x18x18x4xbf16, #tpu.memory_space<vmem>>, vector<1x1x18x4xbf16>,
    %cst_3 = arith.constant 0.000000e+00 : bf16
    %2 = vector.broadcast %cst_3 : bf16 to vector<1x1x18x4xbf16>
    %c0_4 = arith.constant 0 : index
    %c17 = arith.constant 17 : index
    %c0_5 = arith.constant 0 : index
    %c0_6 = arith.constant 0 : index
    %3 = vector.load %arg5[%c0_4, %c17, %c0_5, %c0_6] : memref<1x18x18x4xbf16, #tpu.memory_space<vmem>>, vector<1x1x18x4xbf16>
    tpu.vector_store %arg5[%c0_4, %c17, %c0_5, %c0_6], %2 {strides = array<i32>} : memref<1x18x18x4xbf16, #tpu.memory_space<vmem>>, vector<1x1x18x4xbf16>,
    %cst_7 = arith.constant 0.000000e+00 : bf16
    %4 = vector.broadcast %cst_7 : bf16 to vector<1x18x1x4xbf16>
    %c0_8 = arith.constant 0 : index
    %c0_9 = arith.constant 0 : index
    %c0_10 = arith.constant 0 : index
    %c0_11 = arith.constant 0 : index
    %5 = vector.load %arg5[%c0_8, %c0_9, %c0_10, %c0_11] : memref<1x18x18x4xbf16, #tpu.memory_space<vmem>>, vector<1x18x1x4xbf16>
    tpu.vector_store %arg5[%c0_8, %c0_9, %c0_10, %c0_11], %4 {strides = array<i32>} : memref<1x18x18x4xbf16, #tpu.memory_space<vmem>>, vector<1x18x1x4xbf16>,
    %cst_12 = arith.constant 0.000000e+00 : bf16
    %6 = vector.broadcast %cst_12 : bf16 to vector<1x18x1x4xbf16>
    %c0_13 = arith.constant 0 : index
    %c0_14 = arith.constant 0 : index
    %c17_15 = arith.constant 17 : index
    %c0_16 = arith.constant 0 : index
    %7 = vector.load %arg5[%c0_13, %c0_14, %c17_15, %c0_16] : memref<1x18x18x4xbf16, #tpu.memory_space<vmem>>, vector<1x18x1x4xbf16>
    tpu.vector_store %arg5[%c0_13, %c0_14, %c17_15, %c0_16], %6 {strides = array<i32>} : memref<1x18x18x4xbf16, #tpu.memory_space<vmem>>, vector<1x18x1x4xbf16>,
    %c0_17 = arith.constant 0 : index
    %c0_18 = arith.constant 0 : index
    %c0_19 = arith.constant 0 : index
    %c0_20 = arith.constant 0 : index
    %8 = vector.load %arg1[%c0_17, %c0_18, %c0_19, %c0_20] : memref<1x16x16x4xbf16, #tpu.memory_space<vmem>>, vector<1x16x16x4xbf16>
    %c0_21 = arith.constant 0 : index
    %c1 = arith.constant 1 : index
    %c1_22 = arith.constant 1 : index
    %c0_23 = arith.constant 0 : index
    %9 = vector.load %arg5[%c0_21, %c1, %c1_22, %c0_23] : memref<1x18x18x4xbf16, #tpu.memory_space<vmem>>, vector<1x16x16x4xbf16>
    tpu.vector_store %arg5[%c0_21, %c1, %c1_22, %c0_23], %8 {strides = array<i32>} : memref<1x18x18x4xbf16, #tpu.memory_space<vmem>>, vector<1x16x16x4xbf16>,
    %c0_24 = arith.constant 0 : index
    %c0_25 = arith.constant 0 : index
    %c0_26 = arith.constant 0 : index
    %c0_27 = arith.constant 0 : index
    %10 = vector.load %arg5[%c0_24, %c0_25, %c0_26, %c0_27] : memref<1x18x18x4xbf16, #tpu.memory_space<vmem>>, vector<1x16x16x4xbf16>
    %11 = vector.shape_cast %10 : vector<1x16x16x4xbf16> to vector<256x4xbf16>
    %c0_28 = arith.constant 0 : index
    %c0_29 = arith.constant 0 : index
    %12 = vector.load %arg6[%c0_28, %c0_29] : memref<256x36xbf16, #tpu.memory_space<vmem>>, vector<256x4xbf16>
    tpu.vector_store %arg6[%c0_28, %c0_29], %11 {strides = array<i32>} : memref<256x36xbf16, #tpu.memory_space<vmem>>, vector<256x4xbf16>,
    %c0_30 = arith.constant 0 : index
    %c0_31 = arith.constant 0 : index
    %c1_32 = arith.constant 1 : index
    %c0_33 = arith.constant 0 : index
    %13 = vector.load %arg5[%c0_30, %c0_31, %c1_32, %c0_33] : memref<1x18x18x4xbf16, #tpu.memory_space<vmem>>, vector<1x16x16x4xbf16>
    %14 = vector.shape_cast %13 : vector<1x16x16x4xbf16> to vector<256x4xbf16>
    %c0_34 = arith.constant 0 : index
    %c4 = arith.constant 4 : index
    %15 = vector.load %arg6[%c0_34, %c4] : memref<256x36xbf16, #tpu.memory_space<vmem>>, vector<256x4xbf16>
    tpu.vector_store %arg6[%c0_34, %c4], %14 {strides = array<i32>} : memref<256x36xbf16, #tpu.memory_space<vmem>>, vector<256x4xbf16>,
    %c0_35 = arith.constant 0 : index
    %c0_36 = arith.constant 0 : index
    %c2 = arith.constant 2 : index
    %c0_37 = arith.constant 0 : index
    %16 = vector.load %arg5[%c0_35, %c0_36, %c2, %c0_37] : memref<1x18x18x4xbf16, #tpu.memory_space<vmem>>, vector<1x16x16x4xbf16>
    %17 = vector.shape_cast %16 : vector<1x16x16x4xbf16> to vector<256x4xbf16>
    %c0_38 = arith.constant 0 : index
    %c8 = arith.constant 8 : index
    %18 = vector.load %arg6[%c0_38, %c8] : memref<256x36xbf16, #tpu.memory_space<vmem>>, vector<256x4xbf16>
    tpu.vector_store %arg6[%c0_38, %c8], %17 {strides = array<i32>} : memref<256x36xbf16, #tpu.memory_space<vmem>>, vector<256x4xbf16>,
    %c0_39 = arith.constant 0 : index
    %c1_40 = arith.constant 1 : index
    %c0_41 = arith.constant 0 : index
    %c0_42 = arith.constant 0 : index
    %19 = vector.load %arg5[%c0_39, %c1_40, %c0_41, %c0_42] : memref<1x18x18x4xbf16, #tpu.memory_space<vmem>>, vector<1x16x16x4xbf16>
    %20 = vector.shape_cast %19 : vector<1x16x16x4xbf16> to vector<256x4xbf16>
    %c0_43 = arith.constant 0 : index
    %c12 = arith.constant 12 : index
    %21 = vector.load %arg6[%c0_43, %c12] : memref<256x36xbf16, #tpu.memory_space<vmem>>, vector<256x4xbf16>
    tpu.vector_store %arg6[%c0_43, %c12], %20 {strides = array<i32>} : memref<256x36xbf16, #tpu.memory_space<vmem>>, vector<256x4xbf16>,
    %c0_44 = arith.constant 0 : index
    %c1_45 = arith.constant 1 : index
    %c1_46 = arith.constant 1 : index
    %c0_47 = arith.constant 0 : index
    %22 = vector.load %arg5[%c0_44, %c1_45, %c1_46, %c0_47] : memref<1x18x18x4xbf16, #tpu.memory_space<vmem>>, vector<1x16x16x4xbf16>
    %23 = vector.shape_cast %22 : vector<1x16x16x4xbf16> to vector<256x4xbf16>
    %c0_48 = arith.constant 0 : index
    %c16 = arith.constant 16 : index
    %24 = vector.load %arg6[%c0_48, %c16] : memref<256x36xbf16, #tpu.memory_space<vmem>>, vector<256x4xbf16>
    tpu.vector_store %arg6[%c0_48, %c16], %23 {strides = array<i32>} : memref<256x36xbf16, #tpu.memory_space<vmem>>, vector<256x4xbf16>,
    %c0_49 = arith.constant 0 : index
    %c1_50 = arith.constant 1 : index
    %c2_51 = arith.constant 2 : index
    %c0_52 = arith.constant 0 : index
    %25 = vector.load %arg5[%c0_49, %c1_50, %c2_51, %c0_52] : memref<1x18x18x4xbf16, #tpu.memory_space<vmem>>, vector<1x16x16x4xbf16>
    %26 = vector.shape_cast %25 : vector<1x16x16x4xbf16> to vector<256x4xbf16>
    %c0_53 = arith.constant 0 : index
    %c20 = arith.constant 20 : index
    %27 = vector.load %arg6[%c0_53, %c20] : memref<256x36xbf16, #tpu.memory_space<vmem>>, vector<256x4xbf16>
    tpu.vector_store %arg6[%c0_53, %c20], %26 {strides = array<i32>} : memref<256x36xbf16, #tpu.memory_space<vmem>>, vector<256x4xbf16>,
    %c0_54 = arith.constant 0 : index
    %c2_55 = arith.constant 2 : index
    %c0_56 = arith.constant 0 : index
    %c0_57 = arith.constant 0 : index
    %28 = vector.load %arg5[%c0_54, %c2_55, %c0_56, %c0_57] : memref<1x18x18x4xbf16, #tpu.memory_space<vmem>>, vector<1x16x16x4xbf16>
    %29 = vector.shape_cast %28 : vector<1x16x16x4xbf16> to vector<256x4xbf16>
    %c0_58 = arith.constant 0 : index
    %c24 = arith.constant 24 : index
    %30 = vector.load %arg6[%c0_58, %c24] : memref<256x36xbf16, #tpu.memory_space<vmem>>, vector<256x4xbf16>
    tpu.vector_store %arg6[%c0_58, %c24], %29 {strides = array<i32>} : memref<256x36xbf16, #tpu.memory_space<vmem>>, vector<256x4xbf16>,
    %c0_59 = arith.constant 0 : index
    %c2_60 = arith.constant 2 : index
    %c1_61 = arith.constant 1 : index
    %c0_62 = arith.constant 0 : index
    %31 = vector.load %arg5[%c0_59, %c2_60, %c1_61, %c0_62] : memref<1x18x18x4xbf16, #tpu.memory_space<vmem>>, vector<1x16x16x4xbf16>
    %32 = vector.shape_cast %31 : vector<1x16x16x4xbf16> to vector<256x4xbf16>
    %c0_63 = arith.constant 0 : index
    %c28 = arith.constant 28 : index
    %33 = vector.load %arg6[%c0_63, %c28] : memref<256x36xbf16, #tpu.memory_space<vmem>>, vector<256x4xbf16>
    tpu.vector_store %arg6[%c0_63, %c28], %32 {strides = array<i32>} : memref<256x36xbf16, #tpu.memory_space<vmem>>, vector<256x4xbf16>,
    %c0_64 = arith.constant 0 : index
    %c2_65 = arith.constant 2 : index
    %c2_66 = arith.constant 2 : index
    %c0_67 = arith.constant 0 : index
    %34 = vector.load %arg5[%c0_64, %c2_65, %c2_66, %c0_67] : memref<1x18x18x4xbf16, #tpu.memory_space<vmem>>, vector<1x16x16x4xbf16>
    %35 = vector.shape_cast %34 : vector<1x16x16x4xbf16> to vector<256x4xbf16>
    %c0_68 = arith.constant 0 : index
    %c32 = arith.constant 32 : index
    %36 = vector.load %arg6[%c0_68, %c32] : memref<256x36xbf16, #tpu.memory_space<vmem>>, vector<256x4xbf16>
    tpu.vector_store %arg6[%c0_68, %c32], %35 {strides = array<i32>} : memref<256x36xbf16, #tpu.memory_space<vmem>>, vector<256x4xbf16>,
    %c0_69 = arith.constant 0 : index
    %c0_70 = arith.constant 0 : index
    %37 = vector.load %arg6[%c0_69, %c0_70] : memref<256x36xbf16, #tpu.memory_space<vmem>>, vector<256x36xbf16>
    %c0_71 = arith.constant 0 : index
    %c0_72 = arith.constant 0 : index
    %38 = vector.load %arg2[%c0_71, %c0_72] : memref<36x128xbf16, #tpu.memory_space<vmem>>, vector<36x128xbf16>
    %cst_73 = arith.constant dense<0.000000e+00> : vector<256x128xf32>
    %39 = tpu.matmul %37, %38, %cst_73 {dimension_numbers = #tpu.dot_dimension_numbers<[1], [0], [0], [1], [0, 0, 1, 1], [], []>} : vector<256x36xbf16>, vector<36x128xbf16>, vector<256x128xf32> -> vector<256x128xf32>
    %c0_74 = arith.constant 0 : index
    %c0_75 = arith.constant 0 : index
    %40 = vector.load %arg3[%c0_74, %c0_75] : memref<1x128xf32, #tpu.memory_space<vmem>>, vector<1x128xf32>
    %41 = vector.broadcast %40 : vector<1x128xf32> to vector<256x128xf32>
    %42 = arith.addf %39, %41 : vector<256x128xf32>
    %cst_76 = arith.constant 0.000000e+00 : f32
    %43 = vector.broadcast %cst_76 : f32 to vector<256x128xf32>
    %44 = arith.cmpf oge, %42, %43 : vector<256x128xf32>
    %cst_77 = arith.constant 3.000000e-01 : f32
    %45 = vector.broadcast %cst_77 : f32 to vector<256x128xf32>
    %46 = arith.mulf %45, %42 : vector<256x128xf32>
    %47 = arith.select %44, %42, %46 : vector<256x128xi1>, vector<256x128xf32>
    %48 = vector.shape_cast %47 : vector<256x128xf32> to vector<1x8x2x16x128xf32>
    %cst_78 = arith.constant dense<0xFF800000> : vector<1x8x16x128xf32>
    %49 = vector.multi_reduction <maximumf>, %48, %cst_78 [2] : vector<1x8x2x16x128xf32> to vector<1x8x16x128xf32>
    %c0_79 = arith.constant 0 : index
    %c0_80 = arith.constant 0 : index
    %c0_81 = arith.constant 0 : index
    %c0_82 = arith.constant 0 : index
    %50 = vector.load %arg7[%c0_79, %c0_80, %c0_81, %c0_82] : memref<1x8x16x128xf32, #tpu.memory_space<vmem>>, vector<1x8x16x128xf32>
    tpu.vector_store %arg7[%c0_79, %c0_80, %c0_81, %c0_82], %49 {strides = array<i32>} : memref<1x8x16x128xf32, #tpu.memory_space<vmem>>, vector<1x8x16x128xf32>,
    %c0_83 = arith.constant 0 : index
    %c0_84 = arith.constant 0 : index
    %c0_85 = arith.constant 0 : index
    %c0_86 = arith.constant 0 : index
    %51 = tpu.strided_load %arg7[%c0_83, %c0_84, %c0_85, %c0_86] {strides = array<i32: 1, 1, 2, 1>} : memref<1x8x16x128xf32, #tpu.memory_space<vmem>>, vector<1x8x8x128xf32>
    %c0_87 = arith.constant 0 : index
    %c0_88 = arith.constant 0 : index
    %c1_89 = arith.constant 1 : index
    %c0_90 = arith.constant 0 : index
    %52 = tpu.strided_load %arg7[%c0_87, %c0_88, %c1_89, %c0_90] {strides = array<i32: 1, 1, 2, 1>} : memref<1x8x16x128xf32, #tpu.memory_space<vmem>>, vector<1x8x8x128xf32>
    %53 = arith.maximumf %51, %52 : vector<1x8x8x128xf32>
    %54 = arith.truncf %53 : vector<1x8x8x128xf32> to vector<1x8x8x128xbf16>
    %c0_91 = arith.constant 0 : index
    %c0_92 = arith.constant 0 : index
    %c0_93 = arith.constant 0 : index
    %c0_94 = arith.constant 0 : index
    %55 = vector.load %arg4[%c0_91, %c0_92, %c0_93, %c0_94] : memref<1x8x8x128xbf16, #tpu.memory_space<vmem>>, vector<1x8x8x128xbf16>
    tpu.vector_store %arg4[%c0_91, %c0_92, %c0_93, %c0_94], %54 {strides = array<i32>} : memref<1x8x8x128xbf16, #tpu.memory_space<vmem>>, vector<1x8x8x128xbf16>,
    return
  }
  func.func @transform_0(%arg0: i32) -> (i32, i32, i32, i32) {
    %c0_i32 = arith.constant 0 : i32
    %c0_i32_0 = arith.constant 0 : i32
    %c0_i32_1 = arith.constant 0 : i32
    %c0_i32_2 = arith.constant 0 : i32
    return %arg0, %c0_i32, %c0_i32_0, %c0_i32_1 : i32, i32, i32, i32
  }
  func.func @transform_1(%arg0: i32) -> (i32, i32) {
    %c0_i32 = arith.constant 0 : i32
    %c0_i32_0 = arith.constant 0 : i32
    %c0_i32_1 = arith.constant 0 : i32
    return %c0_i32, %c0_i32_0 : i32, i32
  }
  func.func @transform_2(%arg0: i32) -> (i32, i32) {
    %c0_i32 = arith.constant 0 : i32
    %c0_i32_0 = arith.constant 0 : i32
    %c0_i32_1 = arith.constant 0 : i32
    return %c0_i32, %c0_i32_0 : i32, i32
  }
  func.func @transform_3(%arg0: i32) -> (i32, i32, i32, i32) {
    %c0_i32 = arith.constant 0 : i32
    %c0_i32_0 = arith.constant 0 : i32
    %c0_i32_1 = arith.constant 0 : i32
    %c0_i32_2 = arith.constant 0 : i32
    return %arg0, %c0_i32, %c0_i32_0, %c0_i32_1 : i32, i32, i32, i32
  }
}

</mosaic_0001>

<bundles_post_ra>
// kernel: tpu_custom_call.1
= control target key start
LH: loop header
LB: loop body
LE: loop exit
PB: predicated region body
PF: predicated region fallthrough
CT: control target
= control target key end

     0   :  { %8 = vsyncpa [#allocation6], 0  ;;  %s6758_s0 = inlined_call_operand.vmem [shape: bf16[2,16,16,4], index: 0, kind: input, shape index: {}]   ;;  %s6759_s1 = inlined_call_operand.vmem [shape: bf16[36,128], index: 1, kind: input, shape index: {}]   ;;  %s6760_s2 = inlined_call_operand.vmem [shape: f32[1,128], index: 2, kind: input, shape index: {}]   ;;  %s6761_s3 = inlined_call_operand.hbm [shape: bf16[2,8,8,128], index: 3, kind: output, shape index: {}]  }
   0x1   :  { %10 = vsyncpa [#allocation6 + $0x1], 0  ;;  %s4795_s12 = smov 0   ;;  %s4797_s13 = smov 0  }
   0x2   :  { %s4799_s14 = smov 0   ;;  %s4801_s15 = smov 0  }
   0x3 LB: > { %s4816_s16 = sadd.s32 4294967295, %s4763_s15   ;;  %s4451_s17 = sadd.s32 4294967294, %s4763_s15   ;;  %s4763_s15 = sphi %s4801_s15, %s6779_s15   ;;  %s4759_s14 = sphi %s4799_s14, %s6778_s14   ;;  %s4755_s13 = sphi %s4797_s13, %s6777_s13   ;;  %s4751_s12 = sphi %s4795_s12, %s6776_s12  }
   0x4   : > { %s4820_s18 = sadd.s32 1, %s4763_s15   ;;  %s91_s19 = sadd.s32 1, %s4759_s14 }
   0x5   : > { %s88_s20 = ssub.s32 %s4763_s15, %s4820_s18  ;;  %p101_p0 = scmp.ne.s32.totalorder %s4759_s14, %s4755_s13 }
   0x6   : > { %p89_p1 = scmp.eq.s32.totalorder %s88_s20, 0  ;;  %p102_p2 = scmp.eq.s32.totalorder %s4816_s16, 1 }
   0x7   : > { %p107_p3 = scmp.ne.s32.totalorder %s4755_s13, %s4751_s12  ;;  %p108_p4 = scmp.eq.s32.totalorder %s4451_s17, 1 }
   0x8   : > { %s4831_s21 = scalar_select %p89_p1, %s4759_s14, %s91_s19  }
   0x9   : > { %p4833_p5 = por %p102_p2, %p101_p0  ;;  %p4837_p6 = por %p108_p4, %p107_p3 }
   0xa   : > { %p4454_p7 = scmp.ge.s32.totalorder %s4763_s15, 1  ;;  %p140_p8 = scmp.lt.s32.totalorder %s4763_s15, 3 }
   0xc   : > { %p141_p9 = pnand %p4454_p7, %p140_p8 }
   0xd   : > { %p164_p10 = scmp.lt.s32.totalorder (!%p141_p9), %s4816_s16, 1  ;;  %s4766_s29 = smov (!%p141_p9), 4  }
   0xe   : > { %144 = sbr.rel (%p141_p9) target bundleno = 1045 (0x415), region = 32  ;;  %s4767_s30 = smov (!%p141_p9), 8  }
   0xf   : > { %s4768_s4 = smov (!%p141_p9), 12   ;;  %s4769_s5 = smov (!%p141_p9), 16  }
  0x10   : > { %s4770_s6 = smov (!%p141_p9), 20   ;;  %s4771_s7 = smov (!%p141_p9), 24  }
  0x11   : > { %s4772_s8 = smov (!%p141_p9), 28   ;;  %s4773_s9 = smov (!%p141_p9), 32  }
  0x12   : > { %s161_s27 = sand.u32 (!%p141_p9), 1, %s4755_s13   ;;  %s4721_s20 = scalar_lea.hbm (!%p141_p9), %s6761_s3, 64 }
  0x13   : > { %vm170_vm0 = vcmask 27648   ;;  %vm173_vm1 = vcmask 24576   ;;  %vm180_vm2 = vsmask.f32 256  ;;  %v4765_v0 = vmov 0   ;;  %s165_s24 = scalar_select %p164_p10, %s4816_s16, 1 }
  0x14   : > { %172 = vst.msk [vmem:[#allocation2 + $0x4] sm:$0xf] %vm170_vm0, %v4765_v0  ;;  %vm4846_vm3 = vmand %vm173_vm1, %vm180_vm2  ;;  %v185_v2 = vld [vmem:[#allocation2 + $0xc] sm:$0x1]  ;;  %vm236_vm4 = vsmask.f32 7938 }
  0x15   : > { %174 = vst.msk [vmem:[#allocation2 + $0x8] sm:$0x1] %vm173_vm1, %v4765_v0  ;;  %v186_v3 = vsel %vm4846_vm3, 0, %v185_v2  ;;  %s4599_s25 = sshll.u32 %s165_s24, 7  ;;  %vm324_vm5 = vsmask.f32 4368  ;;  %vm4861_vm6 = vmand %vm173_vm1, %vm236_vm4 }
  0x16   : > { %171 = vst.msk [vmem:[#allocation2] sm:$0xf] %vm170_vm0, %v4765_v0  ;;  %s4868_s28 = scalar_lea.vmem %s6758_s0, %s4599_s25  ;;  %v191_v5 = vld [vmem:[#allocation2 + $0x24] sm:$0x1]  ;;  %v241_v6 = vld [vmem:[#allocation2 + $0x14] sm:$0x1]  ;;  %vm4884_vm9 = vmand %vm170_vm0, %vm236_vm4 }
  0x17   : > { %176 = vst.msk [vmem:[#allocation2 + $0xcc] sm:$0xf] %vm170_vm0, %v4765_v0  ;;  %v292_v8 = vld [vmem:[%s4868_s28] sm:$0xf]  ;;  %v293_v9 = vld [vmem:[%s4868_s28 + $0x4] sm:$0xf]  ;;  %vm4894_vm10 = vmor %vm180_vm2, %vm324_vm5 }
  0x18   : > { %177 = vst.msk [vmem:[#allocation2 + $0xd0] sm:$0xf] %vm170_vm0, %v4765_v0  ;;  %vm873_vm7 = vsmask.f32 3328  ;;  %vm874_vm8 = vsmask.f32 7440 }
  0x19   : > { %178 = vst.msk [vmem:[#allocation2 + $0xd4] sm:$0x1] %vm173_vm1, %v4765_v0  ;;  %v327_v13 = vshrl.u32 %v292_v8, 16  ;;  %v330_v14 = vshll.u32 %v292_v8, 16  ;;  %v335_v17 = vshrl.u32 %v293_v9, 16  ;;  %v338_v18 = vshll.u32 %v293_v9, 16  ;;  %vm4922_vm11 = vmor %vm873_vm7, %vm874_vm8 }
  0x1a   : > { %187 = vst [vmem:[#allocation2 + $0xc] sm:$0x1] %v186_v3  ;;  %v192_v19 = vsel %vm4846_vm3, 0, %v191_v5  ;;  %v250_v20 = vld [vmem:[#allocation2 + $0x38] sm:$0x1]  ;;  %v242_v29 = vsel %vm4861_vm6, 0, %v241_v6 }
  0x1b   : > { %v826_v7 = vld [vmem:[#allocation2 + $0x4] sm:$0xf]  ;;  %v4876_v21 = vld [vmem:[#allocation2 + $0x2c] sm:$0x1]  ;;  %v329_v25 = vrot.slane %v327_v13, 7  ;;  %v337_v27 = vrot.slane %v335_v17, 7 }
  0x1c   : > { %v238_v10 = vld [vmem:[#allocation2 + $0x8] sm:$0x1]  ;;  %v886_v11 = vshll.u32 %v826_v7, 16  ;;  %v890_v12 = vshrl.u32 %v826_v7, 16  ;;  %v296_v28 = vld [vmem:[%s4868_s28 + $0x10] sm:$0xf] }
  0x1d   : > { %v239_v15 = vsel %vm4861_vm6, 0, %v238_v10  ;;  %v182_v16 = vld [vmem:[#allocation2] sm:$0x1]  ;;  %v332_v32 = vor.u32 %v330_v14, %v329_v25  ;;  %v333_v33 = vrot.slane %v329_v25, 4  ;;  %193 = vst [vmem:[#allocation2 + $0x24] sm:$0x1] %v192_v19  ;;  %v340_v36 = vor.u32 %v338_v18, %v337_v27 }
  0x1e   : > { %240 = vst [vmem:[#allocation2 + $0x8] sm:$0x1] %v239_v15  ;;  %v4878_v22 = vrot.slane %v886_v11, 5  ;;  %v892_v23 = vrot.slane %v890_v12, 4  ;;  %v183_v24 = vsel %vm4846_vm3, 0, %v182_v16  ;;  %v361_v35 = vshrl.u32 %v296_v28, 16 }
  0x1f   : > { %184 = vst [vmem:[#allocation2] sm:$0x1] %v183_v24  ;;  %v297_v34 = vld [vmem:[%s4868_s28 + $0x14] sm:$0xf]  ;;  %v364_v38 = vshll.u32 %v296_v28, 16  ;;  %v251_v43 = vsel %vm4861_vm6, 0, %v250_v20  ;;  %v341_v46 = vsel %vm4894_vm10, %v333_v33, %v340_v36 }
  0x20   : > { %v893_v30 = vor.u32 %v892_v23, %v4878_v22  ;;  %v369_v39 = vshrl.u32 %v297_v34, 16  ;;  %v372_v40 = vshll.u32 %v297_v34, 16  ;;  %v363_v42 = vrot.slane %v361_v35, 7  ;;  %243 = vst [vmem:[#allocation2 + $0x14] sm:$0x1] %v242_v29 }
  0x21   : > { %v649_v37 = vld [vmem:[#allocation2 + $0xc] sm:$0xf]  ;;  %v248_v44 = vsel %vm4861_vm6, 0, %v4876_v21  ;;  %v4911_v48 = vld [vmem:[%s4868_s28 + $0x18] sm:$0xf]  ;;  %v342_v55 = vrot.slane %v337_v27, 4 }
  0x22   : > { %v650_v41 = vsel %vm4884_vm9, %v332_v32, %v649_v37  ;;  %v894_v45 = vrot.slane %v893_v30, 4  ;;  %v4908_v47 = vrot.slane %v369_v39, 7  ;;  %652 = vst.msk [vmem:[#allocation2 + $0x10] sm:$0xf] %vm170_vm0, %v341_v46  ;;  %v366_v49 = vor.u32 %v364_v38, %v363_v42  ;;  %v299_v51 = vld [vmem:[%s4868_s28 + $0x1c] sm:$0xf] }
  0x23   : > { %651 = vst [vmem:[#allocation2 + $0xc] sm:$0xf] %v650_v41  ;;  %v367_v50 = vrot.slane %v363_v42, 4  ;;  %v378_v52 = vshrl.u32 %v4911_v48, 16  ;;  %v386_v56 = vshrl.u32 %v299_v51, 16  ;;  %v389_v60 = vshll.u32 %v299_v51, 16 }
  0x24   : > { %v374_v54 = vor.u32 %v372_v40, %v4908_v47  ;;  %252 = vst [vmem:[#allocation2 + $0x38] sm:$0x1] %v251_v43  ;;  %v376_v61 = vrot.slane %v4908_v47, 4  ;;  %v663_v3 = vld [vmem:[#allocation2 + $0x24] sm:$0xf]  ;;  %vm1485_vm12 = vcmask 1042432  }
  0x25   : > { %v827_v53 = vld [vmem:[#allocation2 + $0x8] sm:$0x1]  ;;  %v4917_v59 = vrot.slane %v378_v52, 7  ;;  %v388_v5 = vrot.slane %v386_v56, 7  ;;  %v664_v7 = vsel %vm4884_vm9, %v366_v49, %v663_v3  ;;  %249 = vst [vmem:[#allocation2 + $0x2c] sm:$0x1] %v248_v44 }
  0x26   : > { %v896_v57 = vshll.u32 %v827_v53, 16  ;;  %v825_v58 = vld [vmem:[#allocation2] sm:$0xf]  ;;  %v375_v2 = vsel %vm4894_vm10, %v367_v50, %v374_v54  ;;  %v200_v9 = vld [vmem:[#allocation2 + $0x48] sm:$0x1]  ;;  %vm1486_vm13 = vcmask 1046532  }
  0x27   : > { %v877_v63 = vshrl.u32 %v825_v58, 16  ;;  %v880_v0 = vshll.u32 %v825_v58, 16  ;;  %666 = vst.msk [vmem:[#allocation2 + $0x28] sm:$0xf] %vm170_vm0, %v375_v2  ;;  %v384_v8 = vrot.slane %v4917_v59, 4  ;;  %v391_v13 = vor.u32 %v389_v60, %v388_v5  ;;  %vm5319_vm14 = vmor %vm1485_vm12, %vm1486_vm13 }
  0x28   : > { %v898_v6 = vrot.slane %v896_v57, 5  ;;  %665 = vst [vmem:[#allocation2 + $0x24] sm:$0xf] %v664_v7  ;;  %v653_v12 = vld [vmem:[#allocation2 + $0x14] sm:$0x1]  ;;  %v393_v17 = vrot.slane %v388_v5, 4 }
  0x29   : > { %v879_v10 = vrot.slane %v877_v63, 4  ;;  %v882_v11 = vrot.slane %v880_v0, 5  ;;  %v654_v16 = vsel %vm4846_vm3, %v342_v55, %v653_v12  ;;  %v201_v18 = vsel %vm4846_vm3, 0, %v200_v9  ;;  %v829_v20 = vld [vmem:[#allocation2 + $0x10] sm:$0xf] }
  0x2a   : > { %v899_v14 = vsel %vm4922_vm11, %v894_v45, %v898_v6  ;;  %v828_v15 = vld [vmem:[#allocation2 + $0xc] sm:$0xf]  ;;  %655 = vst [vmem:[#allocation2 + $0x14] sm:$0x1] %v654_v16  ;;  %v392_v24 = vsel %vm4894_vm10, %v384_v8, %v391_v13  ;;  %v910_v25 = vshll.u32 %v829_v20, 16  ;;  %v914_v27 = vshrl.u32 %v829_v20, 16 }
  0x2b   : > { %1262 = vrot.lane.b32.xlu0 %v899_v14, %s4766_s29  ;;  %v883_v19 = vor.u32 %v882_v11, %v879_v10  ;;  %v901_v21 = vshrl.u32 %v828_v15, 16  ;;  %v904_v23 = vshll.u32 %v828_v15, 16  ;;  %673 = vst.msk [vmem:[#allocation2 + $0x34] sm:$0xf] %vm170_vm0, %v392_v24  ;;  %v674_v28 = vld [vmem:[#allocation2 + $0x38] sm:$0x1] }
  0x2c   : > { %v675_v33 = vsel %vm4846_vm3, %v393_v17, %v674_v28  ;;  %202 = vst [vmem:[#allocation2 + $0x48] sm:$0x1] %v201_v18  ;;  %v912_v34 = vrot.slane %v910_v25, 5  ;;  %v916_v35 = vrot.slane %v914_v27, 4  ;;  %v302_v36 = vld [vmem:[%s4868_s28 + $0x28] sm:$0xf] }
  0x2d   : > { %v884_v29 = vrot.slane %v883_v19, 4  ;;  %v903_v30 = vrot.slane %v901_v21, 4  ;;  %v906_v32 = vrot.slane %v904_v23, 5  ;;  %676 = vst [vmem:[#allocation2 + $0x38] sm:$0x1] %v675_v33  ;;  %v412_v41 = vshrl.u32 %v302_v36, 16 }
  0x2e   : > { %v835_v39 = vld [vmem:[#allocation2 + $0x28] sm:$0xf]  ;;  %v303_v40 = vld [vmem:[%s4868_s28 + $0x2c] sm:$0xf]  ;;  %v415_v42 = vshll.u32 %v302_v36, 16  ;;  %v917_v46 = vor.u32 %v916_v35, %v912_v34  ;;  %vm1356_vm15 = vcmask 60448  }
  0x2f   : > { %v889_v37 = vsel %vm4922_vm11, %v884_v29, %v4878_v22  ;;  %v907_v38 = vor.u32 %v906_v32, %v903_v30  ;;  %v834_v43 = vld [vmem:[#allocation2 + $0x24] sm:$0xf]  ;;  %v958_v44 = vshll.u32 %v835_v39, 16  ;;  %v962_v45 = vshrl.u32 %v835_v39, 16  ;;  %v667_v53 = vld [vmem:[#allocation2 + $0x2c] sm:$0x1] }
  0x30   : > { %v420_v49 = vshrl.u32 %v303_v40, 16  ;;  %v949_v51 = vshrl.u32 %v834_v43, 16  ;;  %v952_v52 = vshll.u32 %v834_v43, 16  ;;  %v414_v54 = vrot.slane %v412_v41, 7  ;;  %v188_v17 = vld [vmem:[#allocation2 + $0x18] sm:$0x1] }
  0x31   : > { %v908_v50 = vrot.slane %v907_v38, 4  ;;  %v960_v55 = vrot.slane %v958_v44, 5  ;;  %v830_v56 = vld [vmem:[#allocation2 + $0x14] sm:$0x1]  ;;  %v918_v57 = vrot.slane %v917_v46, 4  ;;  %v668_v22 = vsel %vm4846_vm3, %v376_v61, %v667_v53 }
  0x32   : > { %v964_v58 = vrot.slane %v962_v45, 4  ;;  %v951_v63 = vrot.slane %v949_v51, 4  ;;  %v954_v0 = vrot.slane %v952_v52, 5  ;;  %v920_v2 = vshll.u32 %v830_v56, 16  ;;  %v838_v3 = vld [vmem:[#allocation2 + $0x34] sm:$0xf] }
  0x33   : > { %1260 = vrot.lane.b32.xlu0 %v889_v37, %s4766_s29  ;;  %v913_v60 = vsel %vm4922_vm11, %v908_v50, %v912_v34  ;;  %v982_v5 = vshll.u32 %v838_v3, 16  ;;  %v986_v6 = vshrl.u32 %v838_v3, 16  ;;  %669 = vst [vmem:[#allocation2 + $0x2c] sm:$0x1] %v668_v22  ;;  %v417_v47 = vor.u32 %v415_v42, %v414_v54  ;;  %v684_v8 = vld [vmem:[#allocation2 + $0x48] sm:$0xf] }
  0x34   : > { %1264 = vrot.lane.b32.xlu1 %v913_v60, %s4766_s29  ;;  %v965_v7 = vor.u32 %v964_v58, %v960_v55  ;;  %v955_v61 = vor.u32 %v954_v0, %v951_v63  ;;  %v922_v9 = vrot.slane %v920_v2, 5  ;;  %v839_v10 = vld [vmem:[#allocation2 + $0x38] sm:$0x1]  ;;  %v418_v11 = vrot.slane %v414_v54, 4  ;;  %v294_v23 = vld [vmem:[%s4868_s28 + $0x8] sm:$0xf] }
  0x35   : > { %v4957_v12 = vrot.slane %v420_v49, 7  ;;  %v4959_v13 = vrot.slane %v982_v5, 5  ;;  %v988_v14 = vrot.slane %v986_v6, 4  ;;  %v992_v15 = vshll.u32 %v839_v10, 16  ;;  %v295_v24 = vld [vmem:[%s4868_s28 + $0xc] sm:$0xf] }
  0x36   : > { %v4961_v16 = vrot.slane %v965_v7, 4  ;;  %v956_v18 = vrot.slane %v955_v61, 4  ;;  %v923_v19 = vsel %vm4922_vm11, %v918_v57, %v922_v9  ;;  %v423_v20 = vshll.u32 %v303_v40, 16  ;;  %v197_v35 = vld [vmem:[#allocation2 + $0x3c] sm:$0x1] }
  0x37   : > { %v685_v21 = vsel %vm4884_vm9, %v417_v47, %v684_v8  ;;  %v989_v25 = vor.u32 %v988_v14, %v4959_v13  ;;  %v994_v27 = vrot.slane %v992_v15, 5  ;;  %v189_v28 = vsel %vm4846_vm3, 0, %v188_v17  ;;  %v300_v40 = vld [vmem:[%s4868_s28 + $0x20] sm:$0xf]  ;;  %v301_v50 = vld [vmem:[%s4868_s28 + $0x24] sm:$0xf] }
  0x38   : > { %686 = vst [vmem:[#allocation2 + $0x48] sm:$0xf] %v685_v21  ;;  %v344_v29 = vshrl.u32 %v294_v23, 16  ;;  %v961_v30 = vsel %vm4922_vm11, %v956_v18, %v960_v55  ;;  %v425_v32 = vor.u32 %v423_v20, %v4957_v12  ;;  %v347_v33 = vshll.u32 %v294_v23, 16  ;;  %v259_v55 = vld [vmem:[#allocation2 + $0x5c] sm:$0x1] }
  0x39   : > { %190 = vst [vmem:[#allocation2 + $0x18] sm:$0x1] %v189_v28  ;;  %v352_v34 = vshrl.u32 %v295_v24, 16  ;;  %v990_v36 = vrot.slane %v989_v25, 4  ;;  %v355_v38 = vshll.u32 %v295_v24, 16  ;;  %v198_v39 = vsel %vm4846_vm3, 0, %v197_v35 }
  0x3a   : > { %v346_v37 = vrot.slane %v344_v29, 7  ;;  %v836_v41 = vld [vmem:[#allocation2 + $0x2c] sm:$0x1]  ;;  %v426_v42 = vsel %vm4894_vm10, %v418_v11, %v425_v32  ;;  %199 = vst [vmem:[#allocation2 + $0x3c] sm:$0x1] %v198_v39  ;;  %v395_v44 = vshrl.u32 %v300_v40, 16 }
  0x3b   : > { %1272 = vrot.lane.b32.xlu0 %v961_v30, %s4766_s29  ;;  %v4981_v43 = vrot.slane %v352_v34, 7  ;;  %v968_v45 = vshll.u32 %v836_v41, 16  ;;  %687 = vst.msk [vmem:[#allocation2 + $0x4c] sm:$0xf] %vm170_vm0, %v426_v42  ;;  %v398_v53 = vshll.u32 %v300_v40, 16  ;;  %v403_v54 = vshrl.u32 %v301_v50, 16 }
  0x3c   : > { %1266 = vrot.lane.b32.xlu1 %v923_v19, %s4766_s29  ;;  %v349_v46 = vor.u32 %v347_v33, %v346_v37  ;;  %v350_v49 = vrot.slane %v346_v37, 4  ;;  %v397_v52 = vrot.slane %v395_v44, 7  ;;  %v381_v56 = vshll.u32 %v4911_v48, 16  ;;  %v4991_v60 = vld [vmem:[%s4868_s28 + $0x30] sm:$0xf] }
  0x3d   : > { %v357_v51 = vor.u32 %v355_v38, %v4981_v43  ;;  %v970_v57 = vrot.slane %v968_v45, 5  ;;  %v406_v22 = vshll.u32 %v301_v50, 16  ;;  %v260_v58 = vsel %vm4861_vm6, 0, %v259_v55  ;;  %v305_v11 = vld [vmem:[%s4868_s28 + $0x34] sm:$0xf] }
  0x3e   : > { %v400_v2 = vor.u32 %v398_v53, %v397_v52  ;;  %v401_v3 = vrot.slane %v397_v52, 4  ;;  %v4995_v5 = vrot.slane %v403_v54, 7  ;;  %261 = vst [vmem:[#allocation2 + $0x5c] sm:$0x1] %v260_v58  ;;  %v995_v6 = vsel %vm4922_vm11, %v990_v36, %v994_v27  ;;  %v244_v15 = vld [vmem:[#allocation2 + $0x20] sm:$0x1] }
  0x3f   : > { %v843_v63 = vld [vmem:[#allocation2 + $0x48] sm:$0xf]  ;;  %v358_v0 = vsel %vm4894_vm10, %v350_v49, %v357_v51  ;;  %v971_v61 = vsel %vm4922_vm11, %v4961_v16, %v970_v57  ;;  %v429_v14 = vshrl.u32 %v4991_v60, 16  ;;  %v437_v24 = vshrl.u32 %v305_v11, 16  ;;  %v256_v25 = vld [vmem:[#allocation2 + $0x50] sm:$0x1] }
  0x40   : > { %v1021_v7 = vshrl.u32 %v843_v63, 16  ;;  %v1024_v47 = vshll.u32 %v843_v63, 16  ;;  %v656_v8 = vld [vmem:[#allocation2 + $0x18] sm:$0xf]  ;;  %659 = vst.msk [vmem:[#allocation2 + $0x1c] sm:$0xf] %vm170_vm0, %v358_v0  ;;  %v408_v10 = vor.u32 %v406_v22, %v4995_v5 }
  0x41   : > { %v657_v9 = vsel %vm4884_vm9, %v349_v46, %v656_v8  ;;  %v677_v19 = vld [vmem:[#allocation2 + $0x3c] sm:$0xf]  ;;  %v5013_v23 = vrot.slane %v429_v14, 7  ;;  %v440_v30 = vshll.u32 %v305_v11, 16  ;;  %v439_v33 = vrot.slane %v437_v24, 7 }
  0x42   : > { %v1023_v17 = vrot.slane %v1021_v7, 4  ;;  %v1026_v18 = vrot.slane %v1024_v47, 5  ;;  %658 = vst [vmem:[#allocation2 + $0x18] sm:$0xf] %v657_v9  ;;  %v844_v20 = vld [vmem:[#allocation2 + $0x4c] sm:$0xf]  ;;  %v409_v21 = vsel %vm4894_vm10, %v401_v3, %v408_v10  ;;  %v678_v16 = vsel %vm4884_vm9, %v400_v2, %v677_v19 }
  0x43   : > { %1278 = vrot.lane.b32.xlu0 %v995_v6, %s4766_s29  ;;  %v1030_v28 = vshll.u32 %v844_v20, 16  ;;  %v1034_v29 = vshrl.u32 %v844_v20, 16  ;;  %679 = vst [vmem:[#allocation2 + $0x3c] sm:$0xf] %v678_v16  ;;  %v435_v32 = vrot.slane %v5013_v23, 4  ;;  %v245_v34 = vsel %vm4861_vm6, 0, %v244_v15 }
  0x44   : > { %1274 = vrot.lane.b32.xlu1 %v971_v61, %s4766_s29  ;;  %v1027_v27 = vor.u32 %v1026_v18, %v1023_v17  ;;  %680 = vst.msk [vmem:[#allocation2 + $0x40] sm:$0xf] %vm170_vm0, %v409_v21  ;;  %v257_v35 = vsel %vm4861_vm6, 0, %v256_v25  ;;  %v442_v40 = vor.u32 %v440_v30, %v439_v33  ;;  %v444_v41 = vrot.slane %v439_v33, 4  ;;  %v209_v50 = vld [vmem:[#allocation2 + $0x6c] sm:$0x1] }
  0x45   : > { %v1032_v37 = vrot.slane %v1030_v28, 5  ;;  %v695_v38 = vld [vmem:[#allocation2 + $0x5c] sm:$0x1]  ;;  %246 = vst [vmem:[#allocation2 + $0x20] sm:$0x1] %v245_v34  ;;  %v359_v42 = vrot.slane %v4981_v43, 4 }
  0x46   : > { %v1028_v36 = vrot.slane %v1027_v27, 4  ;;  %258 = vst [vmem:[#allocation2 + $0x50] sm:$0x1] %v257_v35  ;;  %v1036_v49 = vrot.slane %v1034_v29, 4  ;;  %v443_v52 = vsel %vm4894_vm10, %v435_v32, %v442_v40  ;;  %v696_v53 = vsel %vm4846_vm3, %v444_v41, %v695_v38  ;;  %v308_v63 = vld [vmem:[%s4868_s28 + $0x40] sm:$0xf] }
  0x47   : > { %v832_v39 = vld [vmem:[#allocation2 + $0x1c] sm:$0xf]  ;;  %v427_v54 = vrot.slane %v4957_v12, 4  ;;  %v210_v43 = vsel %vm4846_vm3, 0, %v209_v50  ;;  %694 = vst.msk [vmem:[#allocation2 + $0x58] sm:$0xf] %vm170_vm0, %v443_v52 }
  0x48   : > { %v1033_v44 = vsel %vm4922_vm11, %v1028_v36, %v1032_v37  ;;  %v934_v45 = vshll.u32 %v832_v39, 16  ;;  %v938_v46 = vshrl.u32 %v832_v39, 16  ;;  %697 = vst [vmem:[#allocation2 + $0x5c] sm:$0x1] %v696_v53  ;;  %v1037_v2 = vor.u32 %v1036_v49, %v1032_v37  ;;  %v309_v3 = vld [vmem:[%s4868_s28 + $0x44] sm:$0xf] }
  0x49   : > { %v831_v51 = vld [vmem:[#allocation2 + $0x18] sm:$0xf]  ;;  %211 = vst [vmem:[#allocation2 + $0x6c] sm:$0x1] %v210_v43  ;;  %v463_v25 = vshrl.u32 %v308_v63, 16  ;;  %v466_v29 = vshll.u32 %v308_v63, 16 }
  0x4a   : > { %v925_v55 = vshrl.u32 %v831_v51, 16  ;;  %v928_v57 = vshll.u32 %v831_v51, 16  ;;  %v936_v22 = vrot.slane %v934_v45, 5  ;;  %v940_v58 = vrot.slane %v938_v46, 4  ;;  %v840_v0 = vld [vmem:[#allocation2 + $0x3c] sm:$0xf] }
  0x4b   : > { %1284 = vrot.lane.b32.xlu0 %v1033_v44, %s4766_s29  ;;  %v5036_v47 = vld [vmem:[#allocation2 + $0x40] sm:$0xf]  ;;  %v997_v12 = vshrl.u32 %v840_v0, 16  ;;  %v1000_v8 = vshll.u32 %v840_v0, 16  ;;  %v5040_v14 = vrot.slane %v1037_v2, 4  ;;  %v471_v30 = vshrl.u32 %v309_v3, 16 }
  0x4c   : > { %v927_v6 = vrot.slane %v925_v55, 4  ;;  %v930_v7 = vrot.slane %v928_v57, 5  ;;  %v1006_v61 = vshll.u32 %v5036_v47, 16  ;;  %v1010_v9 = vshrl.u32 %v5036_v47, 16  ;;  %v660_v10 = vld [vmem:[#allocation2 + $0x20] sm:$0x1] }
  0x4d   : > { %v941_v11 = vor.u32 %v940_v58, %v936_v22  ;;  %v999_v17 = vrot.slane %v997_v12, 4  ;;  %v1002_v18 = vrot.slane %v1000_v8, 5  ;;  %v661_v19 = vsel %vm4846_vm3, %v359_v42, %v660_v10  ;;  %v688_v20 = vld [vmem:[#allocation2 + $0x50] sm:$0x1]  ;;  %v206_v46 = vld [vmem:[#allocation2 + $0x60] sm:$0x1] }
  0x4e   : > { %v931_v15 = vor.u32 %v930_v7, %v927_v6  ;;  %v5044_v21 = vrot.slane %v1006_v61, 5  ;;  %662 = vst [vmem:[#allocation2 + $0x20] sm:$0x1] %v661_v19  ;;  %v689_v24 = vsel %vm4846_vm3, %v427_v54, %v688_v20  ;;  %v847_v32 = vld [vmem:[#allocation2 + $0x58] sm:$0xf]  ;;  %v465_v33 = vrot.slane %v463_v25, 7 }
  0x4f   : > { %v5046_v16 = vrot.slane %v941_v11, 4  ;;  %v1003_v28 = vor.u32 %v1002_v18, %v999_v17  ;;  %690 = vst [vmem:[#allocation2 + $0x50] sm:$0x1] %v689_v24  ;;  %v474_v34 = vshll.u32 %v309_v3, 16  ;;  %v194_v35 = vld [vmem:[#allocation2 + $0x30] sm:$0x1]  ;;  %v383_v7 = vor.u32 %v381_v56, %v4917_v59 }
  0x50   : > { %v932_v27 = vrot.slane %v931_v15, 4  ;;  %v848_v38 = vld [vmem:[#allocation2 + $0x5c] sm:$0x1]  ;;  %v1054_v39 = vshll.u32 %v847_v32, 16  ;;  %v1058_v40 = vshrl.u32 %v847_v32, 16  ;;  %v468_v42 = vor.u32 %v466_v29, %v465_v33 }
  0x51   : > { %v1004_v37 = vrot.slane %v1003_v28, 4  ;;  %v1064_v41 = vshll.u32 %v848_v38, 16  ;;  %v469_v44 = vrot.slane %v465_v33, 4  ;;  %v5053_v45 = vrot.slane %v471_v30, 7  ;;  %v306_v53 = vld [vmem:[%s4868_s28 + $0x38] sm:$0xf] }
  0x52   : > { %v937_v36 = vsel %vm4922_vm11, %v932_v27, %v936_v22  ;;  %v5058_v50 = vrot.slane %v1054_v39, 5  ;;  %v1060_v51 = vrot.slane %v1058_v40, 4  ;;  %v195_v52 = vsel %vm4846_vm3, 0, %v194_v35  ;;  %v705_v55 = vld [vmem:[#allocation2 + $0x6c] sm:$0xf] }
  0x53   : > { %1268 = vrot.lane.b32.xlu2 %v937_v36, %s4766_s29  ;;  %v1009_v49 = vsel %vm4922_vm11, %v1004_v37, %v5044_v21  ;;  %v1066_v54 = vrot.slane %v1064_v41, 5  ;;  %v476_v43 = vor.u32 %v474_v34, %v5053_v45  ;;  %196 = vst [vmem:[#allocation2 + $0x30] sm:$0x1] %v195_v52  ;;  %v207_v57 = vsel %vm4846_vm3, 0, %v206_v46  ;;  %v307_v0 = vld [vmem:[%s4868_s28 + $0x3c] sm:$0xf] }
  0x54   : > { %1280 = vrot.lane.b32.xlu1 %v1009_v49, %s4766_s29  ;;  %v1061_v22 = vor.u32 %v1060_v51, %v5058_v50  ;;  %v706_v63 = vsel %vm4884_vm9, %v468_v42, %v705_v55  ;;  %208 = vst [vmem:[#allocation2 + $0x60] sm:$0x1] %v207_v57  ;;  %v446_v12 = vshrl.u32 %v306_v53, 16  ;;  %v449_v10 = vshll.u32 %v306_v53, 16  ;;  %v268_v19 = vld [vmem:[#allocation2 + $0x80] sm:$0x1] }
  0x55   : > { %v833_v58 = vld [vmem:[#allocation2 + $0x20] sm:$0x1]  ;;  %v477_v6 = vsel %vm4894_vm10, %v469_v44, %v476_v43  ;;  %707 = vst [vmem:[#allocation2 + $0x6c] sm:$0xf] %v706_v63  ;;  %v454_v11 = vshrl.u32 %v307_v0, 16  ;;  %v457_v18 = vshll.u32 %v307_v0, 16 }
  0x56   : > { %v944_v2 = vshll.u32 %v833_v58, 16  ;;  %v845_v3 = vld [vmem:[#allocation2 + $0x50] sm:$0x1]  ;;  %v1062_v8 = vrot.slane %v1061_v22, 4  ;;  %708 = vst.msk [vmem:[#allocation2 + $0x70] sm:$0xf] %vm170_vm0, %v477_v6 }
  0x57   : > { %v1040_v61 = vshll.u32 %v845_v3, 16  ;;  %v448_v17 = vrot.slane %v446_v12, 7  ;;  %v1012_v20 = vrot.slane %v1010_v9, 4  ;;  %v5081_v56 = vrot.slane %v454_v11, 7  ;;  %v5086_v25 = vld [vmem:[%s4868_s28 + $0x48] sm:$0xf] }
  0x58   : > { %v946_v15 = vrot.slane %v944_v2, 5  ;;  %v1067_v48 = vsel %vm4922_vm11, %v1062_v8, %v1066_v54  ;;  %v269_v24 = vsel %vm4861_vm6, 0, %v268_v19  ;;  %v311_v9 = vld [vmem:[%s4868_s28 + $0x4c] sm:$0xf]  ;;  %v480_v29 = vshrl.u32 %v5086_v25, 16 }
  0x59   : > { %v1042_v59 = vrot.slane %v1040_v61, 5  ;;  %1290 = vrot.lane.b32.xlu0 %v1067_v48, %s4766_s29  ;;  %v451_v28 = vor.u32 %v449_v10, %v448_v17  ;;  %v452_v47 = vrot.slane %v448_v17, 4  ;;  %270 = vst [vmem:[#allocation2 + $0x80] sm:$0x1] %v269_v24  ;;  %v432_v30 = vshll.u32 %v4991_v60, 16 }
  0x5a   : > { %v947_v27 = vsel %vm4922_vm11, %v5046_v16, %v946_v15  ;;  %v670_v33 = vld [vmem:[#allocation2 + $0x30] sm:$0xf]  ;;  %v459_v34 = vor.u32 %v457_v18, %v5081_v56  ;;  %v488_v35 = vshrl.u32 %v311_v9, 16  ;;  %v253_v36 = vld [vmem:[#allocation2 + $0x44] sm:$0x1]  ;;  %v5103_v38 = vrot.slane %v480_v29, 7 }
  0x5b   : > { %1270 = vrot.lane.b32.xlu2 %v947_v27, %s4766_s29  ;;  %v1043_v32 = vsel %vm4922_vm11, %v5040_v14, %v1042_v59  ;;  %v671_v16 = vsel %vm4884_vm9, %v383_v7, %v670_v33  ;;  %v698_v37 = vld [vmem:[#allocation2 + $0x60] sm:$0xf]  ;;  %v491_v39 = vshll.u32 %v311_v9, 16  ;;  %v254_v40 = vsel %vm4861_vm6, 0, %v253_v36  ;;  %v265_v6 = vld [vmem:[#allocation2 + $0x74] sm:$0x1] }
  0x5c   : > { %1286 = vrot.lane.b32.xlu1 %v1043_v32, %s4766_s29  ;;  %v852_v41 = vld [vmem:[#allocation2 + $0x6c] sm:$0xf]  ;;  %672 = vst [vmem:[#allocation2 + $0x30] sm:$0xf] %v671_v16  ;;  %v460_v14 = vsel %vm4894_vm10, %v452_v47, %v459_v34  ;;  %v699_v42 = vsel %vm4884_vm9, %v451_v28, %v698_v37  ;;  %v490_v44 = vrot.slane %v488_v35, 7  ;;  %v1013_v46 = vor.u32 %v1012_v20, %v5044_v21 }
  0x5d   : > { %v853_v49 = vld [vmem:[#allocation2 + $0x70] sm:$0xf]  ;;  %v1093_v51 = vshrl.u32 %v852_v41, 16  ;;  %v1096_v52 = vshll.u32 %v852_v41, 16  ;;  %700 = vst [vmem:[#allocation2 + $0x60] sm:$0xf] %v699_v42 }
  0x5e   : > { %v1102_v53 = vshll.u32 %v853_v49, 16  ;;  %v1106_v54 = vshrl.u32 %v853_v49, 16  ;;  %701 = vst.msk [vmem:[#allocation2 + $0x64] sm:$0xf] %vm170_vm0, %v460_v14  ;;  %v486_v43 = vrot.slane %v5103_v38, 4  ;;  %v493_v55 = vor.u32 %v491_v39, %v490_v44 }
  0x5f   : > { %v1095_v57 = vrot.slane %v1093_v51, 4  ;;  %v1098_v22 = vrot.slane %v1096_v52, 5  ;;  %v495_v58 = vrot.slane %v490_v44, 4  ;;  %255 = vst [vmem:[#allocation2 + $0x44] sm:$0x1] %v254_v40  ;;  %v410_v63 = vrot.slane %v4995_v5, 4 }
  0x60   : > { %v1104_v0 = vrot.slane %v1102_v53, 5  ;;  %v494_v21 = vsel %vm4894_vm10, %v486_v43, %v493_v55  ;;  %v716_v2 = vld [vmem:[#allocation2 + $0x80] sm:$0x1]  ;;  %v5117_v3 = vrot.slane %v1013_v46, 4  ;;  %v266_v8 = vsel %vm4861_vm6, 0, %v265_v6 }
  0x61   : > { %v1099_v7 = vor.u32 %v1098_v22, %v1095_v57  ;;  %715 = vst.msk [vmem:[#allocation2 + $0x7c] sm:$0xf] %vm170_vm0, %v494_v21  ;;  %v717_v12 = vsel %vm4846_vm3, %v495_v58, %v716_v2  ;;  %v1108_v61 = vrot.slane %v1106_v54, 4  ;;  %v218_v10 = vld [vmem:[#allocation2 + $0x90] sm:$0x1]  ;;  %v478_v5 = vrot.slane %v5053_v45, 4 }
  0x62   : > { %718 = vst [vmem:[#allocation2 + $0x80] sm:$0x1] %v717_v12  ;;  %v219_v11 = vsel %vm4846_vm3, 0, %v218_v10  ;;  %v314_v15 = vld [vmem:[%s4868_s28 + $0x58] sm:$0xf]  ;;  %vm1696_vm1 = vcmask 93248  }
  0x63   : > { %v1100_v17 = vrot.slane %v1099_v7, 4  ;;  %v837_v18 = vld [vmem:[#allocation2 + $0x30] sm:$0xf]  ;;  %267 = vst [vmem:[#allocation2 + $0x74] sm:$0x1] %v266_v8  ;;  %v1109_v19 = vor.u32 %v1108_v61, %v1104_v0  ;;  %v514_v20 = vshrl.u32 %v314_v15, 16 }
  0x64   : > { %v973_v48 = vshrl.u32 %v837_v18, 16  ;;  %v976_v59 = vshll.u32 %v837_v18, 16  ;;  %v849_v24 = vld [vmem:[#allocation2 + $0x60] sm:$0xf]  ;;  %220 = vst [vmem:[#allocation2 + $0x90] sm:$0x1] %v219_v11 }
  0x65   : > { %v1105_v27 = vsel %vm4922_vm11, %v1100_v17, %v1104_v0  ;;  %v5130_v28 = vld [vmem:[#allocation2 + $0x64] sm:$0xf]  ;;  %v1069_v45 = vshrl.u32 %v849_v24, 16  ;;  %v1072_v47 = vshll.u32 %v849_v24, 16  ;;  %v5132_v9 = vrot.slane %v1109_v19, 4 }
  0x66   : > { %1296 = vrot.lane.b32.xlu0 %v1105_v27, %s4766_s29  ;;  %v975_v29 = vrot.slane %v973_v48, 4  ;;  %v978_v32 = vrot.slane %v976_v59, 5  ;;  %v1078_v33 = vshll.u32 %v5130_v28, 16  ;;  %v1082_v34 = vshrl.u32 %v5130_v28, 16  ;;  %v681_v35 = vld [vmem:[#allocation2 + $0x44] sm:$0x1] }
  0x67   : > { %v1071_v36 = vrot.slane %v1069_v45, 4  ;;  %v1074_v16 = vrot.slane %v1072_v47, 5  ;;  %v682_v37 = vsel %vm4846_vm3, %v410_v63, %v681_v35  ;;  %v315_v39 = vld [vmem:[%s4868_s28 + $0x5c] sm:$0xf]  ;;  %v516_v40 = vrot.slane %v514_v20, 7 }
  0x68   : > { %v979_v41 = vor.u32 %v978_v32, %v975_v29  ;;  %v5140_v14 = vrot.slane %v1078_v33, 5  ;;  %v856_v42 = vld [vmem:[#allocation2 + $0x7c] sm:$0xf]  ;;  %683 = vst [vmem:[#allocation2 + $0x44] sm:$0x1] %v682_v37  ;;  %v517_v44 = vshll.u32 %v314_v15, 16 }
  0x69   : > { %v1075_v46 = vor.u32 %v1074_v16, %v1071_v36  ;;  %v857_v49 = vld [vmem:[#allocation2 + $0x80] sm:$0x1]  ;;  %v1126_v51 = vshll.u32 %v856_v42, 16  ;;  %v1130_v52 = vshrl.u32 %v856_v42, 16  ;;  %v520_v53 = vrot.slane %v516_v40, 4 }
  0x6a   : > { %v980_v54 = vrot.slane %v979_v41, 4  ;;  %v1136_v43 = vshll.u32 %v857_v49, 16  ;;  %v709_v55 = vld [vmem:[#allocation2 + $0x74] sm:$0x1]  ;;  %v519_v57 = vor.u32 %v517_v44, %v516_v40  ;;  %v522_v22 = vshrl.u32 %v315_v39, 16 }
  0x6b   : > { %v1076_v58 = vrot.slane %v1075_v46, 4  ;;  %v5142_v63 = vrot.slane %v1126_v51, 5  ;;  %v1132_v0 = vrot.slane %v1130_v52, 4  ;;  %v710_v21 = vsel %vm4846_vm3, %v478_v5, %v709_v55  ;;  %v726_v2 = vld [vmem:[#allocation2 + $0x90] sm:$0xf] }
  0x6c   : > { %v985_v6 = vsel %vm4922_vm11, %v980_v54, %v4959_v13  ;;  %v1138_v7 = vrot.slane %v1136_v43, 5  ;;  %711 = vst [vmem:[#allocation2 + $0x74] sm:$0x1] %v710_v21  ;;  %v5149_v12 = vrot.slane %v522_v22, 7  ;;  %v525_v8 = vshll.u32 %v315_v39, 16 }
  0x6d   : > { %1276 = vrot.lane.b32.xlu2 %v985_v6, %s4766_s29  ;;  %v1081_v61 = vsel %vm4922_vm11, %v1076_v58, %v5140_v14  ;;  %v1133_v10 = vor.u32 %v1132_v0, %v5142_v63  ;;  %v727_v5 = vsel %vm4884_vm9, %v519_v57, %v726_v2  ;;  %v203_v11 = vld [vmem:[#allocation2 + $0x54] sm:$0x1]  ;;  %v215_v15 = vld [vmem:[#allocation2 + $0x84] sm:$0x1]  ;;  %v312_v13 = vld [vmem:[%s4868_s28 + $0x50] sm:$0xf]  ;;  %v434_v44 = vor.u32 %v432_v30, %v5013_v23 }
  0x6e   : > { %1292 = vrot.lane.b32.xlu1 %v1081_v61, %s4766_s29  ;;  %v527_v17 = vor.u32 %v525_v8, %v5149_v12  ;;  %728 = vst [vmem:[#allocation2 + $0x90] sm:$0xf] %v727_v5  ;;  %v204_v18 = vsel %vm4846_vm3, 0, %v203_v11  ;;  %v216_v19 = vsel %vm4846_vm3, 0, %v215_v15  ;;  %v313_v20 = vld [vmem:[%s4868_s28 + $0x54] sm:$0xf] }
  0x6f   : > { %v1134_v48 = vrot.slane %v1133_v10, 4  ;;  %v842_v59 = vld [vmem:[#allocation2 + $0x44] sm:$0x1]  ;;  %205 = vst [vmem:[#allocation2 + $0x54] sm:$0x1] %v204_v18  ;;  %v497_v24 = vshrl.u32 %v312_v13, 16 }
  0x70   : > { %v1016_v27 = vshll.u32 %v842_v59, 16  ;;  %v528_v45 = vsel %vm4894_vm10, %v520_v53, %v527_v17  ;;  %217 = vst [vmem:[#allocation2 + $0x84] sm:$0x1] %v216_v19  ;;  %v500_v47 = vshll.u32 %v312_v13, 16  ;;  %v505_v29 = vshrl.u32 %v313_v20, 16 }
  0x71   : > { %v1139_v32 = vsel %vm4922_vm11, %v1134_v48, %v1138_v7  ;;  %729 = vst.msk [vmem:[#allocation2 + $0x94] sm:$0xf] %vm170_vm0, %v528_v45  ;;  %v499_v33 = vrot.slane %v497_v24, 7  ;;  %v508_v35 = vshll.u32 %v313_v20, 16  ;;  %v277_v36 = vld [vmem:[#allocation2 + $0xa4] sm:$0x1] }
  0x72   : > { %1302 = vrot.lane.b32.xlu0 %v1139_v32, %s4766_s29  ;;  %v1018_v16 = vrot.slane %v1016_v27, 5  ;;  %v5172_v37 = vrot.slane %v505_v29, 7  ;;  %v278_v39 = vsel %vm4861_vm6, 0, %v277_v36  ;;  %v5177_v40 = vld [vmem:[%s4868_s28 + $0x60] sm:$0xf]  ;;  %v1084_v41 = vrot.slane %v1082_v34, 4 }
  0x73   : > { %v854_v42 = vld [vmem:[#allocation2 + $0x74] sm:$0x1]  ;;  %v503_v46 = vrot.slane %v499_v33, 4  ;;  %279 = vst [vmem:[#allocation2 + $0xa4] sm:$0x1] %v278_v39  ;;  %v531_v49 = vshrl.u32 %v5177_v40, 16  ;;  %v502_v53 = vor.u32 %v500_v47, %v499_v33 }
  0x74   : > { %v1019_v51 = vsel %vm4922_vm11, %v5117_v3, %v1018_v16  ;;  %v1112_v52 = vshll.u32 %v854_v42, 16  ;;  %v510_v54 = vor.u32 %v508_v35, %v5172_v37  ;;  %v317_v43 = vld [vmem:[%s4868_s28 + $0x64] sm:$0xf]  ;;  %v262_v28 = vld [vmem:[#allocation2 + $0x68] sm:$0x1]  ;;  %v1085_v8 = vor.u32 %v1084_v41, %v5140_v14 }
  0x75   : > { %1282 = vrot.lane.b32.xlu2 %v1019_v51, %s4766_s29  ;;  %v861_v34 = vld [vmem:[#allocation2 + $0x90] sm:$0xf]  ;;  %v5191_v55 = vrot.slane %v531_v49, 7  ;;  %v539_v60 = vshrl.u32 %v317_v43, 16  ;;  %v542_v23 = vshll.u32 %v317_v43, 16  ;;  %v263_v30 = vsel %vm4861_vm6, 0, %v262_v28 }
  0x76   : > { %v1114_v57 = vrot.slane %v1112_v52, 5  ;;  %v1165_v22 = vshrl.u32 %v861_v34, 16  ;;  %v1168_v58 = vshll.u32 %v861_v34, 16  ;;  %v691_v3 = vld [vmem:[#allocation2 + $0x54] sm:$0xf]  ;;  %v511_v0 = vsel %vm4894_vm10, %v503_v46, %v510_v54 }
  0x77   : > { %v692_v21 = vsel %vm4884_vm9, %v434_v44, %v691_v3  ;;  %v719_v2 = vld [vmem:[#allocation2 + $0x84] sm:$0xf]  ;;  %722 = vst.msk [vmem:[#allocation2 + $0x88] sm:$0xf] %vm170_vm0, %v511_v0  ;;  %v537_v6 = vrot.slane %v5191_v55, 4  ;;  %v541_v7 = vrot.slane %v539_v60, 7 }
  0x78   : > { %v1115_v61 = vsel %vm4922_vm11, %v5132_v9, %v1114_v57  ;;  %v862_v10 = vld [vmem:[#allocation2 + $0x94] sm:$0xf]  ;;  %v1167_v5 = vrot.slane %v1165_v22, 4  ;;  %v1170_v11 = vrot.slane %v1168_v58, 5  ;;  %693 = vst [vmem:[#allocation2 + $0x54] sm:$0xf] %v692_v21  ;;  %v720_v15 = vsel %vm4884_vm9, %v502_v53, %v719_v2 }
  0x79   : > { %1298 = vrot.lane.b32.xlu1 %v1115_v61, %s4766_s29  ;;  %v1174_v13 = vshll.u32 %v862_v10, 16  ;;  %721 = vst [vmem:[#allocation2 + $0x84] sm:$0xf] %v720_v15  ;;  %v544_v17 = vor.u32 %v542_v23, %v541_v7  ;;  %v546_v18 = vrot.slane %v541_v7, 4  ;;  %v483_v19 = vshll.u32 %v5086_v25, 16 }
  0x7a   : > { %v1171_v14 = vor.u32 %v1170_v11, %v1167_v5  ;;  %v737_v20 = vld [vmem:[#allocation2 + $0xa4] sm:$0x1]  ;;  %264 = vst [vmem:[#allocation2 + $0x68] sm:$0x1] %v263_v30  ;;  %v461_v9 = vrot.slane %v5081_v56, 4  ;;  %v1178_v59 = vshrl.u32 %v862_v10, 16 }
  0x7b   : > { %v5210_v48 = vrot.slane %v1174_v13, 5  ;;  %v545_v24 = vsel %vm4894_vm10, %v537_v6, %v544_v17  ;;  %v738_v27 = vsel %vm4846_vm3, %v546_v18, %v737_v20  ;;  %v274_v45 = vld [vmem:[#allocation2 + $0x98] sm:$0x1]  ;;  %v227_v47 = vld [vmem:[#allocation2 + $0xb4] sm:$0x1]  ;;  %v5217_v32 = vrot.slane %v1085_v8, 4 }
  0x7c   : > { %v1172_v29 = vrot.slane %v1171_v14, 4  ;;  %736 = vst.msk [vmem:[#allocation2 + $0xa0] sm:$0xf] %vm170_vm0, %v545_v24  ;;  %v275_v33 = vsel %vm4861_vm6, 0, %v274_v45  ;;  %v228_v56 = vsel %vm4846_vm3, 0, %v227_v47  ;;  %v529_v41 = vrot.slane %v5149_v12, 4 }
  0x7d   : > { %739 = vst [vmem:[#allocation2 + $0xa4] sm:$0x1] %v738_v27  ;;  %v320_v35 = vld [vmem:[%s4868_s28 + $0x70] sm:$0xf]  ;;  %v321_v36 = vld [vmem:[%s4868_s28 + $0x74] sm:$0xf] }
  0x7e   : > { %v1177_v16 = vsel %vm4922_vm11, %v1172_v29, %v5210_v48  ;;  %v5228_v39 = vld [vmem:[#allocation2 + $0x88] sm:$0xf]  ;;  %276 = vst [vmem:[#allocation2 + $0x98] sm:$0x1] %v275_v33  ;;  %v565_v42 = vshrl.u32 %v320_v35, 16  ;;  %v5233_v49 = vrot.slane %v1178_v59, 4 }
  0x7f   : > { %1308 = vrot.lane.b32.xlu0 %v1177_v16, %s4766_s29  ;;  %v846_v44 = vld [vmem:[#allocation2 + $0x54] sm:$0xf]  ;;  %v1150_v46 = vshll.u32 %v5228_v39, 16  ;;  %v568_v51 = vshll.u32 %v320_v35, 16  ;;  %v573_v52 = vshrl.u32 %v321_v36, 16  ;;  %v576_v17 = vshll.u32 %v321_v36, 16 }
  0x80   : > { %v1045_v53 = vshrl.u32 %v846_v44, 16  ;;  %v1048_v54 = vshll.u32 %v846_v44, 16  ;;  %v858_v43 = vld [vmem:[#allocation2 + $0x84] sm:$0xf]  ;;  %229 = vst [vmem:[#allocation2 + $0xb4] sm:$0x1] %v228_v56 }
  0x81   : > { %v1141_v28 = vshrl.u32 %v858_v43, 16  ;;  %v1144_v34 = vshll.u32 %v858_v43, 16  ;;  %v5235_v60 = vrot.slane %v1150_v46, 5  ;;  %v702_v23 = vld [vmem:[#allocation2 + $0x68] sm:$0x1]  ;;  %v567_v12 = vrot.slane %v565_v42, 7 }
  0x82   : > { %v1047_v30 = vrot.slane %v1045_v53, 4  ;;  %v1050_v57 = vrot.slane %v1048_v54, 5  ;;  %v703_v22 = vsel %vm4846_vm3, %v461_v9, %v702_v23  ;;  %v5239_v58 = vrot.slane %v573_v52, 7  ;;  %v212_v3 = vld [vmem:[#allocation2 + $0x78] sm:$0x1] }
  0x83   : > { %v1143_v0 = vrot.slane %v1141_v28, 4  ;;  %v1146_v21 = vrot.slane %v1144_v34, 5  ;;  %v865_v2 = vld [vmem:[#allocation2 + $0xa0] sm:$0xf]  ;;  %704 = vst [vmem:[#allocation2 + $0x68] sm:$0x1] %v703_v22  ;;  %v570_v6 = vor.u32 %v568_v51, %v567_v12  ;;  %v1181_v52 = vor.u32 %v5233_v49, %v5210_v48 }
  0x84   : > { %v1051_v7 = vor.u32 %v1050_v57, %v1047_v30  ;;  %v866_v8 = vld [vmem:[#allocation2 + $0xa4] sm:$0x1]  ;;  %v1198_v61 = vshll.u32 %v865_v2, 16  ;;  %v1202_v10 = vshrl.u32 %v865_v2, 16  ;;  %v571_v5 = vrot.slane %v567_v12, 4 }
  0x85   : > { %v1147_v11 = vor.u32 %v1146_v21, %v1143_v0  ;;  %v1208_v15 = vshll.u32 %v866_v8, 16  ;;  %v730_v13 = vld [vmem:[#allocation2 + $0x98] sm:$0x1]  ;;  %v213_v18 = vsel %vm4846_vm3, 0, %v212_v3  ;;  %v578_v45 = vor.u32 %v576_v17, %v5239_v58  ;;  %v224_v35 = vld [vmem:[#allocation2 + $0xa8] sm:$0x1] }
  0x86   : > { %v1052_v14 = vrot.slane %v1051_v7, 4  ;;  %v5243_v20 = vrot.slane %v1198_v61, 5  ;;  %v1204_v9 = vrot.slane %v1202_v10, 4  ;;  %v731_v59 = vsel %vm4846_vm3, %v529_v41, %v730_v13  ;;  %214 = vst [vmem:[#allocation2 + $0x78] sm:$0x1] %v213_v18 }
  0x87   : > { %v1148_v24 = vrot.slane %v1147_v11, 4  ;;  %v1210_v27 = vrot.slane %v1208_v15, 5  ;;  %732 = vst [vmem:[#allocation2 + $0x98] sm:$0x1] %v731_v59  ;;  %v747_v47 = vld [vmem:[#allocation2 + $0xb4] sm:$0xf]  ;;  %v579_v42 = vsel %vm4894_vm10, %v571_v5, %v578_v45  ;;  %v485_v53 = vor.u32 %v483_v19, %v5103_v38 }
  0x88   : > { %v1057_v29 = vsel %vm4922_vm11, %v1052_v14, %v5058_v50  ;;  %v1205_v33 = vor.u32 %v1204_v9, %v5243_v20  ;;  %v748_v56 = vsel %vm4884_vm9, %v570_v6, %v747_v47  ;;  %v318_v36 = vld [vmem:[%s4868_s28 + $0x68] sm:$0xf]  ;;  %v319_v16 = vld [vmem:[%s4868_s28 + $0x6c] sm:$0xf]  ;;  %v225_v50 = vsel %vm4846_vm3, 0, %v224_v35 }
  0x89   : > { %1288 = vrot.lane.b32.xlu2 %v1057_v29, %s4766_s29  ;;  %v1153_v41 = vsel %vm4922_vm11, %v1148_v24, %v5235_v60  ;;  %749 = vst [vmem:[#allocation2 + $0xb4] sm:$0xf] %v748_v56  ;;  %v548_v44 = vshrl.u32 %v318_v36, 16  ;;  %v551_v54 = vshll.u32 %v318_v36, 16  ;;  %v556_v34 = vshrl.u32 %v319_v16, 16 }
  0x8a   : > { %1304 = vrot.lane.b32.xlu1 %v1153_v41, %s4766_s29  ;;  %v1206_v46 = vrot.slane %v1205_v33, 4  ;;  %v851_v51 = vld [vmem:[#allocation2 + $0x68] sm:$0x1]  ;;  %750 = vst.msk [vmem:[#allocation2 + $0xb8] sm:$0xf] %vm170_vm0, %v579_v42  ;;  %v559_v23 = vshll.u32 %v319_v16, 16 }
  0x8b   : > { %v1088_v43 = vshll.u32 %v851_v51, 16  ;;  %226 = vst [vmem:[#allocation2 + $0xa8] sm:$0x1] %v225_v50  ;;  %v550_v28 = vrot.slane %v548_v44, 7  ;;  %v5274_v49 = vrot.slane %v556_v34, 7  ;;  %v1182_v3 = vrot.slane %v1181_v52, 4 }
  0x8c   : > { %v1211_v12 = vsel %vm4922_vm11, %v1206_v46, %v1210_v27  ;;  %v271_v19 = vld [vmem:[#allocation2 + $0x8c] sm:$0x1]  ;;  %v283_v8 = vld [vmem:[#allocation2 + $0xbc] sm:$0x1]  ;;  %v5293_v24 = vld [vmem:[#allocation2 + $0x4] sm:$0xf] }
  0x8d   : > { %1314 = vrot.lane.b32.xlu0 %v1211_v12, %s4766_s29  ;;  %v1090_v30 = vrot.slane %v1088_v43, 5  ;;  %v712_v57 = vld [vmem:[#allocation2 + $0x78] sm:$0xf]  ;;  %v554_v48 = vrot.slane %v550_v28, 4  ;;  %v553_v38 = vor.u32 %v551_v54, %v550_v28  ;;  %v561_v2 = vor.u32 %v559_v23, %v5274_v49  ;;  %v221_v56 = vld [vmem:[#allocation2 + $0x9c] sm:$0x1] }
  0x8e   : > { %v863_v22 = vld [vmem:[#allocation2 + $0x98] sm:$0x1]  ;;  %v713_v25 = vsel %vm4884_vm9, %v485_v53, %v712_v57  ;;  %v272_v6 = vsel %vm4861_vm6, 0, %v271_v19  ;;  %v512_v27 = vrot.slane %v5172_v37, 4  ;;  %v1490_v33 = vrot.slane %v5293_v24, 5 }
  0x8f   : > { %v1091_v0 = vsel %vm4922_vm11, %v5217_v32, %v1090_v30  ;;  %v1184_v21 = vshll.u32 %v863_v22, 16  ;;  %714 = vst [vmem:[#allocation2 + $0x78] sm:$0xf] %v713_v25  ;;  %v562_v15 = vsel %vm4894_vm10, %v554_v48, %v561_v2  ;;  %v1154_v32 = vshrl.u32 %v5228_v39, 16  ;;  %v1391_v37 = vld [vmem:[#allocation2 + $0x8] sm:$0x1] }
  0x90   : > { %v870_v7 = vld [vmem:[#allocation2 + $0xb4] sm:$0xf]  ;;  %273 = vst [vmem:[#allocation2 + $0x8c] sm:$0x1] %v272_v6  ;;  %v284_v39 = vsel %vm4861_vm6, 0, %v283_v8  ;;  %v580_v46 = vrot.slane %v5239_v58, 4 }
  0x91   : > { %1294 = vrot.lane.b32.xlu2 %v1091_v0, %s4766_s29  ;;  %v1186_v61 = vrot.slane %v1184_v21, 5  ;;  %v871_v10 = vld [vmem:[#allocation2 + $0xb8] sm:$0xf]  ;;  %v1237_v5 = vshrl.u32 %v870_v7, 16  ;;  %v1240_v11 = vshll.u32 %v870_v7, 16  ;;  %v1156_v42 = vrot.slane %v1154_v32, 4 }
  0x92   : > { %v1246_v13 = vshll.u32 %v871_v10, 16  ;;  %v740_v17 = vld [vmem:[#allocation2 + $0xa8] sm:$0xf]  ;;  %743 = vst.msk [vmem:[#allocation2 + $0xac] sm:$0xf] %vm170_vm0, %v562_v15  ;;  %v1250_v50 = vshrl.u32 %v871_v10, 16 }
  0x93   : > { %v1187_v18 = vsel %vm4922_vm11, %v1182_v3, %v1186_v61  ;;  %v1239_v14 = vrot.slane %v1237_v5, 4  ;;  %v1242_v9 = vrot.slane %v1240_v11, 5  ;;  %v741_v59 = vsel %vm4884_vm9, %v553_v38, %v740_v17  ;;  %285 = vst [vmem:[#allocation2 + $0xbc] sm:$0x1] %v284_v39  ;;  %v280_v0 = vld [vmem:[#allocation2 + $0xb0] sm:$0x1] }
  0x94   : > { %1310 = vrot.lane.b32.xlu1 %v1187_v18, %s4766_s29  ;;  %742 = vst [vmem:[#allocation2 + $0xa8] sm:$0xf] %v741_v59  ;;  %v5299_v47 = vrot.slane %v1246_v13, 5  ;;  %v222_v51 = vsel %vm4846_vm3, 0, %v221_v56  ;;  %v534_v28 = vshll.u32 %v5177_v40, 16  ;;  %v1492_v58 = vrot.slane %v1490_v33, 4 }
  0x95   : > { %v1243_v45 = vor.u32 %v1242_v9, %v1239_v14  ;;  %223 = vst [vmem:[#allocation2 + $0x9c] sm:$0x1] %v222_v51  ;;  %v1493_v12 = vrot.slane %v1391_v37, 5  ;;  %v1157_v25 = vor.u32 %v1156_v42, %v5235_v60  ;;  %v1252_v19 = vrot.slane %v1250_v50, 4  ;;  %v1395_v61 = vld [vmem:[#allocation2 + $0x18] sm:$0xe] }
  0x96   : > { %v855_v29 = vld [vmem:[#allocation2 + $0x78] sm:$0xf]  ;;  %v536_v6 = vor.u32 %v534_v28, %v5191_v55  ;;  %v281_v7 = vsel %vm4861_vm6, 0, %v280_v0  ;;  %v5337_v15 = vld [vmem:[#allocation2 + $0x1c] sm:$0xf]  ;;  %v4460_v9 = vrot.slane %v1395_v61, 9 }
  0x97   : > { %v1244_v35 = vrot.slane %v1243_v45, 4  ;;  %v1117_v36 = vshrl.u32 %v855_v29, 16  ;;  %v1120_v16 = vshll.u32 %v855_v29, 16  ;;  %v723_v41 = vld [vmem:[#allocation2 + $0x8c] sm:$0x1]  ;;  %v1494_v60 = vsel %vm5319_vm14, %v1492_v58, %v1493_v12 }
  0x98   : > { %v724_v44 = vsel %vm4846_vm3, %v512_v27, %v723_v41  ;;  %282 = vst [vmem:[#allocation2 + $0xb0] sm:$0x1] %v281_v7  ;;  %v1158_v55 = vrot.slane %v1157_v25, 4  ;;  %v1253_v13 = vor.u32 %v1252_v19, %v5299_v47  ;;  %v1504_v59 = vrot.slane %v5337_v15, 5  ;;  %v5348_v45 = vld [vmem:[#allocation2 + $0x28] sm:$0xf] }
  0x99   : > { %v1249_v52 = vsel %vm4922_vm11, %v1244_v35, %v5299_v47  ;;  %v1119_v53 = vrot.slane %v1117_v36, 4  ;;  %v1122_v54 = vrot.slane %v1120_v16, 5  ;;  %v5310_v43 = vld [vmem:[#allocation2 + $0xac] sm:$0xf]  ;;  %725 = vst [vmem:[#allocation2 + $0x8c] sm:$0x1] %v724_v44 }
  0x9a   : > { %1320 = vrot.lane.b32.xlu0 %v1249_v52, %s4766_s29  ;;  %v1222_v48 = vshll.u32 %v5310_v43, 16  ;;  %v751_v40 = vld [vmem:[#allocation2 + $0xbc] sm:$0x1]  ;;  %v563_v27 = vrot.slane %v5274_v49, 4  ;;  %v1254_v56 = vrot.slane %v1253_v13, 4  ;;  %v1505_v49 = vsel %vm5319_vm14, %v4460_v9, %v1504_v59 }
  0x9b   : > { %v1123_v34 = vor.u32 %v1122_v54, %v1119_v53  ;;  %v867_v23 = vld [vmem:[#allocation2 + $0xa8] sm:$0xf]  ;;  %v752_v38 = vsel %vm4846_vm3, %v580_v46, %v751_v40  ;;  %v762_v36 = vld [vmem:[#allocation2 + $0x4] sm:$0xf]  ;;  %v1511_v42 = vrot.slane %v5348_v45, 5  ;;  %v1226_v37 = vshrl.u32 %v5310_v43, 16 }
  0x9c   : > { %v1213_v30 = vshrl.u32 %v867_v23, 16  ;;  %v1216_v57 = vshll.u32 %v867_v23, 16  ;;  %753 = vst [vmem:[#allocation2 + $0xbc] sm:$0x1] %v752_v38  ;;  %v5335_v5 = vrot.slane %v1222_v48, 5  ;;  %vm2450_vm2 = vcmask 158848  }
  0x9d   : > { %v1124_v3 = vrot.slane %v1123_v34, 4  ;;  %v733_v17 = vld [vmem:[#allocation2 + $0x9c] sm:$0xf]  ;;  %v1263_v35 = vpop.permute.xlu0 %1262  ;;  %794 = vst.msk [vmem:[#allocation3 + $0x4] sm:$0xf] %vm170_vm0, %v762_v36  ;;  %v1513_v23 = vrot.slane %v1511_v42, 4 }
  0x9e   : > { %v1215_v21 = vrot.slane %v1213_v30, 4  ;;  %v1218_v2 = vrot.slane %v1216_v57, 5  ;;  %1358 = vst.msk [vmem:[#allocation3 + $0x4] sm:$0xf] %vm1356_vm15, %v1263_v35  ;;  %v1400_v46 = vld [vmem:[#allocation2 + $0x2c] sm:$0x1] }
  0x9f   : > { %v1129_v8 = vsel %vm4922_vm11, %v1124_v3, %v5142_v63  ;;  %v734_v63 = vsel %vm4884_vm9, %v536_v6, %v733_v17  ;;  %v744_v41 = vld [vmem:[#allocation2 + $0xb0] sm:$0x1]  ;;  %v1392_v53 = vld [vmem:[#allocation2 + $0xc] sm:$0xe]  ;;  %v1514_v43 = vrot.slane %v1400_v46, 5  ;;  %v1228_v58 = vrot.slane %v1226_v37, 4 }
  0xa0   : > { %1300 = vrot.lane.b32.xlu2 %v1129_v8, %s4766_s29  ;;  %v1219_v10 = vor.u32 %v1218_v2, %v1215_v21  ;;  %v860_v11 = vld [vmem:[#allocation2 + $0x8c] sm:$0x1]  ;;  %735 = vst [vmem:[#allocation2 + $0x9c] sm:$0xf] %v734_v63  ;;  %v745_v50 = vsel %vm4846_vm3, %v563_v27, %v744_v41  ;;  %v5367_v34 = vld [vmem:[#allocation2 + $0x10] sm:$0xf] }
  0xa1   : > { %v1160_v32 = vshll.u32 %v860_v11, 16  ;;  %746 = vst [vmem:[#allocation2 + $0xb0] sm:$0x1] %v745_v50  ;;  %v761_v48 = vld [vmem:[#allocation2] sm:$0xf]  ;;  %v4459_v25 = vrot.slane %v1392_v53, 9  ;;  %v1515_v21 = vsel %vm5319_vm14, %v1513_v23, %v1514_v43  ;;  %v1229_v61 = vor.u32 %v1228_v58, %v5335_v5 }
  0xa2   : > { %v1220_v18 = vrot.slane %v1219_v10, 4  ;;  %1602 = vrot.lane.b32.xlu0 %v1494_v60, %s4767_s30  ;;  %v765_v3 = vld [vmem:[#allocation2 + $0x18] sm:$0xf]  ;;  %v1497_v38 = vrot.slane %v5367_v34, 5  ;;  %793 = vst.msk [vmem:[#allocation3] sm:$0xf] %vm170_vm0, %v761_v48 }
  0xa3   : > { %v1162_v14 = vrot.slane %v1160_v32, 5  ;;  %v872_v29 = vld [vmem:[#allocation2 + $0xbc] sm:$0x1]  ;;  %v763_v6 = vld [vmem:[#allocation2 + $0xc] sm:$0xf]  ;;  %vm2787_vm4 = vcmask 191648  }
  0xa4   : > { %v1225_v39 = vsel %vm4922_vm11, %v1220_v18, %v5335_v5  ;;  %v1256_v16 = vshll.u32 %v872_v29, 16  ;;  %v1404_v7 = vld [vmem:[#allocation2 + $0x3c] sm:$0xe]  ;;  %v5377_v8 = vld [vmem:[#allocation2 + $0x40] sm:$0xf]  ;;  %v1498_v11 = vsel %vm5319_vm14, %v4459_v25, %v1497_v38  ;;  %v1230_v18 = vrot.slane %v1229_v61, 4 }
  0xa5   : > { %1316 = vrot.lane.b32.xlu1 %v1225_v39, %s4766_s29  ;;  %v1163_v47 = vsel %vm4922_vm11, %v1158_v55, %v1162_v14  ;;  %v1261_v57 = vpop.permute.xlu0 %1260  ;;  %797 = vst.msk [vmem:[#allocation3 + $0x10] sm:$0xf] %vm170_vm0, %v765_v3  ;;  %v1397_v32 = vld [vmem:[#allocation2 + $0x20] sm:$0x1]  ;;  %v4463_v13 = vrot.slane %v1404_v7, 9  ;;  %v1525_v5 = vrot.slane %v5377_v8, 5 }
  0xa6   : > { %v1258_v44 = vrot.slane %v1256_v16, 5  ;;  %v1265_v19 = vpop.permute.xlu1 %1264  ;;  %1357 = vst.msk [vmem:[#allocation3] sm:$0xf] %vm1356_vm15, %v1261_v57  ;;  %v5394_v17 = vld [vmem:[#allocation2 + $0x4c] sm:$0xf]  ;;  %v1507_v39 = vrot.slane %v1397_v32, 5 }
  0xa7   : > { %v864_v52 = vld [vmem:[#allocation2 + $0x9c] sm:$0xf]  ;;  %795 = vst.msk [vmem:[#allocation3 + $0x8] sm:$0xf] %vm170_vm0, %v763_v6  ;;  %v767_v9 = vld [vmem:[#allocation2 + $0x24] sm:$0xf] }
  0xa8   : > { %1306 = vrot.lane.b32.xlu2 %v1163_v47, %s4766_s29  ;;  %v1259_v51 = vsel %vm4922_vm11, %v1254_v56, %v1258_v44  ;;  %v1189_v54 = vshrl.u32 %v864_v52, 16  ;;  %v1192_v28 = vshll.u32 %v864_v52, 16  ;;  %v869_v2 = vld [vmem:[#allocation2 + $0xb0] sm:$0x1]  ;;  %1359 = vst.msk [vmem:[#allocation3 + $0x8] sm:$0xf] %vm1356_vm15, %v1265_v19  ;;  %v1526_v56 = vsel %vm5319_vm14, %v4463_v13, %v1525_v5 }
  0xa9   : > { %v1232_v10 = vshll.u32 %v869_v2, 16  ;;  %v766_v27 = vld [vmem:[#allocation2 + $0x1c] sm:$0xf]  ;;  %799 = vst.msk [vmem:[#allocation3 + $0x18] sm:$0xf] %vm170_vm0, %v767_v9  ;;  %v1532_v35 = vrot.slane %v5394_v17, 5 }
  0xaa   : > { %1608 = vrot.lane.b32.xlu0 %v1505_v49, %s4767_s30  ;;  %v1191_v12 = vrot.slane %v1189_v54, 4  ;;  %v1194_v30 = vrot.slane %v1192_v28, 5  ;;  %v764_v36 = vld [vmem:[#allocation2 + $0x10] sm:$0xf]  ;;  %798 = vst.msk [vmem:[#allocation3 + $0x14] sm:$0xf] %vm170_vm0, %v766_v27 }
  0xab   : > { %v1234_v63 = vrot.slane %v1232_v10, 5  ;;  %v1409_v16 = vld [vmem:[#allocation2 + $0x50] sm:$0x1]  ;;  %v1389_v41 = vld [vmem:[#allocation2] sm:$0xe]  ;;  %v1534_v37 = vrot.slane %v1532_v35, 4 }
  0xac   : > { %v1195_v0 = vor.u32 %v1194_v30, %v1191_v12  ;;  %v1401_v49 = vld [vmem:[#allocation2 + $0x30] sm:$0xe]  ;;  %796 = vst.msk [vmem:[#allocation3 + $0xc] sm:$0xf] %vm170_vm0, %v764_v36  ;;  %v5414_v50 = vld [vmem:[#allocation2 + $0x34] sm:$0xf] }
  0xad   : > { %1322 = vrot.lane.b32.xlu1 %v1259_v51, %s4766_s29  ;;  %v1269_v40 = vpop.permute.xlu2 %1268  ;;  %v1273_v14 = vpop.permute.xlu0 %1272  ;;  %v1235_v15 = vsel %vm4922_vm11, %v1230_v18, %v1234_v63  ;;  %v1535_v44 = vrot.slane %v1409_v16, 5  ;;  %v4458_v46 = vrot.slane %v1389_v41, 9  ;;  %v770_v51 = vld [vmem:[#allocation2 + $0x34] sm:$0xf]  ;;  %v769_v53 = vld [vmem:[#allocation2 + $0x30] sm:$0xf] }
  0xae   : > { %v1196_v60 = vrot.slane %v1195_v0, 4  ;;  %1361 = vst.msk [vmem:[#allocation3 + $0x10] sm:$0xf] %vm1356_vm15, %v1269_v40  ;;  %v1267_v29 = vpop.permute.xlu1 %1266  ;;  %v4462_v54 = vrot.slane %v1401_v49, 9  ;;  %v1518_v28 = vrot.slane %v5414_v50, 5  ;;  %v1527_v6 = vrot.slane %v1525_v5, 4 }
  0xaf   : > { %1363 = vst.msk [vmem:[#allocation3 + $0x18] sm:$0xf] %vm1356_vm15, %v1273_v14  ;;  %v768_v23 = vld [vmem:[#allocation2 + $0x28] sm:$0xf]  ;;  %v1536_v58 = vsel %vm5319_vm14, %v1534_v37, %v1535_v44  ;;  %v1413_v12 = vld [vmem:[#allocation2 + $0x60] sm:$0xe]  ;;  %v1491_v57 = vsel %vm5319_vm14, %v4458_v46, %v1490_v33 }
  0xb0   : > { %v1201_v55 = vsel %vm4922_vm11, %v1196_v60, %v5243_v20  ;;  %v1506_v20 = vrot.slane %v1504_v59, 4  ;;  %1360 = vst.msk [vmem:[#allocation3 + $0xc] sm:$0xf] %vm1356_vm15, %v1267_v29  ;;  %v5426_v30 = vld [vmem:[#allocation2 + $0x64] sm:$0xf]  ;;  %v1519_v48 = vsel %vm5319_vm14, %v4462_v54, %v1518_v28  ;;  %v4466_v25 = vrot.slane %v1413_v12, 9 }
  0xb1   : > { %1312 = vrot.lane.b32.xlu2 %v1201_v55, %s4766_s29  ;;  %802 = vst.msk [vmem:[#allocation3 + $0x24] sm:$0xf] %vm170_vm0, %v770_v51  ;;  %v1394_v40 = vld [vmem:[#allocation2 + $0x14] sm:$0x1]  ;;  %v1406_v3 = vld [vmem:[#allocation2 + $0x44] sm:$0x1] }
  0xb2   : > { %1614 = vrot.lane.b32.xlu0 %v1515_v21, %s4767_s30  ;;  %v1508_v59 = vsel %vm5319_vm14, %v1506_v20, %v1507_v39  ;;  %801 = vst.msk [vmem:[#allocation3 + $0x20] sm:$0xf] %vm170_vm0, %v769_v53  ;;  %v1546_v19 = vrot.slane %v5426_v30, 5  ;;  %v5442_v24 = vld [vmem:[#allocation2 + $0x70] sm:$0xf]  ;;  %v1499_v33 = vrot.slane %v1497_v38, 4 }
  0xb3   : > { %800 = vst.msk [vmem:[#allocation3 + $0x1c] sm:$0xf] %vm170_vm0, %v768_v23  ;;  %v1500_v0 = vrot.slane %v1394_v40, 5  ;;  %v773_v21 = vld [vmem:[#allocation2 + $0x48] sm:$0xf]  ;;  %v1528_v7 = vrot.slane %v1406_v3, 5 }
  0xb4   : > { %805 = vst.msk [vmem:[#allocation3 + $0x30] sm:$0xf] %vm170_vm0, %v773_v21  ;;  %v772_v60 = vld [vmem:[#allocation2 + $0x40] sm:$0xf]  ;;  %v1547_v10 = vsel %vm5319_vm14, %v4466_v25, %v1546_v19  ;;  %v771_v38 = vld [vmem:[#allocation2 + $0x3c] sm:$0xf] }
  0xb5   : > { %1604 = vrot.lane.b32.xlu1 %v1498_v11, %s4767_s30  ;;  %v1271_v47 = vpop.permute.xlu2 %1270  ;;  %v1279_v52 = vpop.permute.xlu0 %1278  ;;  %v1553_v11 = vrot.slane %v5442_v24, 5  ;;  %v1418_v55 = vld [vmem:[#allocation2 + $0x74] sm:$0x1]  ;;  %v1501_v8 = vsel %vm5319_vm14, %v1499_v33, %v1500_v0  ;;  %804 = vst.msk [vmem:[#allocation3 + $0x2c] sm:$0xf] %vm170_vm0, %v772_v60  ;;  %v1529_v32 = vsel %vm5319_vm14, %v1527_v6, %v1528_v7  ;;  %v1520_v45 = vrot.slane %v1518_v28, 4 }
  0xb6   : > { %1362 = vst.msk [vmem:[#allocation3 + $0x14] sm:$0xf] %vm1356_vm15, %v1271_v47  ;;  %v1275_v43 = vpop.permute.xlu1 %1274  ;;  %v1398_v13 = vld [vmem:[#allocation2 + $0x24] sm:$0xe]  ;;  %v1410_v5 = vld [vmem:[#allocation2 + $0x54] sm:$0xe] }
  0xb7   : > { %1366 = vst.msk [vmem:[#allocation3 + $0x24] sm:$0xf] %vm1356_vm15, %v1279_v52  ;;  %v5464_v18 = vld [vmem:[#allocation2 + $0x58] sm:$0xf]  ;;  %v1555_v63 = vrot.slane %v1553_v11, 4  ;;  %v1556_v14 = vrot.slane %v1418_v55, 5 }
  0xb8   : > { %1364 = vst.msk [vmem:[#allocation3 + $0x1c] sm:$0xf] %vm1356_vm15, %v1275_v43  ;;  %v4461_v9 = vrot.slane %v1398_v13, 9  ;;  %v776_v27 = vld [vmem:[#allocation2 + $0x58] sm:$0xf]  ;;  %v4465_v39 = vrot.slane %v1410_v5, 9 }
  0xb9   : > { %1318 = vrot.lane.b32.xlu2 %v1235_v15, %s4766_s29  ;;  %803 = vst.msk [vmem:[#allocation3 + $0x28] sm:$0xf] %vm170_vm0, %v771_v38  ;;  %v1539_v47 = vrot.slane %v5464_v18, 5  ;;  %v775_v29 = vld [vmem:[#allocation2 + $0x54] sm:$0xf]  ;;  %vm2981_vm5 = vcmask 224448  }
  0xba   : > { %1620 = vrot.lane.b32.xlu0 %v1526_v56, %s4767_s30  ;;  %808 = vst.msk [vmem:[#allocation3 + $0x3c] sm:$0xf] %vm170_vm0, %v776_v27  ;;  %v1557_v56 = vsel %vm5319_vm14, %v1555_v63, %v1556_v14  ;;  %v774_v16 = vld [vmem:[#allocation2 + $0x4c] sm:$0xf]  ;;  %v1422_v15 = vld [vmem:[#allocation2 + $0x84] sm:$0xe]  ;;  %v1512_v49 = vsel %vm5319_vm14, %v4461_v9, %v1511_v42 }
  0xbb   : > { %v1403_v37 = vld [vmem:[#allocation2 + $0x38] sm:$0x1]  ;;  %807 = vst.msk [vmem:[#allocation3 + $0x38] sm:$0xf] %vm170_vm0, %v775_v29  ;;  %v1540_v44 = vsel %vm5319_vm14, %v4465_v39, %v1539_v47  ;;  %v1415_v46 = vld [vmem:[#allocation2 + $0x68] sm:$0x1] }
  0xbc   : > { %806 = vst.msk [vmem:[#allocation3 + $0x34] sm:$0xf] %vm170_vm0, %v774_v16  ;;  %v4469_v51 = vrot.slane %v1422_v15, 9  ;;  %v1521_v42 = vrot.slane %v1403_v37, 5  ;;  %v5495_v53 = vld [vmem:[#allocation2 + $0x94] sm:$0xf] }
  0xbd   : > { %1610 = vrot.lane.b32.xlu1 %v1508_v59, %s4767_s30  ;;  %v1285_v2 = vpop.permute.xlu0 %1284  ;;  %v5476_v59 = vld [vmem:[#allocation2 + $0x88] sm:$0xf]  ;;  %v779_v54 = vld [vmem:[#allocation2 + $0x6c] sm:$0xf]  ;;  %v778_v23 = vld [vmem:[#allocation2 + $0x64] sm:$0xf] }
  0xbe   : > { %1369 = vst.msk [vmem:[#allocation3 + $0x30] sm:$0xf] %vm1356_vm15, %v1285_v2  ;;  %v1567_v52 = vrot.slane %v5476_v59, 5  ;;  %v777_v43 = vld [vmem:[#allocation2 + $0x60] sm:$0xf]  ;;  %v1549_v12 = vrot.slane %v1415_v46, 5  ;;  %v1522_v40 = vsel %vm5319_vm14, %v1520_v45, %v1521_v42 }
  0xbf   : > { %811 = vst.msk [vmem:[#allocation3 + $0x48] sm:$0xf] %vm170_vm0, %v779_v54  ;;  %v1574_v50 = vrot.slane %v5495_v53, 5  ;;  %v1427_v28 = vld [vmem:[#allocation2 + $0x98] sm:$0x1]  ;;  %v1541_v17 = vrot.slane %v1539_v47, 4 }
  0xc0   : > { %810 = vst.msk [vmem:[#allocation3 + $0x44] sm:$0xf] %vm170_vm0, %v778_v23  ;;  %v1407_v3 = vld [vmem:[#allocation2 + $0x48] sm:$0xe]  ;;  %v1419_v25 = vld [vmem:[#allocation2 + $0x78] sm:$0xe] }
  0xc1   : > { %1600 = vrot.lane.b32.xlu2 %v1491_v57, %s4767_s30  ;;  %v1568_v57 = vsel %vm5319_vm14, %v4469_v51, %v1567_v52  ;;  %809 = vst.msk [vmem:[#allocation3 + $0x40] sm:$0xf] %vm170_vm0, %v777_v43  ;;  %v1576_v33 = vrot.slane %v1574_v50, 4  ;;  %v1577_v0 = vrot.slane %v1427_v28, 5  ;;  %v4464_v21 = vrot.slane %v1407_v3, 9 }
  0xc2   : > { %1626 = vrot.lane.b32.xlu0 %v1536_v58, %s4767_s30  ;;  %v1548_v58 = vrot.slane %v1546_v19, 4  ;;  %v5512_v19 = vld [vmem:[#allocation2 + $0x7c] sm:$0xf]  ;;  %v781_v6 = vld [vmem:[#allocation2 + $0x78] sm:$0xf]  ;;  %v4468_v60 = vrot.slane %v1419_v25, 9 }
  0xc3   : > { %v782_v2 = vld [vmem:[#allocation2 + $0x7c] sm:$0xf]  ;;  %v780_v7 = vld [vmem:[#allocation2 + $0x70] sm:$0xf]  ;;  %813 = vst.msk [vmem:[#allocation3 + $0x50] sm:$0xf] %vm170_vm0, %v781_v6 }
  0xc4   : > { %v1550_v30 = vsel %vm5319_vm14, %v1548_v58, %v1549_v12  ;;  %814 = vst.msk [vmem:[#allocation3 + $0x54] sm:$0xf] %vm170_vm0, %v782_v2  ;;  %v5523_v38 = vld [vmem:[#allocation2 + $0xac] sm:$0xf]  ;;  %v5541_v27 = vld [vmem:[#allocation2 + $0xb8] sm:$0xf] }
  0xc5   : > { %1616 = vrot.lane.b32.xlu1 %v1519_v48, %s4767_s30  ;;  %812 = vst.msk [vmem:[#allocation3 + $0x4c] sm:$0xf] %vm170_vm0, %v780_v7  ;;  %v1424_v5 = vld [vmem:[#allocation2 + $0x8c] sm:$0x1]  ;;  %v1588_v9 = vrot.slane %v5523_v38, 5  ;;  %v1595_v47 = vrot.slane %v5541_v27, 5 }
  0xc6   : > { %v1281_v61 = vpop.permute.xlu1 %1280  ;;  %v785_v39 = vld [vmem:[#allocation2 + $0x90] sm:$0xf]  ;;  %v784_v29 = vld [vmem:[#allocation2 + $0x88] sm:$0xf]  ;;  %v783_v16 = vld [vmem:[#allocation2 + $0x84] sm:$0xf] }
  0xc7   : > { %v1277_v34 = vpop.permute.xlu2 %1276  ;;  %1367 = vst.msk [vmem:[#allocation3 + $0x28] sm:$0xf] %vm1356_vm15, %v1281_v61  ;;  %v1560_v61 = vrot.slane %v5512_v19, 5  ;;  %v1436_v15 = vld [vmem:[#allocation2 + $0xbc] sm:$0x1]  ;;  %v1597_v51 = vrot.slane %v1595_v47, 4 }
  0xc8   : > { %1365 = vst.msk [vmem:[#allocation3 + $0x20] sm:$0xf] %vm1356_vm15, %v1277_v34  ;;  %v1431_v34 = vld [vmem:[#allocation2 + $0xa8] sm:$0xe]  ;;  %v1428_v37 = vld [vmem:[#allocation2 + $0x9c] sm:$0xe] }
  0xc9   : > { %1606 = vrot.lane.b32.xlu2 %v1501_v8, %s4767_s30  ;;  %v1533_v8 = vsel %vm5319_vm14, %v4464_v21, %v1532_v35  ;;  %v1561_v13 = vsel %vm5319_vm14, %v4468_v60, %v1560_v61  ;;  %v4472_v14 = vrot.slane %v1431_v34, 9  ;;  %817 = vst.msk [vmem:[#allocation3 + $0x60] sm:$0xf] %vm170_vm0, %v785_v39  ;;  %v788_v54 = vld [vmem:[#allocation2 + $0xa0] sm:$0xf]  ;;  %v4471_v43 = vrot.slane %v1428_v37, 9 }
  0xca   : > { %1632 = vrot.lane.b32.xlu0 %v1547_v10, %s4767_s30  ;;  %v1578_v10 = vsel %vm5319_vm14, %v1576_v33, %v1577_v0  ;;  %816 = vst.msk [vmem:[#allocation3 + $0x5c] sm:$0xf] %vm170_vm0, %v784_v29  ;;  %v787_v23 = vld [vmem:[#allocation2 + $0x9c] sm:$0xf]  ;;  %v786_v12 = vld [vmem:[#allocation2 + $0x94] sm:$0xf] }
  0xcb   : > { %v1291_v20 = vpop.permute.xlu0 %1290  ;;  %v1589_v18 = vsel %vm5319_vm14, %v4472_v14, %v1588_v9  ;;  %815 = vst.msk [vmem:[#allocation3 + $0x58] sm:$0xf] %vm170_vm0, %v783_v16  ;;  %v1421_v3 = vld [vmem:[#allocation2 + $0x80] sm:$0x1]  ;;  %v1562_v24 = vrot.slane %v1560_v61, 4  ;;  %v1590_v0 = vrot.slane %v1588_v9, 4 }
  0xcc   : > { %1372 = vst.msk [vmem:[#allocation3 + $0x3c] sm:$0xf] %vm1356_vm15, %v1291_v20  ;;  %v1563_v25 = vrot.slane %v1421_v3, 5  ;;  %v791_v33 = vld [vmem:[#allocation2 + $0xb4] sm:$0xf]  ;;  %vm4097_vm7 = vcmask 1041408  }
  0xcd   : > { %1622 = vrot.lane.b32.xlu1 %v1529_v32, %s4767_s30  ;;  %v1412_v32 = vld [vmem:[#allocation2 + $0x5c] sm:$0x1]  ;;  %820 = vst.msk [vmem:[#allocation3 + $0x6c] sm:$0xf] %vm170_vm0, %v788_v54  ;;  %v789_v2 = vld [vmem:[#allocation2 + $0xa8] sm:$0xf] }
  0xce   : > { %v1287_v41 = vpop.permute.xlu1 %1286  ;;  %v1542_v35 = vrot.slane %v1412_v32, 5  ;;  %819 = vst.msk [vmem:[#allocation3 + $0x68] sm:$0xf] %vm170_vm0, %v787_v23  ;;  %v1731_v6 = vld [vmem:[#allocation2 + $0x18] sm:$0xf]  ;;  %v1564_v7 = vsel %vm5319_vm14, %v1562_v24, %v1563_v25  ;;  %vm3542_vm8 = vcmask 257248  }
  0xcf   : > { %v1283_v36 = vpop.permute.xlu2 %1282  ;;  %1370 = vst.msk [vmem:[#allocation3 + $0x34] sm:$0xf] %vm1356_vm15, %v1287_v41  ;;  %v1416_v41 = vld [vmem:[#allocation2 + $0x6c] sm:$0xe]  ;;  %v1425_v61 = vld [vmem:[#allocation2 + $0x90] sm:$0xe] }
  0xd0   : > { %1368 = vst.msk [vmem:[#allocation3 + $0x2c] sm:$0xf] %vm1356_vm15, %v1283_v36  ;;  %v1570_v36 = vrot.slane %v1424_v5, 5  ;;  %v1543_v59 = vsel %vm5319_vm14, %v1541_v17, %v1542_v35  ;;  %v4467_v42 = vrot.slane %v1416_v41, 9  ;;  %v4470_v34 = vrot.slane %v1425_v61, 9 }
  0xd1   : > { %1612 = vrot.lane.b32.xlu2 %v1512_v49, %s4767_s30  ;;  %818 = vst.msk [vmem:[#allocation3 + $0x64] sm:$0xf] %vm170_vm0, %v786_v12  ;;  %v792_v38 = vld [vmem:[#allocation2 + $0xb8] sm:$0xf]  ;;  %v1737_v53 = vld [vmem:[#allocation2 + $0x3c] sm:$0xf] }
  0xd2   : > { %1638 = vrot.lane.b32.xlu0 %v1557_v56, %s4767_s30  ;;  %v1569_v56 = vrot.slane %v1567_v52, 4  ;;  %v1598_v52 = vrot.slane %v1436_v15, 5  ;;  %v1554_v28 = vsel %vm5319_vm14, %v4467_v42, %v1553_v11  ;;  %v790_v11 = vld [vmem:[#allocation2 + $0xac] sm:$0xf]  ;;  %823 = vst.msk [vmem:[#allocation3 + $0x78] sm:$0xf] %vm170_vm0, %v791_v33  ;;  %v1575_v32 = vsel %vm5319_vm14, %v4470_v34, %v1574_v50 }
  0xd3   : > { %822 = vst.msk [vmem:[#allocation3 + $0x74] sm:$0xf] %vm170_vm0, %v790_v11  ;;  %v1732_v35 = vld [vmem:[#allocation2 + $0x1c] sm:$0xf]  ;;  %v1730_v27 = vld [vmem:[#allocation2 + $0x10] sm:$0xf] }
  0xd4   : > { %v1571_v49 = vsel %vm5319_vm14, %v1569_v56, %v1570_v36  ;;  %821 = vst.msk [vmem:[#allocation3 + $0x70] sm:$0xf] %vm170_vm0, %v789_v2  ;;  %v1740_v36 = vld [vmem:[#allocation2 + $0x4c] sm:$0xf]  ;;  %v230_v42 = vld [vmem:[#allocation2 + $0xc0] sm:$0x1] }
  0xd5   : > { %1628 = vrot.lane.b32.xlu1 %v1540_v44, %s4767_s30  ;;  %v5556_v44 = vld [vmem:[#allocation2 + $0xa0] sm:$0xf]  ;;  %824 = vst.msk [vmem:[#allocation3 + $0x7c] sm:$0xf] %vm170_vm0, %v792_v38  ;;  %v231_v54 = vsel %vm4846_vm3, 0, %v230_v42 }
  0xd6   : > { %v1581_v58 = vrot.slane %v5556_v44, 5  ;;  %232 = vst [vmem:[#allocation2 + $0xc0] sm:$0x1] %v231_v54  ;;  %v1752_v2 = vld [vmem:[#allocation2 + $0x94] sm:$0xf] }
  0xd7   : > { %v1755_v38 = vld [vmem:[#allocation2 + $0xa8] sm:$0xf]  ;;  %v1756_v31 = vld [vmem:[#allocation2 + $0xac] sm:$0xf] }
  0xd8   : > { %v1297_v48 = vpop.permute.xlu0 %1296  ;;  %v1583_v14 = vrot.slane %v1581_v58, 4 }
  0xd9   : > { %1375 = vst.msk [vmem:[#allocation3 + $0x48] sm:$0xf] %vm1356_vm15, %v1297_v48  ;;  %1618 = vrot.lane.b32.xlu2 %v1522_v40, %s4767_s30  ;;  %v1582_v40 = vsel %vm5319_vm14, %v4471_v43, %v1581_v58  ;;  %v322_v43 = vld [vmem:[%s4868_s28 + $0x78] sm:$0xf] }
  0xda   : > { %1644 = vrot.lane.b32.xlu0 %v1568_v57, %s4767_s30  ;;  %v1599_v57 = vsel %vm5319_vm14, %v1597_v51, %v1598_v52  ;;  %v1746_v51 = vld [vmem:[#allocation2 + $0x70] sm:$0xf]  ;;  %v1733_v52 = vld [vmem:[#allocation2 + $0x24] sm:$0xf]  ;;  %v582_v12 = vshrl.u32 %v322_v43, 16  ;;  %v585_v3 = vshll.u32 %v322_v43, 16 }
  0xdd   : > { %1634 = vrot.lane.b32.xlu1 %v1550_v30, %s4767_s30  ;;  %v1433_v30 = vld [vmem:[#allocation2 + $0xb0] sm:$0x1]  ;;  %v754_v25 = vld [vmem:[#allocation2 + $0xc0] sm:$0xf] }
  0xde   : > { %v1591_v21 = vrot.slane %v1433_v30, 5  ;;  %v1744_v30 = vld [vmem:[#allocation2 + $0x64] sm:$0xf] }
  0xe0   : > { %v1293_v55 = vpop.permute.xlu1 %1292  ;;  %v1592_v19 = vsel %vm5319_vm14, %v1590_v0, %v1591_v21 }
  0xe1   : > { %1373 = vst.msk [vmem:[#allocation3 + $0x40] sm:$0xf] %vm1356_vm15, %v1293_v55  ;;  %1624 = vrot.lane.b32.xlu2 %v1533_v8, %s4767_s30  ;;  %v1734_v55 = vld [vmem:[#allocation2 + $0x28] sm:$0xf] }
  0xe2   : > { %1650 = vrot.lane.b32.xlu0 %v1578_v10, %s4767_s30 }
  0xe3   : > { %v1289_v63 = vpop.permute.xlu2 %1288 }
  0xe4   : > { %1371 = vst.msk [vmem:[#allocation3 + $0x38] sm:$0xf] %vm1356_vm15, %v1289_v63  ;;  %v1303_v20 = vpop.permute.xlu0 %1302  ;;  %v1430_v63 = vld [vmem:[#allocation2 + $0xa4] sm:$0x1] }
  0xe5   : > { %1640 = vrot.lane.b32.xlu1 %v1561_v13, %s4767_s30  ;;  %1378 = vst.msk [vmem:[#allocation3 + $0x54] sm:$0xf] %vm1356_vm15, %v1303_v20  ;;  %v1729_v13 = vld [vmem:[#allocation2 + $0xc] sm:$0xf]  ;;  %v1584_v9 = vrot.slane %v1430_v63, 5 }
  0xe6   : > { %v1434_v20 = vld [vmem:[#allocation2 + $0xb4] sm:$0xe]  ;;  %v1923_v63 = vld [vmem:[#allocation2 + $0x10] sm:$0xf] }
  0xe7   : > { %v1585_v50 = vsel %vm5319_vm14, %v1583_v14, %v1584_v9  ;;  %v4473_v29 = vrot.slane %v1434_v20, 9  ;;  %v1926_v14 = vld [vmem:[#allocation2 + $0x1c] sm:$0xf] }
  0xe8   : > { %v323_v9 = vld [vmem:[%s4868_s28 + $0x7c] sm:$0xf]  ;;  %s4455_s28 = sshll.u32 %s161_s27, 5 }
  0xe9   : > { %1630 = vrot.lane.b32.xlu2 %v1543_v59, %s4767_s30  ;;  %v1596_v16 = vsel %vm5319_vm14, %v4473_v29, %v1595_v47  ;;  %v1738_v47 = vld [vmem:[#allocation2 + $0x40] sm:$0xf]  ;;  %v2004_v29 = vshll.u32 %v1926_v14, 16 }
  0xea   : > { %1656 = vrot.lane.b32.xlu0 %v1589_v18, %s4767_s30  ;;  %v1735_v18 = vld [vmem:[#allocation2 + $0x30] sm:$0xf] }
  0xeb   : > { %v1295_v46 = vpop.permute.xlu2 %1294  ;;  %v1299_v45 = vpop.permute.xlu1 %1298 }
  0xec   : > { %1374 = vst.msk [vmem:[#allocation3 + $0x44] sm:$0xf] %vm1356_vm15, %v1295_v46 }
  0xed   : > { %1646 = vrot.lane.b32.xlu1 %v1571_v49, %s4767_s30  ;;  %1376 = vst.msk [vmem:[#allocation3 + $0x4c] sm:$0xf] %vm1356_vm15, %v1299_v45  ;;  %v1743_v49 = vld [vmem:[#allocation2 + $0x60] sm:$0xf]  ;;  %v1741_v45 = vld [vmem:[#allocation2 + $0x54] sm:$0xf] }
  0xf1   : > { %v1309_v48 = vpop.permute.xlu0 %1308  ;;  %1636 = vrot.lane.b32.xlu2 %v1554_v28, %s4767_s30  ;;  %v1749_v28 = vld [vmem:[#allocation2 + $0x84] sm:$0xf] }
  0xf2   : > { %1662 = vrot.lane.b32.xlu0 %v1599_v57, %s4767_s30  ;;  %1381 = vst.msk [vmem:[#allocation3 + $0x60] sm:$0xf] %vm1356_vm15, %v1309_v48  ;;  %v1736_v48 = vld [vmem:[#allocation2 + $0x34] sm:$0xf] }
  0xf5   : > { %1652 = vrot.lane.b32.xlu1 %v1582_v40, %s4767_s30  ;;  %v5637_v40 = vrot.slane %v582_v12, 7 }
  0xf7   : > { %v587_v24 = vor.u32 %v585_v3, %v5637_v40 }
  0xf9   : > { %1642 = vrot.lane.b32.xlu2 %v1564_v7, %s4767_s30  ;;  %v755_v11 = vsel %vm4884_vm9, %v587_v24, %v754_v25  ;;  %v1747_v7 = vld [vmem:[#allocation2 + $0x78] sm:$0xf]  ;;  %v5683_v24 = vld [vmem:[#allocation2 + $0x34] sm:$0xf]  ;;  %vm3879_vm9 = vcmask 290048  }
  0xfa   : > { %v1301_v60 = vpop.permute.xlu2 %1300  ;;  %1797 = vrot.lane.b32.xlu0 %v1731_v6, %s4768_s4  ;;  %756 = vst [vmem:[#allocation2 + $0xc0] sm:$0xf] %v755_v11  ;;  %v1739_v6 = vld [vmem:[#allocation2 + $0x48] sm:$0xf] }
  0xfb   : > { %1377 = vst.msk [vmem:[#allocation3 + $0x50] sm:$0xf] %vm1356_vm15, %v1301_v60 }
  0xfc   : > { %v1305_v10 = vpop.permute.xlu1 %1304 }
  0xfd   : > { %1658 = vrot.lane.b32.xlu1 %v1592_v19, %s4767_s30  ;;  %1379 = vst.msk [vmem:[#allocation3 + $0x58] sm:$0xf] %vm1356_vm15, %v1305_v10  ;;  %v1922_v19 = vld [vmem:[#allocation2 + $0xc] sm:$0xf] }
  0xfe   : > { %v1971_v61 = vshrl.u32 %v1922_v19, 16  ;;  %v1974_v10 = vshll.u32 %v1922_v19, 16 }
  0xff   : > { %v1315_v8 = vpop.permute.xlu0 %1314 }
 0x100   : > { %1384 = vst.msk [vmem:[#allocation3 + $0x6c] sm:$0xf] %vm1356_vm15, %v1315_v8  ;;  %v1750_v8 = vld [vmem:[#allocation2 + $0x88] sm:$0xf] }
 0x101   : > { %1648 = vrot.lane.b32.xlu2 %v1575_v32, %s4767_s30  ;;  %v1973_v32 = vrot.slane %v1971_v61, 4 }
 0x102   : > { %v1307_v5 = vpop.permute.xlu2 %1306  ;;  %1803 = vrot.lane.b32.xlu0 %v1734_v55, %s4768_s4  ;;  %v1742_v55 = vld [vmem:[#allocation2 + $0x58] sm:$0xf] }
 0x103   : > { %1380 = vst.msk [vmem:[#allocation3 + $0x5c] sm:$0xf] %vm1356_vm15, %v1307_v5 }
 0x105   : > { %1793 = vrot.lane.b32.xlu1 %v1729_v13, %s4768_s4  ;;  %v1976_v13 = vrot.slane %v1974_v10, 5  ;;  %v1751_v10 = vld [vmem:[#allocation2 + $0x90] sm:$0xf] }
 0x106   : > { %v1311_v17 = vpop.permute.xlu1 %1310 }
 0x107   : > { %1382 = vst.msk [vmem:[#allocation3 + $0x64] sm:$0xf] %vm1356_vm15, %v1311_v17 }
 0x109   : > { %1654 = vrot.lane.b32.xlu2 %v1585_v50, %s4767_s30  ;;  %v1977_v50 = vor.u32 %v1976_v13, %v1973_v32 }
 0x10a   : > { %1809 = vrot.lane.b32.xlu0 %v1737_v53, %s4768_s4  ;;  %v1758_v53 = vld [vmem:[#allocation2 + $0xb8] sm:$0xf] }
 0x10b   : > { %v1313_v56 = vpop.permute.xlu2 %1312 }
 0x10c   : > { %v1321_v39 = vpop.permute.xlu0 %1320  ;;  %1383 = vst.msk [vmem:[#allocation3 + $0x68] sm:$0xf] %vm1356_vm15, %v1313_v56  ;;  %v2008_v56 = vshrl.u32 %v1926_v14, 16 }
 0x10d   : > { %1799 = vrot.lane.b32.xlu1 %v1732_v35, %s4768_s4  ;;  %1387 = vst.msk [vmem:[#allocation3 + $0x78] sm:$0xf] %vm1356_vm15, %v1321_v39  ;;  %v590_v35 = vshrl.u32 %v323_v9, 16  ;;  %v1980_v39 = vshll.u32 %v1923_v63, 16 }
 0x111   : > { %1660 = vrot.lane.b32.xlu2 %v1596_v16, %s4767_s30  ;;  %v5661_v16 = vrot.slane %v590_v35, 7  ;;  %s6713_s30 = scalar_lea.vmem [#allocation5], %s4455_s28 }
 0x112   : > { %1815 = vrot.lane.b32.xlu0 %v1740_v36, %s4768_s4  ;;  %v1745_v36 = vld [vmem:[#allocation2 + $0x6c] sm:$0xf] }
 0x113   : > { %v1319_v59 = vpop.permute.xlu2 %1318 }
 0x114   : > { %v1603_v15 = vpop.permute.xlu0 %1602  ;;  %1386 = vst.msk [vmem:[#allocation3 + $0x74] sm:$0xf] %vm1356_vm15, %v1319_v59  ;;  %v1978_v59 = vrot.slane %v1977_v50, 4  ;;  %v5702_v50 = vld [vmem:[#allocation2 + $0x28] sm:$0xf] }
 0x115   : > { %1805 = vrot.lane.b32.xlu1 %v1735_v18, %s4768_s4  ;;  %1698 = vst.msk [vmem:[#allocation3 + $0x4] sm:$0xf] %vm1696_vm1, %v1603_v15  ;;  %v593_v18 = vshll.u32 %v323_v9, 16  ;;  %v1753_v15 = vld [vmem:[#allocation2 + $0x9c] sm:$0xf] }
 0x117   : > { %v1317_v41 = vpop.permute.xlu1 %1316 }
 0x118   : > { %1385 = vst.msk [vmem:[#allocation3 + $0x70] sm:$0xf] %vm1356_vm15, %v1317_v41  ;;  %v588_v41 = vrot.slane %v5637_v40, 4 }
 0x119   : > { %1795 = vrot.lane.b32.xlu2 %v1730_v27, %s4768_s4  ;;  %v5667_v27 = vrot.slane %v2004_v29, 5 }
 0x11a   : > { %1821 = vrot.lane.b32.xlu0 %v1743_v49, %s4768_s4  ;;  %v5665_v49 = vrot.slane %v1980_v39, 5 }
 0x11b   : > { %v1601_v44 = vpop.permute.xlu2 %1600 }
 0x11c   : > { %v1609_v37 = vpop.permute.xlu0 %1608  ;;  %1697 = vst.msk [vmem:[#allocation3] sm:$0xf] %vm1696_vm1, %v1601_v44  ;;  %v595_v44 = vor.u32 %v593_v18, %v5661_v16  ;;  %v1983_v43 = vsel %vm4922_vm11, %v1978_v59, %v5665_v49 }
 0x11d   : > { %1811 = vrot.lane.b32.xlu1 %v1738_v47, %s4768_s4  ;;  %1701 = vst.msk [vmem:[#allocation3 + $0x10] sm:$0xf] %vm1696_vm1, %v1609_v37  ;;  %v2010_v47 = vrot.slane %v2008_v56, 4  ;;  %v1931_v37 = vld [vmem:[#allocation2 + $0x30] sm:$0xf] }
 0x11e   : > { %v2043_v42 = vshrl.u32 %v1931_v37, 16  ;;  %v2046_v54 = vshll.u32 %v1931_v37, 16  ;;  %v1754_v37 = vld [vmem:[#allocation2 + $0xa0] sm:$0xf] }
 0x11f   : > { %v1323_v46 = vpop.permute.xlu1 %1322 }
 0x120   : > { %1388 = vst.msk [vmem:[#allocation3 + $0x7c] sm:$0xf] %vm1356_vm15, %v1323_v46  ;;  %v2048_v40 = vrot.slane %v2046_v54, 5 }
 0x121   : > { %1801 = vrot.lane.b32.xlu2 %v1733_v52, %s4768_s4  ;;  %v596_v52 = vsel %vm4894_vm10, %v588_v41, %v595_v44  ;;  %v2056_v44 = vshrl.u32 %v5683_v24, 16 }
 0x122   : > { %1827 = vrot.lane.b32.xlu0 %v1746_v51, %s4768_s4  ;;  %v1927_v51 = vld [vmem:[#allocation2 + $0x20] sm:$0x1]  ;;  %757 = vst.msk [vmem:[#allocation2 + $0xc4] sm:$0xf] %vm170_vm0, %v596_v52  ;;  %vm1889_vm0 = vcmask 126048  }
 0x123   : > { %v1607_v58 = vpop.permute.xlu2 %1606  ;;  %v2014_v12 = vshll.u32 %v1927_v51, 16 }
 0x124   : > { %v1615_v23 = vpop.permute.xlu0 %1614  ;;  %1700 = vst.msk [vmem:[#allocation3 + $0xc] sm:$0xf] %vm1696_vm1, %v1607_v58  ;;  %v2011_v58 = vor.u32 %v2010_v47, %v5667_v27  ;;  %v2028_v47 = vshll.u32 %v5702_v50, 16 }
 0x125   : > { %1817 = vrot.lane.b32.xlu1 %v1741_v45, %s4768_s4  ;;  %1704 = vst.msk [vmem:[#allocation3 + $0x1c] sm:$0xf] %vm1696_vm1, %v1615_v23 }
 0x126   : > { %v2012_v3 = vrot.slane %v2011_v58, 4 }
 0x127   : > { %v1605_v57 = vpop.permute.xlu1 %1604 }
 0x128   : > { %1699 = vst.msk [vmem:[#allocation3 + $0x8] sm:$0xf] %vm1696_vm1, %v1605_v57  ;;  %v1748_v57 = vld [vmem:[#allocation2 + $0x7c] sm:$0xf] }
 0x129   : > { %1807 = vrot.lane.b32.xlu2 %v1736_v48, %s4768_s4  ;;  %v2045_v48 = vrot.slane %v2043_v42, 4 }
 0x12a   : > { %1833 = vrot.lane.b32.xlu0 %v1749_v28, %s4768_s4  ;;  %v1984_v28 = vshrl.u32 %v1923_v63, 16 }
 0x12b   : > { %v1613_v0 = vpop.permute.xlu2 %1612 }
 0x12c   : > { %v1621_v33 = vpop.permute.xlu0 %1620  ;;  %1703 = vst.msk [vmem:[#allocation3 + $0x18] sm:$0xf] %vm1696_vm1, %v1613_v0  ;;  %v1986_v0 = vrot.slane %v1984_v28, 4  ;;  %v1925_v28 = vld [vmem:[#allocation2 + $0x18] sm:$0xf] }
 0x12d   : > { %1823 = vrot.lane.b32.xlu1 %v1744_v30, %s4768_s4  ;;  %1707 = vst.msk [vmem:[#allocation3 + $0x28] sm:$0xf] %vm1696_vm1, %v1621_v33  ;;  %v2016_v30 = vrot.slane %v2014_v12, 5  ;;  %v1935_v33 = vld [vmem:[#allocation2 + $0x40] sm:$0xf] }
 0x12e   : > { %v2080_v61 = vshrl.u32 %v1935_v33, 16  ;;  %v5718_v12 = vld [vmem:[#allocation2 + $0x58] sm:$0xf] }
 0x12f   : > { %v1611_v21 = vpop.permute.xlu1 %1610  ;;  %v2017_v19 = vsel %vm4922_vm11, %v2012_v3, %v2016_v30  ;;  %v1937_v3 = vld [vmem:[#allocation2 + $0x48] sm:$0xf] }
 0x130   : > { %1702 = vst.msk [vmem:[#allocation3 + $0x14] sm:$0xf] %vm1696_vm1, %v1611_v21  ;;  %v2049_v21 = vor.u32 %v2048_v40, %v2045_v48  ;;  %v2082_v14 = vrot.slane %v2080_v61, 4  ;;  %v1933_v40 = vld [vmem:[#allocation2 + $0x38] sm:$0x1] }
 0x131   : > { %1813 = vrot.lane.b32.xlu2 %v1739_v6, %s4768_s4  ;;  %v1928_v6 = vld [vmem:[#allocation2 + $0x24] sm:$0xf] }
 0x132   : > { %1839 = vrot.lane.b32.xlu0 %v1752_v2, %s4768_s4  ;;  %v2052_v2 = vshll.u32 %v5683_v24, 16  ;;  %v2050_v13 = vrot.slane %v2049_v21, 4  ;;  %v1995_v21 = vshrl.u32 %v1925_v28, 16 }
 0x133   : > { %v1619_v26 = vpop.permute.xlu2 %1618 }
 0x134   : > { %v1627_v60 = vpop.permute.xlu0 %1626  ;;  %1706 = vst.msk [vmem:[#allocation3 + $0x24] sm:$0xf] %vm1696_vm1, %v1619_v26  ;;  %v2076_v26 = vshll.u32 %v1935_v33, 16 }
 0x135   : > { %1829 = vrot.lane.b32.xlu1 %v1747_v7, %s4768_s4  ;;  %1710 = vst.msk [vmem:[#allocation3 + $0x34] sm:$0xf] %vm1696_vm1, %v1627_v60  ;;  %v1924_v60 = vld [vmem:[#allocation2 + $0x14] sm:$0x1] }
 0x136   : > { %v1990_v32 = vshll.u32 %v1924_v60, 16  ;;  %v5697_v63 = vrot.slane %v2076_v26, 5  ;;  %v2091_v60 = vshrl.u32 %v1937_v3, 16  ;;  %v2094_v26 = vshll.u32 %v1937_v3, 16  ;;  %v1934_v3 = vld [vmem:[#allocation2 + $0x3c] sm:$0xf] }
 0x137   : > { %v1617_v34 = vpop.permute.xlu1 %1616 }
 0x138   : > { %1705 = vst.msk [vmem:[#allocation3 + $0x20] sm:$0xf] %vm1696_vm1, %v1617_v34  ;;  %v2019_v34 = vshrl.u32 %v1928_v6, 16  ;;  %v1992_v56 = vrot.slane %v1990_v32, 5 }
 0x139   : > { %1819 = vrot.lane.b32.xlu2 %v1742_v55, %s4768_s4  ;;  %v1759_v55 = vld [vmem:[#allocation2 + $0xc0] sm:$0xf] }
 0x13a   : > { %1845 = vrot.lane.b32.xlu0 %v1755_v38, %s4768_s4  ;;  %v2022_v38 = vshll.u32 %v1928_v6, 16  ;;  %v2021_v35 = vrot.slane %v2019_v34, 4  ;;  %v1757_v6 = vld [vmem:[#allocation2 + $0xb4] sm:$0xf] }
 0x13b   : > { %v1625_v17 = vpop.permute.xlu2 %1624 }
 0x13c   : > { %v1633_v5 = vpop.permute.xlu0 %1632  ;;  %1709 = vst.msk [vmem:[#allocation3 + $0x30] sm:$0xf] %vm1696_vm1, %v1625_v17  ;;  %v1936_v17 = vld [vmem:[#allocation2 + $0x44] sm:$0x1] }
 0x13d   : > { %1835 = vrot.lane.b32.xlu1 %v1750_v8, %s4768_s4  ;;  %1713 = vst.msk [vmem:[#allocation3 + $0x40] sm:$0xf] %vm1696_vm1, %v1633_v5  ;;  %v1987_v8 = vor.u32 %v1986_v0, %v5665_v49  ;;  %v5695_v5 = vrot.slane %v2052_v2, 5  ;;  %v2086_v59 = vshll.u32 %v1936_v17, 16  ;;  %v2124_v0 = vshll.u32 %v5718_v12, 16 }
 0x13e   : > { %v1998_v2 = vshll.u32 %v1925_v28, 16  ;;  %v1953_v28 = vld [vmem:[#allocation2 + $0x88] sm:$0xf] }
 0x13f   : > { %v1623_v20 = vpop.permute.xlu1 %1622  ;;  %v1988_v29 = vrot.slane %v1987_v8, 4  ;;  %v1945_v8 = vld [vmem:[#allocation2 + $0x68] sm:$0x1] }
 0x140   : > { %1708 = vst.msk [vmem:[#allocation3 + $0x2c] sm:$0xf] %vm1696_vm1, %v1623_v20  ;;  %v2024_v20 = vrot.slane %v2022_v38, 5 }
 0x141   : > { %1825 = vrot.lane.b32.xlu2 %v1745_v36, %s4768_s4  ;;  %v2055_v36 = vsel %vm4922_vm11, %v2050_v13, %v5695_v5  ;;  %v1993_v51 = vsel %vm4922_vm11, %v1988_v29, %v1992_v56  ;;  %v1997_v13 = vrot.slane %v1995_v21, 4  ;;  %v2128_v29 = vshrl.u32 %v5718_v12, 16  ;;  %v5741_v56 = vld [vmem:[#allocation2 + $0x4c] sm:$0xf] }
 0x142   : > { %1851 = vrot.lane.b32.xlu0 %v1758_v53, %s4768_s4  ;;  %v1940_v53 = vld [vmem:[#allocation2 + $0x54] sm:$0xf]  ;;  %v1946_v21 = vld [vmem:[#allocation2 + $0x6c] sm:$0xf] }
 0x143   : > { %v1631_v45 = vpop.permute.xlu2 %1630  ;;  %v2115_v41 = vshrl.u32 %v1940_v53, 16  ;;  %v2118_v49 = vshll.u32 %v1940_v53, 16  ;;  %v2093_v53 = vrot.slane %v2091_v60, 4  ;;  %v2224_v60 = vshrl.u32 %v1953_v28, 16 }
 0x144   : > { %v1639_v46 = vpop.permute.xlu0 %1638  ;;  %1712 = vst.msk [vmem:[#allocation3 + $0x3c] sm:$0xf] %vm1696_vm1, %v1631_v45  ;;  %v2088_v45 = vrot.slane %v2086_v59, 5 }
 0x145   : > { %1841 = vrot.lane.b32.xlu1 %v1753_v15, %s4768_s4  ;;  %1716 = vst.msk [vmem:[#allocation3 + $0x4c] sm:$0xf] %vm1696_vm1, %v1639_v46  ;;  %v2083_v15 = vor.u32 %v2082_v14, %v5697_v63  ;;  %v2025_v46 = vor.u32 %v2024_v20, %v2021_v35  ;;  %v2117_v42 = vrot.slane %v2115_v41, 4  ;;  %v2120_v54 = vrot.slane %v2118_v49, 5  ;;  %v1949_v14 = vld [vmem:[#allocation2 + $0x78] sm:$0xf] }
 0x146   : > { %v2096_v35 = vrot.slane %v2094_v26, 5  ;;  %v2032_v20 = vshrl.u32 %v5702_v50, 16  ;;  %v2187_v41 = vshrl.u32 %v1949_v14, 16  ;;  %v2190_v49 = vshll.u32 %v1949_v14, 16 }
 0x147   : > { %v1629_v23 = vpop.permute.xlu1 %1628  ;;  %v2084_v52 = vrot.slane %v2083_v15, 4  ;;  %v2067_v26 = vshrl.u32 %v1934_v3, 16 }
 0x148   : > { %1711 = vst.msk [vmem:[#allocation3 + $0x38] sm:$0xf] %vm1696_vm1, %v1629_v23  ;;  %v1944_v23 = vld [vmem:[#allocation2 + $0x64] sm:$0xf] }
 0x149   : > { %1831 = vrot.lane.b32.xlu2 %v1748_v57, %s4768_s4  ;;  %v2026_v57 = vrot.slane %v2025_v46, 4  ;;  %v2148_v30 = vshll.u32 %v1944_v23, 16  ;;  %v2152_v24 = vshrl.u32 %v1944_v23, 16  ;;  %v2089_v33 = vsel %vm4922_vm11, %v2084_v52, %v2088_v45 }
 0x14a   : > { %2354 = vrot.lane.b32.xlu0 %v1983_v43, %s4769_s5  ;;  %v5716_v43 = vrot.slane %v2028_v47, 5  ;;  %v1760_v47 = vld [vmem:[#allocation2 + $0xc4] sm:$0xf]  ;;  %v2100_v46 = vshll.u32 %v5741_v56, 16  ;;  %v2189_v23 = vrot.slane %v2187_v41, 4 }
 0x14b   : > { %v1637_v11 = vpop.permute.xlu2 %1636  ;;  %v2154_v34 = vrot.slane %v2152_v24, 4 }
 0x14c   : > { %v1645_v25 = vpop.permute.xlu0 %1644  ;;  %1715 = vst.msk [vmem:[#allocation3 + $0x48] sm:$0xf] %vm1696_vm1, %v1637_v11  ;;  %v2121_v11 = vor.u32 %v2120_v54, %v2117_v42  ;;  %v2031_v61 = vsel %vm4922_vm11, %v2026_v57, %v5716_v43  ;;  %v2130_v42 = vrot.slane %v2128_v29, 4  ;;  %v1930_v54 = vld [vmem:[#allocation2 + $0x2c] sm:$0x1] }
 0x14d   : > { %1847 = vrot.lane.b32.xlu1 %v1756_v31, %s4768_s4  ;;  %1719 = vst.msk [vmem:[#allocation3 + $0x58] sm:$0xf] %vm1696_vm1, %v1645_v25  ;;  %v2058_v31 = vrot.slane %v2056_v44, 4  ;;  %v2097_v44 = vor.u32 %v2096_v35, %v2093_v53  ;;  %v2226_v53 = vrot.slane %v2224_v60, 4  ;;  %v1958_v35 = vld [vmem:[#allocation2 + $0x9c] sm:$0xf] }
 0x14e   : > { %v2122_v38 = vrot.slane %v2121_v11, 4  ;;  %v1942_v11 = vld [vmem:[#allocation2 + $0x5c] sm:$0x1] }
 0x14f   : > { %v1635_v7 = vpop.permute.xlu1 %1634  ;;  %v2134_v14 = vshll.u32 %v1942_v11, 16 }
 0x150   : > { %1714 = vst.msk [vmem:[#allocation3 + $0x44] sm:$0xf] %vm1696_vm1, %v1635_v7  ;;  %v2059_v7 = vor.u32 %v2058_v31, %v5695_v5  ;;  %v2000_v5 = vrot.slane %v1998_v2, 5  ;;  %v5754_v31 = vld [vmem:[#allocation2 + $0x7c] sm:$0xf] }
 0x151   : > { %1837 = vrot.lane.b32.xlu2 %v1751_v10, %s4768_s4  ;;  %v5732_v10 = vrot.slane %v2148_v30, 5 }
 0x152   : > { %2360 = vrot.lane.b32.xlu0 %v2017_v19, %s4769_s5  ;;  %v2062_v19 = vshll.u32 %v1933_v40, 16  ;;  %v2001_v50 = vor.u32 %v2000_v5, %v1997_v13  ;;  %v5757_v40 = vrot.slane %v2100_v46, 5 }
 0x153   : > { %v1643_v39 = vpop.permute.xlu2 %1642 }
 0x154   : > { %v1651_v9 = vpop.permute.xlu0 %1650  ;;  %1718 = vst.msk [vmem:[#allocation3 + $0x54] sm:$0xf] %vm1696_vm1, %v1643_v39  ;;  %v2064_v17 = vrot.slane %v2062_v19, 5  ;;  %v2002_v12 = vrot.slane %v2001_v50, 4  ;;  %v2220_v19 = vshll.u32 %v1953_v28, 16  ;;  %v2259_v50 = vshrl.u32 %v1958_v35, 16 }
 0x155   : > { %1853 = vrot.lane.b32.xlu1 %v1759_v55, %s4768_s4  ;;  %1722 = vst.msk [vmem:[#allocation3 + $0x64] sm:$0xf] %vm1696_vm1, %v1651_v9  ;;  %v5734_v55 = vrot.slane %v2124_v0, 5  ;;  %v2060_v9 = vrot.slane %v2059_v7, 4  ;;  %v2196_v7 = vshll.u32 %v5754_v31, 16 }
 0x156   : > { %v2261_v28 = vrot.slane %v2259_v50, 4 }
 0x157   : > { %v1641_v18 = vpop.permute.xlu1 %1640  ;;  %v2127_v59 = vsel %vm4922_vm11, %v2122_v38, %v5734_v55  ;;  %v2131_v0 = vor.u32 %v2130_v42, %v5734_v55  ;;  %v2104_v38 = vshrl.u32 %v5741_v56, 16  ;;  %v2163_v55 = vshrl.u32 %v1946_v21, 16  ;;  %v5780_v56 = vld [vmem:[#allocation2 + $0x70] sm:$0xf] }
 0x158   : > { %1717 = vst.msk [vmem:[#allocation3 + $0x50] sm:$0xf] %vm1696_vm1, %v1641_v18  ;;  %v2158_v18 = vshll.u32 %v1945_v8, 16  ;;  %v2166_v8 = vshll.u32 %v1946_v21, 16  ;;  %v2172_v42 = vshll.u32 %v5780_v56, 16 }
 0x159   : > { %1843 = vrot.lane.b32.xlu2 %v1754_v37, %s4768_s4  ;;  %v2065_v37 = vsel %vm4922_vm11, %v2060_v9, %v2064_v17  ;;  %v2132_v5 = vrot.slane %v2131_v0, 4  ;;  %v5775_v17 = vrot.slane %v2196_v7, 5  ;;  %v1962_v0 = vld [vmem:[#allocation2 + $0xac] sm:$0xf]  ;;  %v597_v7 = vrot.slane %v5661_v16, 4 }
 0x15a   : > { %2366 = vrot.lane.b32.xlu0 %v2055_v36, %s4769_s5  ;;  %v2155_v36 = vor.u32 %v2154_v34, %v5732_v10  ;;  %v2160_v45 = vrot.slane %v2158_v18, 5  ;;  %v2165_v18 = vrot.slane %v2163_v55, 4  ;;  %v5802_v11 = vrot.slane %v2172_v42, 5 }
 0x15b   : > { %v1649_v48 = vpop.permute.xlu2 %1648 }
 0x15c   : > { %v1657_v58 = vpop.permute.xlu0 %1656  ;;  %1721 = vst.msk [vmem:[#allocation3 + $0x60] sm:$0xf] %vm1696_vm1, %v1649_v48  ;;  %v2156_v52 = vrot.slane %v2155_v36, 4  ;;  %v2098_v48 = vrot.slane %v2097_v44, 4  ;;  %v1954_v36 = vld [vmem:[#allocation2 + $0x8c] sm:$0x1] }
 0x15d   : > { %2356 = vrot.lane.b32.xlu1 %v1993_v51, %s4769_s5  ;;  %1725 = vst.msk [vmem:[#allocation3 + $0x70] sm:$0xf] %vm1696_vm1, %v1657_v58  ;;  %v2034_v51 = vrot.slane %v2032_v20, 4  ;;  %v2192_v58 = vrot.slane %v2190_v49, 5  ;;  %v2136_v49 = vrot.slane %v2134_v14, 5 }
 0x15e   : > { %v2103_v34 = vsel %vm4922_vm11, %v2098_v48, %v5757_v40 }
 0x15f   : > { %v1647_v25 = vpop.permute.xlu1 %1646  ;;  %v2035_v24 = vor.u32 %v2034_v51, %v5716_v43  ;;  %v2007_v43 = vsel %vm4922_vm11, %v2002_v12, %v5667_v27  ;;  %v5777_v27 = vrot.slane %v2220_v19, 5  ;;  %v2137_v12 = vsel %vm4922_vm11, %v2132_v5, %v2136_v49 }
 0x160   : > { %1720 = vst.msk [vmem:[#allocation3 + $0x5c] sm:$0xf] %vm1696_vm1, %v1647_v25  ;;  %v2038_v25 = vshll.u32 %v1930_v54, 16 }
 0x161   : > { %1849 = vrot.lane.b32.xlu2 %v1757_v6, %s4768_s4  ;;  %v2193_v6 = vor.u32 %v2192_v58, %v2189_v23  ;;  %v2227_v51 = vor.u32 %v2226_v53, %v5777_v27  ;;  %v2200_v23 = vshrl.u32 %v5754_v31, 16 }
 0x162   : > { %2372 = vrot.lane.b32.xlu0 %v2089_v33, %s4769_s5  ;;  %v2161_v33 = vsel %vm4922_vm11, %v2156_v52, %v2160_v45  ;;  %v2040_v13 = vrot.slane %v2038_v25, 5  ;;  %v2230_v52 = vshll.u32 %v1954_v36, 16  ;;  %v5799_v25 = vld [vmem:[#allocation2 + $0xa0] sm:$0xf] }
 0x163   : > { %v1655_v39 = vpop.permute.xlu2 %1654  ;;  %v2194_v9 = vrot.slane %v2193_v6, 4  ;;  %v1943_v6 = vld [vmem:[#allocation2 + $0x60] sm:$0xf] }
 0x164   : > { %v1663_v32 = vpop.permute.xlu0 %1662  ;;  %1724 = vst.msk [vmem:[#allocation3 + $0x6c] sm:$0xf] %vm1696_vm1, %v1655_v39  ;;  %v2069_v39 = vrot.slane %v2067_v26, 4  ;;  %v2268_v26 = vshll.u32 %v5799_v25, 16  ;;  %v2139_v5 = vshrl.u32 %v1943_v6, 16  ;;  %v2142_v14 = vshll.u32 %v1943_v6, 16 }
 0x165   : > { %2362 = vrot.lane.b32.xlu1 %v2031_v61, %s4769_s5  ;;  %1728 = vst.msk [vmem:[#allocation3 + $0x7c] sm:$0xf] %vm1696_vm1, %v1663_v32  ;;  %v2070_v61 = vshll.u32 %v1934_v3, 16  ;;  %v2036_v32 = vrot.slane %v2035_v24, 4  ;;  %v2199_v46 = vsel %vm4922_vm11, %v2194_v9, %v5775_v17  ;;  %v1939_v3 = vld [vmem:[#allocation2 + $0x50] sm:$0x1] }
 0x166   : > { %v2232_v24 = vrot.slane %v2230_v52, 5  ;;  %v2110_v60 = vshll.u32 %v1939_v3, 16  ;;  %v5821_v36 = vrot.slane %v2268_v26, 5  ;;  %v2141_v49 = vrot.slane %v2139_v5, 4 }
 0x167   : > { %v1653_v15 = vpop.permute.xlu1 %1652  ;;  %v2072_v29 = vrot.slane %v2070_v61, 5  ;;  %v2041_v54 = vsel %vm4922_vm11, %v2036_v32, %v2040_v13  ;;  %v1955_v61 = vld [vmem:[#allocation2 + $0x90] sm:$0xf]  ;;  %v2292_v32 = vshll.u32 %v1962_v0, 16  ;;  %v2296_v13 = vshrl.u32 %v1962_v0, 16 }
 0x168   : > { %1723 = vst.msk [vmem:[#allocation3 + $0x68] sm:$0xf] %vm1696_vm1, %v1653_v15  ;;  %v2168_v15 = vrot.slane %v2166_v8, 5  ;;  %v1951_v8 = vld [vmem:[#allocation2 + $0x80] sm:$0x1]  ;;  %v2235_v53 = vshrl.u32 %v1955_v61, 16 }
 0x169   : > { %1855 = vrot.lane.b32.xlu2 %v1760_v47, %s4768_s4  ;;  %v2262_v47 = vshll.u32 %v1958_v35, 16  ;;  %v2073_v45 = vor.u32 %v2072_v29, %v2069_v39  ;;  %v2238_v35 = vshll.u32 %v1955_v61, 16  ;;  %v2206_v39 = vshll.u32 %v1951_v8, 16  ;;  %v1952_v61 = vld [vmem:[#allocation2 + $0x84] sm:$0xf]  ;;  %s4618_s4 = sshll.u32 %s4816_s16, 5 }
 0x16a   : > { %2378 = vrot.lane.b32.xlu0 %v2127_v59, %s4769_s5  ;;  %v286_v59 = vld [vmem:[#allocation2 + $0xc8] sm:$0x1]  ;;  %v2169_v58 = vor.u32 %v2168_v15, %v2165_v18  ;;  %v2112_v15 = vrot.slane %v2110_v60, 5  ;;  %v2144_v50 = vrot.slane %v2142_v14, 5  ;;  %v2272_v0 = vshrl.u32 %v5799_v25, 16 }
 0x16b   : > { %v1661_v30 = vpop.permute.xlu2 %1660  ;;  %v2264_v48 = vrot.slane %v2262_v47, 5  ;;  %v1963_v47 = vld [vmem:[#allocation2 + $0xb0] sm:$0x1]  ;;  %v2208_v42 = vrot.slane %v2206_v39, 5  ;;  %v1964_v14 = vld [vmem:[#allocation2 + $0xb4] sm:$0xf] }
 0x16c   : > { %v1798_v57 = vpop.permute.xlu0 %1797  ;;  %1727 = vst.msk [vmem:[#allocation3 + $0x78] sm:$0xf] %vm1696_vm1, %v1661_v30  ;;  %v2228_v30 = vrot.slane %v2227_v51, 4  ;;  %v2170_v21 = vrot.slane %v2169_v58, 4  ;;  %v2240_v51 = vrot.slane %v2238_v35, 5  ;;  %v2274_v8 = vrot.slane %v2272_v0, 4 }
 0x16d   : > { %2368 = vrot.lane.b32.xlu1 %v2065_v37, %s4769_s5  ;;  %1892 = vst.msk [vmem:[#allocation3 + $0x8] sm:$0xf] %vm1889_vm0, %v1798_v57  ;;  %v287_v37 = vsel %vm4861_vm6, 0, %v286_v59  ;;  %v2106_v57 = vrot.slane %v2104_v38, 4  ;;  %v5825_v59 = vrot.slane %v2292_v32, 5 }
 0x16e   : > { %288 = vst [vmem:[#allocation2 + $0xc8] sm:$0x1] %v287_v37  ;;  %v2233_v55 = vsel %vm4922_vm11, %v2228_v30, %v2232_v24  ;;  %v2175_v9 = vsel %vm4922_vm11, %v2170_v21, %v5802_v11  ;;  %v1967_v37 = vld [vmem:[#allocation2 + $0xc0] sm:$0xf]  ;;  %v2176_v30 = vshrl.u32 %v5780_v56, 16 }
 0x16f   : > { %v1659_v2 = vpop.permute.xlu1 %1658  ;;  %v2107_v38 = vor.u32 %v2106_v57, %v5757_v40  ;;  %v2331_v57 = vshrl.u32 %v1967_v37, 16 }
 0x170   : > { %1726 = vst.msk [vmem:[#allocation3 + $0x74] sm:$0xf] %vm1696_vm1, %v1659_v2  ;;  %v2202_v2 = vrot.slane %v2200_v23, 4  ;;  %v2178_v25 = vrot.slane %v2176_v30, 4 }
 0x171   : > { %2358 = vrot.lane.b32.xlu2 %v2007_v43, %s4769_s5  ;;  %v2265_v43 = vor.u32 %v2264_v48, %v2261_v28  ;;  %v2108_v18 = vrot.slane %v2107_v38, 4  ;;  %v2334_v28 = vshll.u32 %v1967_v37, 16  ;;  %v2145_v48 = vor.u32 %v2144_v50, %v2141_v49  ;;  %v1948_v38 = vld [vmem:[#allocation2 + $0x74] sm:$0x1] }
 0x172   : > { %2384 = vrot.lane.b32.xlu0 %v2161_v33, %s4769_s5  ;;  %v2074_v33 = vrot.slane %v2073_v45, 4  ;;  %v2203_v40 = vor.u32 %v2202_v2, %v5775_v17  ;;  %v2333_v6 = vrot.slane %v2331_v57, 4  ;;  %v2182_v39 = vshll.u32 %v1948_v38, 16  ;;  %v2485_v57 = vld [vmem:[#allocation2 + $0x14] sm:$0x1] }
 0x173   : > { %v1796_v41 = vpop.permute.xlu2 %1795  ;;  %v2266_v29 = vrot.slane %v2265_v43, 4  ;;  %v2113_v24 = vsel %vm4922_vm11, %v2108_v18, %v2112_v15  ;;  %v5849_v43 = vld [vmem:[#allocation2 + $0xc4] sm:$0xf]  ;;  %v2307_v18 = vshrl.u32 %v1964_v14, 16  ;;  %v2310_v15 = vshll.u32 %v1964_v14, 16 }
 0x174   : > { %v1804_v20 = vpop.permute.xlu0 %1803  ;;  %1891 = vst.msk [vmem:[#allocation3 + $0x4] sm:$0xf] %vm1889_vm0, %v1796_v41  ;;  %v2079_v16 = vsel %vm4922_vm11, %v2074_v33, %v5697_v63  ;;  %v2298_v41 = vrot.slane %v2296_v13, 4  ;;  %v2204_v45 = vrot.slane %v2203_v40, 4  ;;  %v2340_v5 = vshll.u32 %v5849_v43, 16 }
 0x175   : > { %2374 = vrot.lane.b32.xlu1 %v2103_v34, %s4769_s5  ;;  %1895 = vst.msk [vmem:[#allocation3 + $0x14] sm:$0xf] %vm1889_vm0, %v1804_v20  ;;  %v758_v20 = vld [vmem:[#allocation2 + $0xc8] sm:$0x1]  ;;  %v2214_v40 = vshll.u32 %v1952_v61, 16  ;;  %v2184_v37 = vrot.slane %v2182_v39, 5 }
 0x176   : > { %v759_v63 = vsel %vm4846_vm3, %v597_v7, %v758_v20  ;;  %v2299_v58 = vor.u32 %v2298_v41, %v5825_v59  ;;  %v2336_v7 = vrot.slane %v2334_v28, 5  ;;  %v2179_v20 = vor.u32 %v2178_v25, %v5802_v11 }
 0x177   : > { %v1794_v44 = vpop.permute.xlu1 %1793  ;;  %760 = vst [vmem:[#allocation2 + $0xc8] sm:$0x1] %v759_v63  ;;  %v2216_v50 = vrot.slane %v2214_v40, 5  ;;  %v2584_v0 = vrot.slane %v2485_v57, 5 }
 0x178   : > { %1890 = vst.msk [vmem:[#allocation3] sm:$0xf] %vm1889_vm0, %v1794_v44  ;;  %v5830_v44 = vld [vmem:[#allocation2 + $0x94] sm:$0xf]  ;;  %v2300_v21 = vrot.slane %v2299_v58, 4  ;;  %v2180_v11 = vrot.slane %v2179_v20, 4 }
 0x179   : > { %2364 = vrot.lane.b32.xlu2 %v2041_v54, %s4769_s5  ;;  %v2271_v54 = vsel %vm4922_vm11, %v2266_v29, %v5821_v36  ;;  %v2244_v3 = vshll.u32 %v5830_v44, 16  ;;  %v2275_v29 = vor.u32 %v2274_v8, %v5821_v36  ;;  %v2248_v28 = vshrl.u32 %v5830_v44, 16  ;;  %v5904_v8 = vld [vmem:[#allocation2 + $0x28] sm:$0xf] }
 0x17a   : > { %2390 = vrot.lane.b32.xlu0 %v2199_v46, %s4769_s5  ;;  %v2237_v46 = vrot.slane %v2235_v53, 4 }
 0x17b   : > { %v1802_v19 = vpop.permute.xlu2 %1801  ;;  %v5847_v60 = vrot.slane %v2244_v3, 5 }
 0x17c   : > { %v1810_v31 = vpop.permute.xlu0 %1809  ;;  %1894 = vst.msk [vmem:[#allocation3 + $0x10] sm:$0xf] %vm1889_vm0, %v1802_v19  ;;  %v2241_v33 = vor.u32 %v2240_v51, %v2237_v46  ;;  %v2146_v19 = vrot.slane %v2145_v48, 4  ;;  %v2276_v46 = vrot.slane %v2275_v29, 4  ;;  %v2185_v48 = vsel %vm4922_vm11, %v2180_v11, %v2184_v37 }
 0x17d   : > { %2380 = vrot.lane.b32.xlu1 %v2137_v12, %s4769_s5  ;;  %1898 = vst.msk [vmem:[#allocation3 + $0x20] sm:$0xf] %vm1889_vm0, %v1810_v31  ;;  %v2302_v12 = vshll.u32 %v1963_v47, 16  ;;  %v2209_v31 = vsel %vm4922_vm11, %v2204_v45, %v2208_v42  ;;  %v5870_v47 = vld [vmem:[#allocation2 + $0x10] sm:$0xf]  ;;  %v2309_v45 = vrot.slane %v2307_v18, 4 }
 0x17e   : > { %v2242_v26 = vrot.slane %v2241_v33, 4  ;;  %v2151_v53 = vsel %vm4922_vm11, %v2146_v19, %v5732_v10  ;;  %v2312_v42 = vrot.slane %v2310_v15, 5  ;;  %v2581_v58 = vrot.slane %v5870_v47, 5 }
 0x17f   : > { %v1800_v34 = vpop.permute.xlu1 %1799  ;;  %v2304_v2 = vrot.slane %v2302_v12, 5 }
 0x180   : > { %1893 = vst.msk [vmem:[#allocation3 + $0xc] sm:$0xf] %vm1889_vm0, %v1800_v34  ;;  %v2247_v35 = vsel %vm4922_vm11, %v2242_v26, %v5847_v60  ;;  %v2313_v33 = vor.u32 %v2312_v42, %v2309_v45  ;;  %v1961_v26 = vld [vmem:[#allocation2 + $0xa8] sm:$0xf]  ;;  %v5929_v45 = vld [vmem:[#allocation2 + $0x1c] sm:$0xf] }
 0x181   : > { %2370 = vrot.lane.b32.xlu2 %v2079_v16, %s4769_s5  ;;  %v2305_v13 = vsel %vm4922_vm11, %v2300_v21, %v2304_v2  ;;  %v2337_v16 = vor.u32 %v2336_v7, %v2333_v6  ;;  %v2250_v6 = vrot.slane %v2248_v28, 4 }
 0x182   : > { %2396 = vrot.lane.b32.xlu0 %v2233_v55, %s4769_s5  ;;  %v1960_v55 = vld [vmem:[#allocation2 + $0xa4] sm:$0x1]  ;;  %v2314_v19 = vrot.slane %v2313_v33, 4  ;;  %v2498_v33 = vld [vmem:[#allocation2 + $0x48] sm:$0xe] }
 0x183   : > { %v1808_v52 = vpop.permute.xlu2 %1807  ;;  %v2278_v63 = vshll.u32 %v1960_v55, 16  ;;  %v2338_v41 = vrot.slane %v2337_v16, 4  ;;  %v2489_v55 = vld [vmem:[#allocation2 + $0x24] sm:$0xe]  ;;  %v2283_v16 = vshrl.u32 %v1961_v26, 16 }
 0x184   : > { %v1816_v17 = vpop.permute.xlu0 %1815  ;;  %1897 = vst.msk [vmem:[#allocation3 + $0x1c] sm:$0xf] %vm1889_vm0, %v1808_v52  ;;  %v5874_v52 = vld [vmem:[#allocation2 + $0xb8] sm:$0xf] }
 0x185   : > { %2386 = vrot.lane.b32.xlu1 %v2175_v9, %s4769_s5  ;;  %1901 = vst.msk [vmem:[#allocation3 + $0x2c] sm:$0xf] %vm1889_vm0, %v1816_v17  ;;  %v2211_v9 = vshrl.u32 %v1952_v61, 16  ;;  %v5867_v17 = vrot.slane %v2340_v5, 5  ;;  %v2280_v51 = vrot.slane %v2278_v63, 5  ;;  %v2316_v3 = vshll.u32 %v5874_v52, 16 }
 0x186   : > { %v2286_v5 = vshll.u32 %v1961_v26, 16  ;;  %v2285_v29 = vrot.slane %v2283_v16, 4  ;;  %v2320_v11 = vshrl.u32 %v5874_v52, 16  ;;  %v5954_v26 = vld [vmem:[#allocation2 + $0x58] sm:$0xf] }
 0x187   : > { %v1806_v23 = vpop.permute.xlu1 %1805  ;;  %v2213_v49 = vrot.slane %v2211_v9, 4  ;;  %v2281_v30 = vsel %vm4922_vm11, %v2276_v46, %v2280_v51  ;;  %v5894_v2 = vrot.slane %v2316_v3, 5  ;;  %v2486_v51 = vld [vmem:[#allocation2 + $0x18] sm:$0xe]  ;;  %v1966_v3 = vld [vmem:[#allocation2 + $0xbc] sm:$0x1] }
 0x188   : > { %1896 = vst.msk [vmem:[#allocation3 + $0x18] sm:$0xf] %vm1889_vm0, %v1806_v23  ;;  %v2343_v23 = vsel %vm4922_vm11, %v2338_v41, %v5867_v17  ;;  %v2288_v63 = vrot.slane %v2286_v5, 5  ;;  %v4475_v28 = vrot.slane %v2486_v51, 9  ;;  %v2483_v5 = vld [vmem:[#allocation2 + $0xc] sm:$0xe] }
 0x189   : > { %2376 = vrot.lane.b32.xlu2 %v2113_v24, %s4769_s5  ;;  %v2217_v12 = vor.u32 %v2216_v50, %v2213_v49  ;;  %v2344_v24 = vshrl.u32 %v5849_v43, 16  ;;  %v2319_v14 = vsel %vm4922_vm11, %v2314_v19, %v5894_v2  ;;  %v2494_v50 = vld [vmem:[#allocation2 + $0x38] sm:$0x1]  ;;  %v4479_v19 = vrot.slane %v2498_v33, 9  ;;  %v5988_v51 = vld [vmem:[#allocation2 + $0x7c] sm:$0xf] }
 0x18a   : > { %2402 = vrot.lane.b32.xlu0 %v2271_v54, %s4769_s5 }
 0x18b   : > { %v1814_v34 = vpop.permute.xlu2 %1813  ;;  %v2218_v44 = vrot.slane %v2217_v12, 4  ;;  %v2346_v43 = vrot.slane %v2344_v24, 4  ;;  %v2322_v12 = vrot.slane %v2320_v11, 4  ;;  %v2500_v11 = vld [vmem:[#allocation2 + $0x50] sm:$0x1] }
 0x18c   : > { %v1822_v56 = vpop.permute.xlu0 %1821  ;;  %1900 = vst.msk [vmem:[#allocation3 + $0x28] sm:$0xf] %vm1889_vm0, %v1814_v34  ;;  %v1969_v34 = vld [vmem:[#allocation2 + $0xc8] sm:$0x1] }
 0x18d   : > { %2392 = vrot.lane.b32.xlu1 %v2209_v31, %s4769_s5  ;;  %1904 = vst.msk [vmem:[#allocation3 + $0x38] sm:$0xf] %vm1889_vm0, %v1822_v56  ;;  %v2583_v31 = vrot.slane %v2581_v58, 4  ;;  %v1957_v56 = vld [vmem:[#allocation2 + $0x98] sm:$0x1]  ;;  %v2223_v38 = vsel %vm4922_vm11, %v2218_v44, %v5777_v27  ;;  %v2347_v9 = vor.u32 %v2346_v43, %v5867_v17  ;;  %v2350_v40 = vshll.u32 %v1969_v34, 16 }
 0x18e   : > { %v2595_v27 = vrot.slane %v5904_v8, 5  ;;  %v2323_v44 = vor.u32 %v2322_v12, %v5894_v2  ;;  %v2623_v8 = vrot.slane %v5954_v26, 5 }
 0x18f   : > { %v1812_v32 = vpop.permute.xlu1 %1811  ;;  %v2585_v61 = vsel %vm5319_vm14, %v2583_v31, %v2584_v0  ;;  %v2348_v15 = vrot.slane %v2347_v9, 4  ;;  %v2352_v41 = vrot.slane %v2350_v40, 5  ;;  %v5941_v31 = vld [vmem:[#allocation2 + $0x4c] sm:$0xf]  ;;  %v5968_v9 = vld [vmem:[#allocation2 + $0x40] sm:$0xf] }
 0x190   : > { %1899 = vst.msk [vmem:[#allocation3 + $0x24] sm:$0xf] %vm1889_vm0, %v1812_v32  ;;  %v2251_v32 = vor.u32 %v2250_v6, %v5847_v60  ;;  %v5914_v60 = vld [vmem:[#allocation2 + $0x34] sm:$0xf]  ;;  %v2625_v40 = vrot.slane %v2623_v8, 4 }
 0x191   : > { %2382 = vrot.lane.b32.xlu2 %v2151_v53, %s4769_s5  ;;  %v4476_v53 = vrot.slane %v2489_v55, 9  ;;  %v2602_v49 = vrot.slane %v5914_v60, 5  ;;  %v2353_v46 = vsel %vm4922_vm11, %v2348_v15, %v2352_v41  ;;  %v2507_v15 = vld [vmem:[#allocation2 + $0x6c] sm:$0xe]  ;;  %v2508_v41 = vld [vmem:[#allocation2 + $0x70] sm:$0xf] }
 0x192   : > { %2408 = vrot.lane.b32.xlu0 %v2305_v13, %s4769_s5  ;;  %v2254_v13 = vshll.u32 %v1957_v56, 16  ;;  %v2252_v20 = vrot.slane %v2251_v32, 4  ;;  %v2616_v56 = vrot.slane %v5941_v31, 5  ;;  %v2503_v32 = vld [vmem:[#allocation2 + $0x5c] sm:$0x1] }
 0x193   : > { %v1820_v36 = vpop.permute.xlu2 %1819  ;;  %v2604_v42 = vrot.slane %v2602_v49, 4 }
 0x194   : > { %v1828_v10 = vpop.permute.xlu0 %1827  ;;  %1903 = vst.msk [vmem:[#allocation3 + $0x34] sm:$0xf] %vm1889_vm0, %v1820_v36  ;;  %v2256_v39 = vrot.slane %v2254_v13, 5  ;;  %v2289_v36 = vor.u32 %v2288_v63, %v2285_v29  ;;  %v2617_v55 = vsel %vm5319_vm14, %v4479_v19, %v2616_v56  ;;  %v2609_v29 = vrot.slane %v5968_v9, 5 }
 0x195   : > { %2398 = vrot.lane.b32.xlu1 %v2247_v35, %s4769_s5  ;;  %1907 = vst.msk [vmem:[#allocation3 + $0x44] sm:$0xf] %vm1889_vm0, %v1828_v10  ;;  %v2596_v10 = vsel %vm5319_vm14, %v4476_v53, %v2595_v27  ;;  %v2626_v53 = vrot.slane %v2503_v32, 5 }
 0x196   : > { %v2257_v37 = vsel %vm4922_vm11, %v2252_v20, %v2256_v39  ;;  %v2290_v52 = vrot.slane %v2289_v36, 4  ;;  %v2637_v36 = vrot.slane %v2508_v41, 5  ;;  %v2611_v60 = vrot.slane %v2609_v29, 4 }
 0x197   : > { %v1818_v54 = vpop.permute.xlu1 %1817 }
 0x198   : > { %1902 = vst.msk [vmem:[#allocation3 + $0x30] sm:$0xf] %vm1889_vm0, %v1818_v54  ;;  %v2605_v54 = vrot.slane %v2494_v50, 5  ;;  %v2295_v0 = vsel %vm4922_vm11, %v2290_v52, %v5825_v59  ;;  %v2324_v59 = vrot.slane %v2323_v44, 4  ;;  %v2488_v50 = vld [vmem:[#allocation2 + $0x20] sm:$0x1] }
 0x199   : > { %2388 = vrot.lane.b32.xlu2 %v2185_v48, %s4769_s5  ;;  %v2588_v48 = vrot.slane %v5929_v45, 5 }
 0x19a   : > { %2414 = vrot.lane.b32.xlu0 %v2343_v23, %s4769_s5  ;;  %v2606_v24 = vsel %vm5319_vm14, %v2604_v42, %v2605_v54  ;;  %v2618_v54 = vrot.slane %v2616_v56, 4 }
 0x19b   : > { %v1826_v7 = vpop.permute.xlu2 %1825  ;;  %v2589_v6 = vsel %vm5319_vm14, %v4475_v28, %v2588_v48  ;;  %v2590_v47 = vrot.slane %v2588_v48, 4  ;;  %v2512_v28 = vld [vmem:[#allocation2 + $0x80] sm:$0x1] }
 0x19c   : > { %v1834_v21 = vpop.permute.xlu0 %1833  ;;  %1906 = vst.msk [vmem:[#allocation3 + $0x40] sm:$0xf] %vm1889_vm0, %v1826_v7  ;;  %v2491_v7 = vld [vmem:[#allocation2 + $0x2c] sm:$0x1]  ;;  %v2647_v31 = vrot.slane %v2512_v28, 5 }
 0x19d   : > { %2404 = vrot.lane.b32.xlu1 %v2281_v30, %s4769_s5  ;;  %1910 = vst.msk [vmem:[#allocation3 + $0x50] sm:$0xf] %vm1889_vm0, %v1834_v21  ;;  %v2326_v21 = vshll.u32 %v1966_v3, 16  ;;  %v2598_v34 = vrot.slane %v2491_v7, 5  ;;  %v2492_v3 = vld [vmem:[#allocation2 + $0x30] sm:$0xe] }
 0x19e   : > { %v4477_v44 = vrot.slane %v2492_v3, 9 }
 0x19f   : > { %v1824_v25 = vpop.permute.xlu1 %1823  ;;  %v2328_v2 = vrot.slane %v2326_v21, 5 }
 0x1a0   : > { %1905 = vst.msk [vmem:[#allocation3 + $0x3c] sm:$0xf] %vm1889_vm0, %v1824_v25 }
 0x1a1   : > { %2394 = vrot.lane.b32.xlu2 %v2223_v38, %s4769_s5  ;;  %v2329_v13 = vsel %vm4922_vm11, %v2324_v59, %v2328_v2  ;;  %v2517_v59 = vld [vmem:[#allocation2 + $0x94] sm:$0xf]  ;;  %v2603_v2 = vsel %vm5319_vm14, %v4477_v44, %v2602_v49 }
 0x1a2   : > { %2693 = vrot.lane.b32.xlu0 %v2585_v61, %s4770_s6  ;;  %v2597_v61 = vrot.slane %v2595_v27, 4 }
 0x1a3   : > { %v1832_v18 = vpop.permute.xlu2 %1831 }
 0x1a4   : > { %v1840_v35 = vpop.permute.xlu0 %1839  ;;  %1909 = vst.msk [vmem:[#allocation3 + $0x4c] sm:$0xf] %vm1889_vm0, %v1832_v18  ;;  %v2599_v16 = vsel %vm5319_vm14, %v2597_v61, %v2598_v34  ;;  %v2627_v18 = vsel %vm5319_vm14, %v2625_v40, %v2626_v53  ;;  %v2497_v61 = vld [vmem:[#allocation2 + $0x44] sm:$0x1]  ;;  %v2509_v34 = vld [vmem:[#allocation2 + $0x74] sm:$0x1] }
 0x1a5   : > { %2410 = vrot.lane.b32.xlu1 %v2319_v14, %s4769_s5  ;;  %1913 = vst.msk [vmem:[#allocation3 + $0x5c] sm:$0xf] %vm1889_vm0, %v1840_v35  ;;  %v2495_v14 = vld [vmem:[#allocation2 + $0x3c] sm:$0xe]  ;;  %v4474_v35 = vrot.slane %v2483_v5, 9  ;;  %v2639_v5 = vrot.slane %v2637_v36, 4 }
 0x1a6   : > { %v4478_v39 = vrot.slane %v2495_v14, 9  ;;  %v2640_v14 = vrot.slane %v2509_v34, 5 }
 0x1a7   : > { %v1830_v17 = vpop.permute.xlu1 %1829 }
 0x1a8   : > { %1908 = vst.msk [vmem:[#allocation3 + $0x48] sm:$0xf] %vm1889_vm0, %v1830_v17  ;;  %v2582_v17 = vsel %vm5319_vm14, %v4474_v35, %v2581_v58  ;;  %v2591_v58 = vrot.slane %v2488_v50, 5 }
 0x1a9   : > { %2400 = vrot.lane.b32.xlu2 %v2257_v37, %s4769_s5  ;;  %v4482_v37 = vrot.slane %v2507_v15, 9 }
 0x1aa   : > { %2699 = vrot.lane.b32.xlu0 %v2596_v10, %s4770_s6  ;;  %v2610_v10 = vsel %vm5319_vm14, %v4478_v39, %v2609_v29  ;;  %v2592_v45 = vsel %vm5319_vm14, %v2590_v47, %v2591_v58  ;;  %v2501_v39 = vld [vmem:[#allocation2 + $0x54] sm:$0xe]  ;;  %v2513_v29 = vld [vmem:[#allocation2 + $0x84] sm:$0xe]  ;;  %v2526_v47 = vld [vmem:[#allocation2 + $0xb8] sm:$0xf] }
 0x1ab   : > { %v1838_v57 = vpop.permute.xlu2 %1837  ;;  %v2638_v12 = vsel %vm5319_vm14, %v4482_v37, %v2637_v36  ;;  %v4484_v50 = vrot.slane %v2513_v29, 9  ;;  %v2519_v29 = vld [vmem:[#allocation2 + $0x9c] sm:$0xe] }
 0x1ac   : > { %v1846_v23 = vpop.permute.xlu0 %1845  ;;  %1912 = vst.msk [vmem:[#allocation3 + $0x58] sm:$0xf] %vm1889_vm0, %v1838_v57  ;;  %v2644_v57 = vrot.slane %v5988_v51, 5 }
 0x1ad   : > { %2416 = vrot.lane.b32.xlu1 %v2353_v46, %s4769_s5  ;;  %1916 = vst.msk [vmem:[#allocation3 + $0x68] sm:$0xf] %vm1889_vm0, %v1846_v23  ;;  %v2619_v23 = vrot.slane %v2500_v11, 5 }
 0x1ae   : > { %v2646_v33 = vrot.slane %v2644_v57, 4 }
 0x1af   : > { %v1836_v30 = vpop.permute.xlu1 %1835  ;;  %v2620_v48 = vsel %vm5319_vm14, %v2618_v54, %v2619_v23  ;;  %v2506_v54 = vld [vmem:[#allocation2 + $0x68] sm:$0x1]  ;;  %v2518_v23 = vld [vmem:[#allocation2 + $0x98] sm:$0x1] }
 0x1b0   : > { %1911 = vst.msk [vmem:[#allocation3 + $0x54] sm:$0xf] %vm1889_vm0, %v1836_v30  ;;  %v2504_v30 = vld [vmem:[#allocation2 + $0x60] sm:$0xe]  ;;  %v2648_v56 = vsel %vm5319_vm14, %v2646_v33, %v2647_v31 }
 0x1b1   : > { %2406 = vrot.lane.b32.xlu2 %v2295_v0, %s4769_s5 }
 0x1b2   : > { %2705 = vrot.lane.b32.xlu0 %v2606_v24, %s4770_s6  ;;  %v6004_v24 = vld [vmem:[#allocation2 + $0x64] sm:$0xf] }
 0x1b3   : > { %v1844_v25 = vpop.permute.xlu2 %1843  ;;  %v2630_v7 = vrot.slane %v6004_v24, 5 }
 0x1b4   : > { %v1852_v43 = vpop.permute.xlu0 %1851  ;;  %1915 = vst.msk [vmem:[#allocation3 + $0x64] sm:$0xf] %vm1889_vm0, %v1844_v25 }
 0x1b5   : > { %2695 = vrot.lane.b32.xlu1 %v2589_v6, %s4770_s6  ;;  %1919 = vst.msk [vmem:[#allocation3 + $0x74] sm:$0xf] %vm1889_vm0, %v1852_v43  ;;  %v4481_v6 = vrot.slane %v2504_v30, 9  ;;  %v2516_v43 = vld [vmem:[#allocation2 + $0x90] sm:$0xe]  ;;  %v2632_v26 = vrot.slane %v2630_v7, 4 }
 0x1b6   : > { %v2661_v30 = vrot.slane %v2518_v23, 5 }
 0x1b7   : > { %v1842_v38 = vpop.permute.xlu1 %1841  ;;  %v2631_v25 = vsel %vm5319_vm14, %v4481_v6, %v2630_v7  ;;  %v2510_v6 = vld [vmem:[#allocation2 + $0x78] sm:$0xe]  ;;  %v2522_v7 = vld [vmem:[#allocation2 + $0xa8] sm:$0xe] }
 0x1b8   : > { %1914 = vst.msk [vmem:[#allocation3 + $0x60] sm:$0xf] %vm1889_vm0, %v1842_v38  ;;  %v4485_v38 = vrot.slane %v2516_v43, 9 }
 0x1b9   : > { %2412 = vrot.lane.b32.xlu2 %v2329_v13, %s4769_s5  ;;  %v6024_v13 = vld [vmem:[#allocation2 + $0xa0] sm:$0xf] }
 0x1ba   : > { %2711 = vrot.lane.b32.xlu0 %v2617_v55, %s4770_s6  ;;  %v2658_v55 = vrot.slane %v2517_v59, 5  ;;  %v2665_v53 = vrot.slane %v6024_v13, 5 }
 0x1bb   : > { %v1850_v20 = vpop.permute.xlu2 %1849 }
 0x1bc   : > { %v2355_v27 = vpop.permute.xlu0 %2354  ;;  %1918 = vst.msk [vmem:[#allocation3 + $0x70] sm:$0xf] %vm1889_vm0, %v1850_v20  ;;  %v2659_v40 = vsel %vm5319_vm14, %v4485_v38, %v2658_v55  ;;  %v2641_v20 = vsel %vm5319_vm14, %v2639_v5, %v2640_v14  ;;  %v2660_v3 = vrot.slane %v2658_v55, 4 }
 0x1bd   : > { %2701 = vrot.lane.b32.xlu1 %v2599_v16, %s4770_s6  ;;  %2451 = vst.msk [vmem:[#allocation3] sm:$0xf] %vm2450_vm2, %v2355_v27  ;;  %v2612_v16 = vrot.slane %v2497_v61, 5  ;;  %v2521_v27 = vld [vmem:[#allocation2 + $0xa4] sm:$0x1]  ;;  %v4487_v61 = vrot.slane %v2522_v7, 9 }
 0x1be   : > { %v2668_v15 = vrot.slane %v2521_v27, 5 }
 0x1bf   : > { %v1848_v63 = vpop.permute.xlu1 %1847  ;;  %v2613_v35 = vsel %vm5319_vm14, %v2611_v60, %v2612_v16  ;;  %v2515_v16 = vld [vmem:[#allocation2 + $0x8c] sm:$0x1] }
 0x1c0   : > { %1917 = vst.msk [vmem:[#allocation3 + $0x6c] sm:$0xf] %vm1889_vm0, %v1848_v63  ;;  %v6038_v63 = vld [vmem:[#allocation2 + $0x88] sm:$0xf] }
 0x1c1   : > { %2691 = vrot.lane.b32.xlu2 %v2582_v17, %s4770_s6  ;;  %v4480_v17 = vrot.slane %v2501_v39, 9  ;;  %v2651_v11 = vrot.slane %v6038_v63, 5 }
 0x1c2   : > { %2717 = vrot.lane.b32.xlu0 %v2627_v18, %s4770_s6  ;;  %v2667_v18 = vrot.slane %v2665_v53, 4 }
 0x1c3   : > { %v1856_v42 = vpop.permute.xlu2 %1855  ;;  %v2624_v58 = vsel %vm5319_vm14, %v4480_v17, %v2623_v8  ;;  %v2653_v14 = vrot.slane %v2651_v11, 4  ;;  %v2826_v17 = vld [vmem:[#allocation2 + $0x34] sm:$0xf] }
 0x1c4   : > { %v2361_v46 = vpop.permute.xlu0 %2360  ;;  %1921 = vst.msk [vmem:[#allocation3 + $0x7c] sm:$0xf] %vm1889_vm0, %v1856_v42  ;;  %v2669_v36 = vsel %vm5319_vm14, %v2667_v18, %v2668_v15  ;;  %v2652_v42 = vsel %vm5319_vm14, %v4484_v50, %v2651_v11  ;;  %v4486_v18 = vrot.slane %v2519_v29, 9  ;;  %v2821_v50 = vld [vmem:[#allocation2 + $0x18] sm:$0xf] }
 0x1c5   : > { %2707 = vrot.lane.b32.xlu1 %v2610_v10, %s4770_s6  ;;  %2454 = vst.msk [vmem:[#allocation3 + $0xc] sm:$0xf] %vm2450_vm2, %v2361_v46  ;;  %v2525_v46 = vld [vmem:[#allocation2 + $0xb4] sm:$0xe]  ;;  %v2524_v11 = vld [vmem:[#allocation2 + $0xb0] sm:$0x1] }
 0x1c7   : > { %v1854_v52 = vpop.permute.xlu1 %1853 }
 0x1c8   : > { %1920 = vst.msk [vmem:[#allocation3 + $0x78] sm:$0xf] %vm1889_vm0, %v1854_v52  ;;  %v4488_v52 = vrot.slane %v2525_v46, 9 }
 0x1c9   : > { %2697 = vrot.lane.b32.xlu2 %v2592_v45, %s4770_s6  ;;  %v6058_v45 = vld [vmem:[#allocation2 + $0xc4] sm:$0xf] }
 0x1ca   : > { %2723 = vrot.lane.b32.xlu0 %v2638_v12, %s4770_s6  ;;  %v2679_v12 = vrot.slane %v2526_v47, 5  ;;  %v2686_v31 = vrot.slane %v6058_v45, 5  ;;  %v2675_v47 = vrot.slane %v2524_v11, 5 }
 0x1cb   : > { %v2359_v21 = vpop.permute.xlu2 %2358 }
 0x1cc   : > { %v2367_v0 = vpop.permute.xlu0 %2366  ;;  %2453 = vst.msk [vmem:[#allocation3 + $0x8] sm:$0xf] %vm2450_vm2, %v2359_v21  ;;  %v2680_v33 = vsel %vm5319_vm14, %v4488_v52, %v2679_v12  ;;  %v2662_v21 = vsel %vm5319_vm14, %v2660_v3, %v2661_v30  ;;  %v2824_v52 = vld [vmem:[#allocation2 + $0x28] sm:$0xf]  ;;  %v3051_v3 = vld [vmem:[#allocation2 + $0xac] sm:$0xf] }
 0x1cd   : > { %2713 = vrot.lane.b32.xlu1 %v2620_v48, %s4770_s6  ;;  %2457 = vst.msk [vmem:[#allocation3 + $0x18] sm:$0xf] %vm2450_vm2, %v2367_v0  ;;  %v2633_v48 = vrot.slane %v2506_v54, 5  ;;  %v2530_v0 = vld [vmem:[#allocation2 + $0xc8] sm:$0x1]  ;;  %v3364_v7 = vshrl.u32 %v3051_v3, 16 }
 0x1ce   : > { %v2689_v43 = vrot.slane %v2530_v0, 5 }
 0x1cf   : > { %v2357_v19 = vpop.permute.xlu1 %2356  ;;  %v2634_v44 = vsel %vm5319_vm14, %v2632_v26, %v2633_v48 }
 0x1d0   : > { %2452 = vst.msk [vmem:[#allocation3 + $0x4] sm:$0xf] %vm2450_vm2, %v2357_v19  ;;  %v2523_v19 = vld [vmem:[#allocation2 + $0xac] sm:$0xf] }
 0x1d1   : > { %2703 = vrot.lane.b32.xlu2 %v2603_v2, %s4770_s6  ;;  %v4483_v2 = vrot.slane %v2510_v6, 9  ;;  %v2672_v34 = vrot.slane %v2523_v19, 5  ;;  %v3360_v6 = vshll.u32 %v3051_v3, 16 }
 0x1d2   : > { %2729 = vrot.lane.b32.xlu0 %v2648_v56, %s4770_s6  ;;  %v2688_v56 = vrot.slane %v2686_v31, 4 }
 0x1d3   : > { %v2365_v49 = vpop.permute.xlu2 %2364  ;;  %v2673_v60 = vsel %vm5319_vm14, %v4487_v61, %v2672_v34  ;;  %v2674_v46 = vrot.slane %v2672_v34, 4  ;;  %v3052_v34 = vld [vmem:[#allocation2 + $0xb0] sm:$0x1] }
 0x1d4   : > { %v2373_v32 = vpop.permute.xlu0 %2372  ;;  %2456 = vst.msk [vmem:[#allocation3 + $0x14] sm:$0xf] %vm2450_vm2, %v2365_v49  ;;  %v2690_v55 = vsel %vm5319_vm14, %v2688_v56, %v2689_v43  ;;  %v2527_v49 = vld [vmem:[#allocation2 + $0xbc] sm:$0x1] }
 0x1d5   : > { %2719 = vrot.lane.b32.xlu1 %v2631_v25, %s4770_s6  ;;  %2460 = vst.msk [vmem:[#allocation3 + $0x24] sm:$0xf] %vm2450_vm2, %v2373_v32  ;;  %v2645_v32 = vsel %vm5319_vm14, %v4483_v2, %v2644_v57  ;;  %v2682_v27 = vrot.slane %v2527_v49, 5  ;;  %v2676_v23 = vsel %vm5319_vm14, %v2674_v46, %v2675_v47  ;;  %v2827_v56 = vld [vmem:[#allocation2 + $0x3c] sm:$0xf]  ;;  %v6126_v2 = vrot.slane %v3360_v6, 5 }
 0x1d6   : > { %v3016_v47 = vld [vmem:[#allocation2 + $0x20] sm:$0x1] }
 0x1d7   : > { %v2363_v9 = vpop.permute.xlu1 %2362 }
 0x1d8   : > { %2455 = vst.msk [vmem:[#allocation3 + $0x10] sm:$0xf] %vm2450_vm2, %v2363_v9  ;;  %v2654_v9 = vrot.slane %v2515_v16, 5  ;;  %v2830_v16 = vld [vmem:[#allocation2 + $0x4c] sm:$0xf] }
 0x1d9   : > { %2709 = vrot.lane.b32.xlu2 %v2613_v35, %s4770_s6  ;;  %v2823_v35 = vld [vmem:[#allocation2 + $0x24] sm:$0xf] }
 0x1da   : > { %2735 = vrot.lane.b32.xlu0 %v2659_v40, %s4770_s6  ;;  %v2681_v40 = vrot.slane %v2679_v12, 4  ;;  %v2528_v12 = vld [vmem:[#allocation2 + $0xc0] sm:$0xe] }
 0x1db   : > { %v2371_v10 = vpop.permute.xlu2 %2370  ;;  %v4489_v30 = vrot.slane %v2528_v12, 9  ;;  %v2828_v12 = vld [vmem:[#allocation2 + $0x40] sm:$0xf] }
 0x1dc   : > { %v2379_v41 = vpop.permute.xlu0 %2378  ;;  %2459 = vst.msk [vmem:[#allocation3 + $0x20] sm:$0xf] %vm2450_vm2, %v2371_v10  ;;  %v2683_v39 = vsel %vm5319_vm14, %v2681_v40, %v2682_v27  ;;  %v2666_v10 = vsel %vm5319_vm14, %v4486_v18, %v2665_v53  ;;  %v6144_v18 = vld [vmem:[#allocation2 + $0xac] sm:$0xf] }
 0x1dd   : > { %2725 = vrot.lane.b32.xlu1 %v2641_v20, %s4770_s6  ;;  %2463 = vst.msk [vmem:[#allocation3 + $0x30] sm:$0xf] %vm2450_vm2, %v2379_v41  ;;  %v2655_v20 = vsel %vm5319_vm14, %v2653_v14, %v2654_v9  ;;  %v2687_v19 = vsel %vm5319_vm14, %v4489_v30, %v2686_v31  ;;  %v3757_v11 = vrot.slane %v6144_v18, 5 }
 0x1df   : > { %v2369_v37 = vpop.permute.xlu1 %2368 }
 0x1e0   : > { %2458 = vst.msk [vmem:[#allocation3 + $0x1c] sm:$0xf] %vm2450_vm2, %v2369_v37 }
 0x1e1   : > { %2715 = vrot.lane.b32.xlu2 %v2624_v58, %s4770_s6 }
 0x1e2   : > { %2741 = vrot.lane.b32.xlu0 %v2669_v36, %s4770_s6  ;;  %v3038_v36 = vld [vmem:[#allocation2 + $0x78] sm:$0xf] }
 0x1e3   : > { %v2377_v8 = vpop.permute.xlu2 %2376  ;;  %v3255_v53 = vshrl.u32 %v3038_v36, 16  ;;  %v3258_v54 = vshll.u32 %v3038_v36, 16 }
 0x1e4   : > { %v2385_v28 = vpop.permute.xlu0 %2384  ;;  %2462 = vst.msk [vmem:[#allocation3 + $0x2c] sm:$0xf] %vm2450_vm2, %v2377_v8  ;;  %v3039_v8 = vld [vmem:[#allocation2 + $0x7c] sm:$0xf] }
 0x1e5   : > { %2731 = vrot.lane.b32.xlu1 %v2652_v42, %s4770_s6  ;;  %2466 = vst.msk [vmem:[#allocation3 + $0x3c] sm:$0xf] %vm2450_vm2, %v2385_v28  ;;  %v2829_v42 = vld [vmem:[#allocation2 + $0x48] sm:$0xf]  ;;  %v3257_v28 = vrot.slane %v3255_v53, 4  ;;  %v3260_v26 = vrot.slane %v3258_v54, 5 }
 0x1e6   : > { %v3268_v49 = vshrl.u32 %v3039_v8, 16 }
 0x1e7   : > { %v2375_v24 = vpop.permute.xlu1 %2374 }
 0x1e8   : > { %2461 = vst.msk [vmem:[#allocation3 + $0x28] sm:$0xf] %vm2450_vm2, %v2375_v24  ;;  %v3270_v27 = vrot.slane %v3268_v49, 4 }
 0x1e9   : > { %2721 = vrot.lane.b32.xlu2 %v2634_v44, %s4770_s6  ;;  %v3261_v44 = vor.u32 %v3260_v26, %v3257_v28  ;;  %v3599_v26 = vld [vmem:[#allocation2 + $0x78] sm:$0xe] }
 0x1ea   : > { %2747 = vrot.lane.b32.xlu0 %v2680_v33, %s4770_s6  ;;  %v2838_v33 = vld [vmem:[#allocation2 + $0x7c] sm:$0xf] }
 0x1eb   : > { %v2383_v25 = vpop.permute.xlu2 %2382  ;;  %v3262_v43 = vrot.slane %v3261_v44, 4  ;;  %v3050_v44 = vld [vmem:[#allocation2 + $0xa8] sm:$0xf] }
 0x1ec   : > { %v2391_v59 = vpop.permute.xlu0 %2390  ;;  %2465 = vst.msk [vmem:[#allocation3 + $0x38] sm:$0xf] %vm2450_vm2, %v2383_v25  ;;  %v3366_v25 = vrot.slane %v3364_v7, 4  ;;  %v3026_v7 = vld [vmem:[#allocation2 + $0x48] sm:$0xf] }
 0x1ed   : > { %2737 = vrot.lane.b32.xlu1 %v2662_v21, %s4770_s6  ;;  %2469 = vst.msk [vmem:[#allocation3 + $0x48] sm:$0xf] %vm2450_vm2, %v2391_v59  ;;  %v3264_v21 = vshll.u32 %v3039_v8, 16 }
 0x1ef   : > { %v2381_v38 = vpop.permute.xlu1 %2380  ;;  %v3266_v59 = vrot.slane %v3264_v21, 5 }
 0x1f0   : > { %2464 = vst.msk [vmem:[#allocation3 + $0x34] sm:$0xf] %vm2450_vm2, %v2381_v38 }
 0x1f1   : > { %2727 = vrot.lane.b32.xlu2 %v2645_v32, %s4770_s6  ;;  %v3267_v38 = vsel %vm4922_vm11, %v3262_v43, %v3266_v59  ;;  %v3370_v32 = vshll.u32 %v3052_v34, 16  ;;  %v2837_v43 = vld [vmem:[#allocation2 + $0x78] sm:$0xf]  ;;  %v3159_v34 = vshrl.u32 %v3026_v7, 16 }
 0x1f2   : > { %2753 = vrot.lane.b32.xlu0 %v2690_v55, %s4770_s6  ;;  %v3367_v55 = vor.u32 %v3366_v25, %v6126_v2  ;;  %v3354_v25 = vshll.u32 %v3050_v44, 16 }
 0x1f3   : > { %v2389_v51 = vpop.permute.xlu2 %2388  ;;  %v3372_v14 = vrot.slane %v3370_v32, 5 }
 0x1f4   : > { %v2397_v5 = vpop.permute.xlu0 %2396  ;;  %2468 = vst.msk [vmem:[#allocation3 + $0x44] sm:$0xf] %vm2450_vm2, %v2389_v51  ;;  %v3015_v51 = vld [vmem:[#allocation2 + $0x1c] sm:$0xf]  ;;  %v3356_v49 = vrot.slane %v3354_v25, 5 }
 0x1f5   : > { %2743 = vrot.lane.b32.xlu1 %v2673_v60, %s4770_s6  ;;  %2472 = vst.msk [vmem:[#allocation3 + $0x54] sm:$0xf] %vm2450_vm2, %v2397_v5  ;;  %v2822_v60 = vld [vmem:[#allocation2 + $0x1c] sm:$0xf]  ;;  %v3368_v5 = vrot.slane %v3367_v55, 4  ;;  %v3076_v29 = vshrl.u32 %v3015_v51, 16 }
 0x1f6   : > { %v2847_v25 = vld [vmem:[#allocation2 + $0xb4] sm:$0xf] }
 0x1f7   : > { %v2387_v57 = vpop.permute.xlu1 %2386  ;;  %v3078_v36 = vrot.slane %v3076_v29, 4  ;;  %v2846_v29 = vld [vmem:[#allocation2 + $0xac] sm:$0xf] }
 0x1f8   : > { %2467 = vst.msk [vmem:[#allocation3 + $0x40] sm:$0xf] %vm2450_vm2, %v2387_v57 }
 0x1f9   : > { %2733 = vrot.lane.b32.xlu2 %v2655_v20, %s4770_s6  ;;  %v3040_v20 = vld [vmem:[#allocation2 + $0x80] sm:$0x1] }
 0x1fa   : > { %2889 = vrot.lane.b32.xlu0 %v2823_v35, %s4771_s7  ;;  %v3373_v35 = vsel %vm4922_vm11, %v3368_v5, %v3372_v14  ;;  %v3759_v14 = vrot.slane %v3757_v11, 4 }
 0x1fb   : > { %v2395_v15 = vpop.permute.xlu2 %2394 }
 0x1fc   : > { %v2403_v63 = vpop.permute.xlu0 %2402  ;;  %2471 = vst.msk [vmem:[#allocation3 + $0x50] sm:$0xf] %vm2450_vm2, %v2395_v15  ;;  %v2825_v15 = vld [vmem:[#allocation2 + $0x30] sm:$0xf] }
 0x1fd   : > { %2749 = vrot.lane.b32.xlu1 %v2683_v39, %s4770_s6  ;;  %2475 = vst.msk [vmem:[#allocation3 + $0x60] sm:$0xf] %vm2450_vm2, %v2403_v63  ;;  %v3072_v39 = vshll.u32 %v3015_v51, 16  ;;  %v3611_v63 = vld [vmem:[#allocation2 + $0xa8] sm:$0xe]  ;;  %v3161_v51 = vrot.slane %v3159_v34, 4 }
 0x1ff   : > { %v2393_v41 = vpop.permute.xlu1 %2392 }
 0x200   : > { %2470 = vst.msk [vmem:[#allocation3 + $0x4c] sm:$0xf] %vm2450_vm2, %v2393_v41  ;;  %v2845_v41 = vld [vmem:[#allocation2 + $0xa8] sm:$0xf] }
 0x201   : > { %2739 = vrot.lane.b32.xlu2 %v2666_v10, %s4770_s6  ;;  %v3274_v10 = vshll.u32 %v3040_v20, 16 }
 0x202   : > { %2895 = vrot.lane.b32.xlu0 %v2826_v17, %s4771_s7  ;;  %v3271_v17 = vor.u32 %v3270_v27, %v3266_v59  ;;  %v3351_v59 = vshrl.u32 %v3050_v44, 16  ;;  %v3043_v44 = vld [vmem:[#allocation2 + $0x8c] sm:$0x1] }
 0x203   : > { %v2401_v58 = vpop.permute.xlu2 %2400  ;;  %v3298_v34 = vshll.u32 %v3043_v44, 16 }
 0x204   : > { %v2409_v37 = vpop.permute.xlu0 %2408  ;;  %2474 = vst.msk [vmem:[#allocation3 + $0x5c] sm:$0xf] %vm2450_vm2, %v2401_v58 }
 0x205   : > { %2885 = vrot.lane.b32.xlu1 %v2821_v50, %s4771_s7  ;;  %2478 = vst.msk [vmem:[#allocation3 + $0x6c] sm:$0xf] %vm2450_vm2, %v2409_v37  ;;  %v4502_v50 = vrot.slane %v3611_v63, 9  ;;  %v6148_v37 = vrot.slane %v3072_v39, 5  ;;  %v3589_v39 = vld [vmem:[#allocation2 + $0x50] sm:$0x1] }
 0x207   : > { %v2399_v13 = vpop.permute.xlu1 %2398  ;;  %v3758_v54 = vsel %vm5319_vm14, %v4502_v50, %v3757_v11  ;;  %v3042_v11 = vld [vmem:[#allocation2 + $0x88] sm:$0xf] }
 0x208   : > { %2473 = vst.msk [vmem:[#allocation3 + $0x58] sm:$0xf] %vm2450_vm2, %v2399_v13  ;;  %v3272_v13 = vrot.slane %v3271_v17, 4 }
 0x209   : > { %2745 = vrot.lane.b32.xlu2 %v2676_v23, %s4770_s6  ;;  %v3079_v23 = vor.u32 %v3078_v36, %v6148_v37 }
 0x20a   : > { %2901 = vrot.lane.b32.xlu0 %v2829_v42, %s4771_s7  ;;  %v3276_v42 = vrot.slane %v3274_v10, 5  ;;  %v3704_v10 = vrot.slane %v3589_v39, 5 }
 0x20b   : > { %v2407_v24 = vpop.permute.xlu2 %2406  ;;  %v3080_v8 = vrot.slane %v3079_v23, 4  ;;  %v3292_v23 = vshrl.u32 %v3042_v11, 16 }
 0x20c   : > { %v2415_v48 = vpop.permute.xlu0 %2414  ;;  %2477 = vst.msk [vmem:[#allocation3 + $0x68] sm:$0xf] %vm2450_vm2, %v2407_v24  ;;  %v3277_v28 = vsel %vm4922_vm11, %v3272_v13, %v3276_v42  ;;  %v3014_v13 = vld [vmem:[#allocation2 + $0x18] sm:$0xf] }
 0x20d   : > { %2891 = vrot.lane.b32.xlu1 %v2824_v52, %s4771_s7  ;;  %2481 = vst.msk [vmem:[#allocation3 + $0x78] sm:$0xf] %vm2450_vm2, %v2415_v48  ;;  %v3082_v52 = vshll.u32 %v3016_v47, 16  ;;  %v6161_v48 = vld [vmem:[#allocation2 + $0x7c] sm:$0xf] }
 0x20f   : > { %v2405_v0 = vpop.permute.xlu1 %2404  ;;  %v3084_v3 = vrot.slane %v3082_v52, 5 }
 0x210   : > { %2476 = vst.msk [vmem:[#allocation3 + $0x64] sm:$0xf] %vm2450_vm2, %v2405_v0  ;;  %v3729_v0 = vrot.slane %v6161_v48, 5 }
 0x211   : > { %2751 = vrot.lane.b32.xlu2 %v2687_v19, %s4770_s6  ;;  %v3085_v6 = vsel %vm4922_vm11, %v3080_v8, %v3084_v3  ;;  %v3575_v19 = vld [vmem:[#allocation2 + $0x18] sm:$0xe]  ;;  %v3601_v8 = vld [vmem:[#allocation2 + $0x80] sm:$0x1] }
 0x212   : > { %2919 = vrot.lane.b32.xlu0 %v2838_v33, %s4771_s7  ;;  %v4498_v33 = vrot.slane %v3599_v26, 9  ;;  %v3577_v3 = vld [vmem:[#allocation2 + $0x20] sm:$0x1] }
 0x213   : > { %v2413_v45 = vpop.permute.xlu2 %2412 }
 0x214   : > { %v2694_v61 = vpop.permute.xlu0 %2693  ;;  %2480 = vst.msk [vmem:[#allocation3 + $0x74] sm:$0xf] %vm2450_vm2, %v2413_v45  ;;  %v3162_v45 = vshll.u32 %v3026_v7, 16 }
 0x215   : > { %2897 = vrot.lane.b32.xlu1 %v2827_v56, %s4771_s7  ;;  %2789 = vst.msk [vmem:[#allocation3 + $0x4] sm:$0xf] %vm2787_vm4, %v2694_v61  ;;  %v6171_v56 = vld [vmem:[#allocation2 + $0x1c] sm:$0xf]  ;;  %v3730_v61 = vsel %vm5319_vm14, %v4498_v33, %v3729_v0 }
 0x216   : > { %v3673_v55 = vrot.slane %v6171_v56, 5 }
 0x217   : > { %v2411_v31 = vpop.permute.xlu1 %2410 }
 0x218   : > { %2479 = vst.msk [vmem:[#allocation3 + $0x70] sm:$0xf] %vm2450_vm2, %v2411_v31  ;;  %v3613_v31 = vld [vmem:[#allocation2 + $0xb0] sm:$0x1]  ;;  %v3675_v56 = vrot.slane %v3673_v55, 4 }
 0x219   : > { %2887 = vrot.lane.b32.xlu2 %v2822_v60, %s4771_s7  ;;  %v6180_v60 = vld [vmem:[#allocation2 + $0x4c] sm:$0xf] }
 0x21a   : > { %3478 = vrot.lane.b32.xlu0 %v3267_v38, %s4772_s8  ;;  %v4490_v38 = vrot.slane %v3575_v19, 9  ;;  %v3701_v20 = vrot.slane %v6180_v60, 5 }
 0x21b   : > { %v2692_v40 = vpop.permute.xlu2 %2691 }
 0x21c   : > { %v2700_v9 = vpop.permute.xlu0 %2699  ;;  %2788 = vst.msk [vmem:[#allocation3] sm:$0xf] %vm2787_vm4, %v2692_v40  ;;  %v3164_v40 = vrot.slane %v3162_v45, 5  ;;  %v3703_v17 = vrot.slane %v3701_v20, 4 }
 0x21d   : > { %2903 = vrot.lane.b32.xlu1 %v2830_v16, %s4771_s7  ;;  %2792 = vst.msk [vmem:[#allocation3 + $0x10] sm:$0xf] %vm2787_vm4, %v2700_v9  ;;  %v3353_v16 = vrot.slane %v3351_v59, 4  ;;  %v3760_v9 = vrot.slane %v3613_v31, 5 }
 0x21f   : > { %v2417_v57 = vpop.permute.xlu1 %2416  ;;  %v3357_v63 = vor.u32 %v3356_v49, %v3353_v16  ;;  %v3761_v18 = vsel %vm5319_vm14, %v3759_v14, %v3760_v9  ;;  %v3028_v14 = vld [vmem:[#allocation2 + $0x50] sm:$0x1] }
 0x220   : > { %2482 = vst.msk [vmem:[#allocation3 + $0x7c] sm:$0xf] %vm2450_vm2, %v2417_v57  ;;  %v3674_v57 = vsel %vm5319_vm14, %v4490_v38, %v3673_v55  ;;  %v3300_v55 = vrot.slane %v3298_v34, 5  ;;  %v3041_v34 = vld [vmem:[#allocation2 + $0x84] sm:$0xf] }
 0x221   : > { %2893 = vrot.lane.b32.xlu2 %v2825_v15, %s4771_s7  ;;  %v3165_v15 = vor.u32 %v3164_v40, %v3161_v51  ;;  %v3358_v36 = vrot.slane %v3357_v63, 4  ;;  %v3053_v40 = vld [vmem:[#allocation2 + $0xb4] sm:$0xf]  ;;  %v2839_v63 = vld [vmem:[#allocation2 + $0x84] sm:$0xf] }
 0x222   : > { %3496 = vrot.lane.b32.xlu0 %v3373_v35, %s4772_s8  ;;  %v6187_v35 = vld [vmem:[#allocation2 + $0x4c] sm:$0xf] }
 0x223   : > { %v2698_v58 = vpop.permute.xlu2 %2697  ;;  %v3166_v47 = vrot.slane %v3165_v15, 4  ;;  %v3363_v52 = vsel %vm4922_vm11, %v3358_v36, %v6126_v2  ;;  %v3731_v2 = vrot.slane %v3729_v0, 4  ;;  %v3172_v48 = vshrl.u32 %v6187_v35, 16 }
 0x224   : > { %v2706_v46 = vpop.permute.xlu0 %2705  ;;  %2791 = vst.msk [vmem:[#allocation3 + $0xc] sm:$0xf] %vm2787_vm4, %v2698_v58  ;;  %v3378_v15 = vshll.u32 %v3053_v40, 16 }
 0x225   : > { %2933 = vrot.lane.b32.xlu1 %v2845_v41, %s4771_s7  ;;  %2795 = vst.msk [vmem:[#allocation3 + $0x1c] sm:$0xf] %vm2787_vm4, %v2706_v46  ;;  %v3168_v41 = vshll.u32 %v6187_v35, 16  ;;  %v3174_v49 = vrot.slane %v3172_v48, 4 }
 0x227   : > { %v2696_v53 = vpop.permute.xlu1 %2695  ;;  %v6200_v58 = vrot.slane %v3168_v41, 5 }
 0x228   : > { %2790 = vst.msk [vmem:[#allocation3 + $0x8] sm:$0xf] %vm2787_vm4, %v2696_v53  ;;  %v3705_v53 = vsel %vm5319_vm14, %v3703_v17, %v3704_v10  ;;  %v6244_v10 = vld [vmem:[#allocation2 + $0xb8] sm:$0xf] }
 0x229   : > { %2899 = vrot.lane.b32.xlu2 %v2828_v12, %s4771_s7  ;;  %v3063_v12 = vshrl.u32 %v3014_v13, 16  ;;  %v3171_v26 = vsel %vm4922_vm11, %v3166_v47, %v6200_v58  ;;  %v3175_v39 = vor.u32 %v3174_v49, %v6200_v58  ;;  %v6249_v47 = vld [vmem:[#allocation2 + $0xb8] sm:$0xf] }
 0x22a   : > { %3831 = vrot.lane.b32.xlu0 %v3758_v54, %s4773_s9  ;;  %v3288_v54 = vshll.u32 %v3042_v11, 16  ;;  %v3017_v11 = vld [vmem:[#allocation2 + $0x24] sm:$0xf] }
 0x22b   : > { %v2704_v24 = vpop.permute.xlu2 %2703 }
 0x22c   : > { %v2712_v30 = vpop.permute.xlu0 %2711  ;;  %2794 = vst.msk [vmem:[#allocation3 + $0x18] sm:$0xf] %vm2787_vm4, %v2704_v24  ;;  %v3294_v24 = vrot.slane %v3292_v23, 4  ;;  %v3616_v23 = vld [vmem:[#allocation2 + $0xbc] sm:$0x1] }
 0x22d   : > { %3480 = vrot.lane.b32.xlu1 %v3277_v28, %s4772_s8  ;;  %2798 = vst.msk [vmem:[#allocation3 + $0x28] sm:$0xf] %vm2787_vm4, %v2712_v30  ;;  %v3066_v28 = vshll.u32 %v3014_v13, 16  ;;  %v6213_v30 = vrot.slane %v3288_v54, 5  ;;  %v3380_v13 = vrot.slane %v3378_v15, 5  ;;  %v3767_v44 = vrot.slane %v3616_v23, 5 }
 0x22e   : > { %v3055_v23 = vld [vmem:[#allocation2 + $0xbc] sm:$0x1] }
 0x22f   : > { %v2702_v21 = vpop.permute.xlu1 %2701  ;;  %v3068_v7 = vrot.slane %v3066_v28, 5 }
 0x230   : > { %2793 = vst.msk [vmem:[#allocation3 + $0x14] sm:$0xf] %vm2787_vm4, %v2702_v21  ;;  %v3732_v21 = vrot.slane %v3601_v8, 5  ;;  %v3587_v8 = vld [vmem:[#allocation2 + $0x48] sm:$0xe] }
 0x231   : > { %2917 = vrot.lane.b32.xlu2 %v2837_v43, %s4771_s7  ;;  %v3676_v43 = vrot.slane %v3577_v3, 5 }
 0x232   : > { %3448 = vrot.lane.b32.xlu0 %v3085_v6, %s4772_s8  ;;  %v3065_v6 = vrot.slane %v3063_v12, 4  ;;  %v3733_v0 = vsel %vm5319_vm14, %v3731_v2, %v3732_v21  ;;  %v3090_v12 = vshll.u32 %v3017_v11, 16 }
 0x233   : > { %v2710_v5 = vpop.permute.xlu2 %2709  ;;  %v3677_v31 = vsel %vm5319_vm14, %v3675_v56, %v3676_v43  ;;  %v4494_v56 = vrot.slane %v3587_v8, 9  ;;  %v3590_v8 = vld [vmem:[#allocation2 + $0x54] sm:$0xe] }
 0x234   : > { %v2718_v32 = vpop.permute.xlu0 %2717  ;;  %2797 = vst.msk [vmem:[#allocation3 + $0x24] sm:$0xf] %vm2787_vm4, %v2710_v5  ;;  %v3069_v45 = vor.u32 %v3068_v7, %v3065_v6  ;;  %v3092_v21 = vrot.slane %v3090_v12, 5  ;;  %v3018_v7 = vld [vmem:[#allocation2 + $0x28] sm:$0xf] }
 0x235   : > { %3815 = vrot.lane.b32.xlu1 %v3730_v61, %s4773_s9  ;;  %2801 = vst.msk [vmem:[#allocation3 + $0x34] sm:$0xf] %vm2787_vm4, %v2718_v32  ;;  %v3295_v61 = vor.u32 %v3294_v24, %v6213_v30  ;;  %v3384_v24 = vshll.u32 %v6249_v47, 16 }
 0x236   : > { %v3070_v16 = vrot.slane %v3069_v45, 4  ;;  %v3096_v45 = vshll.u32 %v3018_v7, 16 }
 0x237   : > { %v2708_v27 = vpop.permute.xlu1 %2707  ;;  %v3296_v38 = vrot.slane %v3295_v61, 4 }
 0x238   : > { %2796 = vst.msk [vmem:[#allocation3 + $0x20] sm:$0xf] %vm2787_vm4, %v2708_v27  ;;  %v3602_v27 = vld [vmem:[#allocation2 + $0x84] sm:$0xe]  ;;  %v3075_v35 = vsel %vm4922_vm11, %v3070_v16, %v6148_v37  ;;  %v3176_v37 = vrot.slane %v3175_v39, 4  ;;  %v3282_v16 = vshll.u32 %v3041_v34, 16 }
 0x239   : > { %2935 = vrot.lane.b32.xlu2 %v2846_v29, %s4771_s7  ;;  %v3301_v51 = vsel %vm4922_vm11, %v3296_v38, %v3300_v55  ;;  %v3178_v29 = vshll.u32 %v3028_v14, 16  ;;  %v4499_v41 = vrot.slane %v3602_v27, 9  ;;  %v3702_v55 = vsel %vm5319_vm14, %v4494_v56, %v3701_v20  ;;  %v3031_v27 = vld [vmem:[#allocation2 + $0x5c] sm:$0x1] }
 0x23a   : > { %3783 = vrot.lane.b32.xlu0 %v3674_v57, %s4773_s9  ;;  %v6236_v57 = vld [vmem:[#allocation2 + $0x88] sm:$0xf] }
 0x23b   : > { %v2716_v46 = vpop.permute.xlu2 %2715  ;;  %v3736_v17 = vrot.slane %v6236_v57, 5  ;;  %v3180_v36 = vrot.slane %v3178_v29, 5 }
 0x23c   : > { %v2724_v50 = vpop.permute.xlu0 %2723  ;;  %2800 = vst.msk [vmem:[#allocation3 + $0x30] sm:$0xf] %vm2787_vm4, %v2716_v46 }
 0x23d   : > { %3833 = vrot.lane.b32.xlu1 %v3761_v18, %s4773_s9  ;;  %2804 = vst.msk [vmem:[#allocation3 + $0x40] sm:$0xf] %vm2787_vm4, %v2724_v50  ;;  %v3375_v18 = vshrl.u32 %v3053_v40, 16  ;;  %v3737_v54 = vsel %vm5319_vm14, %v4499_v41, %v3736_v17  ;;  %v3181_v28 = vsel %vm4922_vm11, %v3176_v37, %v3180_v36  ;;  %v3738_v29 = vrot.slane %v3736_v17, 4  ;;  %v2840_v37 = vld [vmem:[#allocation2 + $0x88] sm:$0xf] }
 0x23e   : > { %v3100_v17 = vshrl.u32 %v3018_v7, 16  ;;  %v4495_v7 = vrot.slane %v3590_v8, 9 }
 0x23f   : > { %v2714_v42 = vpop.permute.xlu1 %2713  ;;  %v3377_v58 = vrot.slane %v3375_v18, 4 }
 0x240   : > { %2799 = vst.msk [vmem:[#allocation3 + $0x2c] sm:$0xf] %vm2787_vm4, %v2714_v42  ;;  %v3764_v42 = vrot.slane %v6244_v10, 5 }
 0x241   : > { %3494 = vrot.lane.b32.xlu2 %v3363_v52, %s4772_s8  ;;  %v3087_v52 = vshrl.u32 %v3017_v11, 16  ;;  %v3381_v3 = vor.u32 %v3380_v13, %v3377_v58  ;;  %v3388_v11 = vshrl.u32 %v6249_v47, 16 }
 0x242   : > { %3801 = vrot.lane.b32.xlu0 %v3705_v53, %s4773_s9 }
 0x243   : > { %v2722_v19 = vpop.permute.xlu2 %2721  ;;  %v3089_v2 = vrot.slane %v3087_v52, 4  ;;  %v3390_v47 = vrot.slane %v3388_v11, 4  ;;  %v3102_v52 = vrot.slane %v3100_v17, 4 }
 0x244   : > { %v2730_v33 = vpop.permute.xlu0 %2729  ;;  %2803 = vst.msk [vmem:[#allocation3 + $0x3c] sm:$0xf] %vm2787_vm4, %v2722_v19  ;;  %v3030_v19 = vld [vmem:[#allocation2 + $0x58] sm:$0xf] }
 0x245   : > { %3462 = vrot.lane.b32.xlu1 %v3171_v26, %s4772_s8  ;;  %2807 = vst.msk [vmem:[#allocation3 + $0x4c] sm:$0xf] %vm2787_vm4, %v2730_v33  ;;  %v2848_v26 = vld [vmem:[#allocation2 + $0xb8] sm:$0xf]  ;;  %v3766_v33 = vrot.slane %v3764_v42, 4  ;;  %v3196_v38 = vshrl.u32 %v3030_v19, 16 }
 0x247   : > { %v2720_v59 = vpop.permute.xlu1 %2719  ;;  %v3768_v61 = vsel %vm5319_vm14, %v3766_v33, %v3767_v44  ;;  %v3198_v40 = vrot.slane %v3196_v38, 4  ;;  %v3394_v44 = vshll.u32 %v3055_v23, 16 }
 0x248   : > { %2802 = vst.msk [vmem:[#allocation3 + $0x38] sm:$0xf] %vm2787_vm4, %v2720_v59  ;;  %v3382_v59 = vrot.slane %v3381_v3, 4  ;;  %v6304_v3 = vld [vmem:[#allocation2 + $0x58] sm:$0xf] }
 0x249   : > { %3817 = vrot.lane.b32.xlu2 %v3733_v0, %s4773_s9  ;;  %v3093_v0 = vor.u32 %v3092_v21, %v3089_v2  ;;  %v2831_v2 = vld [vmem:[#allocation2 + $0x54] sm:$0xf] }
 0x24a   : > { %2937 = vrot.lane.b32.xlu0 %v2847_v25, %s4771_s7  ;;  %v6267_v25 = vrot.slane %v3384_v24, 5 }
 0x24b   : > { %v2728_v5 = vpop.permute.xlu2 %2727  ;;  %v3094_v14 = vrot.slane %v3093_v0, 4 }
 0x24c   : > { %v2736_v32 = vpop.permute.xlu0 %2735  ;;  %2806 = vst.msk [vmem:[#allocation3 + $0x48] sm:$0xf] %vm2787_vm4, %v2728_v5  ;;  %v3387_v49 = vsel %vm4922_vm11, %v3382_v59, %v6267_v25  ;;  %v3604_v5 = vld [vmem:[#allocation2 + $0x8c] sm:$0x1]  ;;  %v3391_v33 = vor.u32 %v3390_v47, %v6267_v25 }
 0x24d   : > { %3785 = vrot.lane.b32.xlu1 %v3677_v31, %s4773_s9  ;;  %2810 = vst.msk [vmem:[#allocation3 + $0x58] sm:$0xf] %vm2787_vm4, %v2736_v32  ;;  %v3192_v31 = vshll.u32 %v3030_v19, 16  ;;  %v3279_v32 = vshrl.u32 %v3041_v34, 16  ;;  %v3708_v19 = vrot.slane %v6304_v3, 5  ;;  %v4617_v3 = vld [vmem:[%s6759_s1 + $0x8] sm:$0xff] }
 0x24e   : > { %v3392_v59 = vrot.slane %v3391_v33, 4 }
 0x24f   : > { %v2726_v9 = vpop.permute.xlu1 %2725  ;;  %v3281_v20 = vrot.slane %v3279_v32, 4  ;;  %v3709_v0 = vsel %vm5319_vm14, %v4495_v7, %v3708_v19  ;;  %v3614_v32 = vld [vmem:[#allocation2 + $0xb4] sm:$0xe]  ;;  %v2832_v7 = vld [vmem:[#allocation2 + $0x58] sm:$0xf] }
 0x250   : > { %2805 = vst.msk [vmem:[#allocation3 + $0x44] sm:$0xf] %vm2787_vm4, %v2726_v9  ;;  %v3098_v9 = vrot.slane %v3096_v45, 5 }
 0x251   : > { %3446 = vrot.lane.b32.xlu2 %v3075_v35, %s4772_s8  ;;  %v3284_v35 = vrot.slane %v3282_v16, 5  ;;  %v3578_v16 = vld [vmem:[#allocation2 + $0x24] sm:$0xe] }
 0x252   : > { %3484 = vrot.lane.b32.xlu0 %v3301_v51, %s4772_s8  ;;  %v6281_v51 = vrot.slane %v3192_v31, 5  ;;  %v3099_v15 = vsel %vm4922_vm11, %v3094_v14, %v3098_v9  ;;  %v3103_v21 = vor.u32 %v3102_v52, %v3098_v9  ;;  %v3058_v52 = vld [vmem:[#allocation2 + $0xc8] sm:$0x1] }
 0x253   : > { %v2734_v46 = vpop.permute.xlu2 %2733  ;;  %v3285_v36 = vor.u32 %v3284_v35, %v3281_v20  ;;  %v4491_v35 = vrot.slane %v3578_v16, 9 }
 0x254   : > { %v2742_v50 = vpop.permute.xlu0 %2741  ;;  %2809 = vst.msk [vmem:[#allocation3 + $0x54] sm:$0xf] %vm2787_vm4, %v2734_v46  ;;  %v3199_v41 = vor.u32 %v3198_v40, %v6281_v51  ;;  %v3104_v25 = vrot.slane %v3103_v21, 4 }
 0x255   : > { %2921 = vrot.lane.b32.xlu1 %v2839_v63, %s4771_s7  ;;  %2813 = vst.msk [vmem:[#allocation3 + $0x64] sm:$0xf] %vm2787_vm4, %v2742_v50  ;;  %v3739_v63 = vrot.slane %v3604_v5, 5  ;;  %v3202_v50 = vshll.u32 %v3031_v27, 16  ;;  %v6328_v5 = vld [vmem:[#allocation2 + $0x94] sm:$0xf] }
 0x256   : > { %v3200_v46 = vrot.slane %v3199_v41, 4  ;;  %v4503_v27 = vrot.slane %v3614_v32, 9  ;;  %v6380_v32 = vld [vmem:[#allocation2 + $0xc4] sm:$0xf] }
 0x257   : > { %v2732_v53 = vpop.permute.xlu1 %2731  ;;  %v3740_v57 = vsel %vm5319_vm14, %v3738_v29, %v3739_v63  ;;  %v3204_v58 = vrot.slane %v3202_v50, 5  ;;  %v3029_v29 = vld [vmem:[#allocation2 + $0x54] sm:$0xf]  ;;  %v3312_v63 = vshll.u32 %v6328_v5, 16 }
 0x258   : > { %2808 = vst.msk [vmem:[#allocation3 + $0x50] sm:$0xf] %vm2787_vm4, %v2732_v53  ;;  %v3286_v53 = vrot.slane %v3285_v36, 4  ;;  %v3765_v36 = vsel %vm5319_vm14, %v4503_v27, %v3764_v42  ;;  %v3186_v17 = vshll.u32 %v3029_v29, 16  ;;  %v3771_v27 = vrot.slane %v6380_v32, 5 }
 0x259   : > { %3464 = vrot.lane.b32.xlu2 %v3181_v28, %s4772_s8  ;;  %v3205_v28 = vsel %vm4922_vm11, %v3200_v46, %v3204_v58  ;;  %v3583_v32 = vld [vmem:[#allocation2 + $0x38] sm:$0x1] }
 0x25a   : > { %3819 = vrot.lane.b32.xlu0 %v3737_v54, %s4773_s9  ;;  %v3291_v24 = vsel %vm4922_vm11, %v3286_v53, %v6213_v30  ;;  %v3592_v53 = vld [vmem:[#allocation2 + $0x5c] sm:$0x1] }
 0x25b   : > { %v2740_v43 = vpop.permute.xlu2 %2739  ;;  %v3711_v33 = vrot.slane %v3592_v53, 5 }
 0x25c   : > { %v2748_v6 = vpop.permute.xlu0 %2747  ;;  %2812 = vst.msk [vmem:[#allocation3 + $0x60] sm:$0xf] %vm2787_vm4, %v2740_v43  ;;  %v3044_v43 = vld [vmem:[#allocation2 + $0x90] sm:$0xf] }
 0x25d   : > { %2939 = vrot.lane.b32.xlu1 %v2848_v26, %s4771_s7  ;;  %2816 = vst.msk [vmem:[#allocation3 + $0x70] sm:$0xf] %vm2787_vm4, %v2748_v6  ;;  %v3019_v26 = vld [vmem:[#allocation2 + $0x2c] sm:$0x1]  ;;  %v3303_v45 = vshrl.u32 %v3044_v43, 16  ;;  %v3306_v31 = vshll.u32 %v3044_v43, 16 }
 0x25e   : > { %v3106_v6 = vshll.u32 %v3019_v26, 16  ;;  %v3316_v43 = vshrl.u32 %v6328_v5, 16  ;;  %v2849_v5 = vld [vmem:[#allocation2 + $0xc0] sm:$0xf] }
 0x25f   : > { %v2738_v48 = vpop.permute.xlu1 %2737  ;;  %v3305_v14 = vrot.slane %v3303_v45, 4  ;;  %v3308_v9 = vrot.slane %v3306_v31, 5 }
 0x260   : > { %2811 = vst.msk [vmem:[#allocation3 + $0x5c] sm:$0xf] %vm2787_vm4, %v2738_v48  ;;  %v3108_v34 = vrot.slane %v3106_v6, 5  ;;  %v3418_v6 = vshll.u32 %v3058_v52, 16 }
 0x261   : > { %3799 = vrot.lane.b32.xlu2 %v3702_v55, %s4773_s9  ;;  %v3309_v41 = vor.u32 %v3308_v9, %v3305_v14  ;;  %v3580_v14 = vld [vmem:[#allocation2 + $0x2c] sm:$0x1] }
 0x262   : > { %3837 = vrot.lane.b32.xlu0 %v3768_v61, %s4773_s9  ;;  %v3396_v61 = vrot.slane %v3394_v44, 5  ;;  %v3109_v55 = vsel %vm4922_vm11, %v3104_v25, %v3108_v34  ;;  %v4616_v25 = vld [vmem:[%s6759_s1] sm:$0xff] }
 0x263   : > { %v2746_v39 = vpop.permute.xlu2 %2745  ;;  %v3310_v47 = vrot.slane %v3309_v41, 4 }
 0x264   : > { %v2754_v60 = vpop.permute.xlu0 %2753  ;;  %2815 = vst.msk [vmem:[#allocation3 + $0x6c] sm:$0xf] %vm2787_vm4, %v2746_v39  ;;  %v3397_v38 = vsel %vm4922_vm11, %v3392_v59, %v3396_v61  ;;  %v3420_v61 = vrot.slane %v3418_v6, 5  ;;  %v233_v6 = vld [vmem:[#allocation2 + $0xcc] sm:$0x1] }
 0x265   : > { %3498 = vrot.lane.b32.xlu1 %v3387_v49, %s4772_s8  ;;  %2819 = vst.msk [vmem:[#allocation3 + $0x7c] sm:$0xf] %vm2787_vm4, %v2754_v60  ;;  %v6326_v49 = vld [vmem:[#allocation2 + $0x28] sm:$0xf]  ;;  %v3057_v60 = vld [vmem:[#allocation2 + $0xc4] sm:$0xf] }
 0x266   : > { %v3680_v39 = vrot.slane %v6326_v49, 5  ;;  %v3408_v50 = vshll.u32 %v3057_v60, 16  ;;  %v3412_v11 = vshrl.u32 %v3057_v60, 16 }
 0x267   : > { %v2744_v18 = vpop.permute.xlu1 %2743 }
 0x268   : > { %2814 = vst.msk [vmem:[#allocation3 + $0x68] sm:$0xf] %vm2787_vm4, %v2744_v18  ;;  %v3681_v58 = vsel %vm5319_vm14, %v4491_v35, %v3680_v39  ;;  %v3414_v10 = vrot.slane %v3412_v11, 4  ;;  %v3032_v35 = vld [vmem:[#allocation2 + $0x60] sm:$0xf] }
 0x269   : > { %2923 = vrot.lane.b32.xlu2 %v2840_v37, %s4771_s7  ;;  %v3948_v37 = vld [vmem:[%s6759_s1 + $0x10] sm:$0x3]  ;;  %v3207_v11 = vshrl.u32 %v3032_v35, 16 }
 0x26a   : > { %3450 = vrot.lane.b32.xlu0 %v3099_v15, %s4772_s8  ;;  %v2842_v15 = vld [vmem:[#allocation2 + $0x94] sm:$0xf]  ;;  %v4042_v46 = vunpack.c.l.b16 %v3948_v37  ;;  %v3210_v37 = vshll.u32 %v3032_v35, 16 }
 0x26b   : > { %v2752_v54 = vpop.permute.xlu2 %2751 }
 0x26c   : > { %v2890_v13 = vpop.permute.xlu0 %2889  ;;  %2818 = vst.msk [vmem:[#allocation3 + $0x78] sm:$0xf] %vm2787_vm4, %v2752_v54  ;;  %v6351_v54 = vrot.slane %v3408_v50, 5  ;;  %v4045_v23 = vpack.c.b16 %v4042_v46, %v4042_v46  ;;  %v3212_v46 = vrot.slane %v3210_v37, 5 }
 0x26d   : > { %3821 = vrot.lane.b32.xlu1 %v3740_v57, %s4773_s9  ;;  %2984 = vst.msk [vmem:[#allocation3 + $0x8] sm:$0xf] %vm2981_vm5, %v2890_v13  ;;  %v3183_v57 = vshrl.u32 %v3029_v29, 16  ;;  %v6349_v13 = vrot.slane %v3312_v63, 5  ;;  %v3683_v29 = vrot.slane %v3580_v14, 5 }
 0x26e   : > { %v4099_v26 = vsel %vm4097_vm7, %v4045_v23, 0  ;;  %v3415_v21 = vor.u32 %v3414_v10, %v6351_v54  ;;  %v3056_v23 = vld [vmem:[#allocation2 + $0xc0] sm:$0xf] }
 0x26f   : > { %v2750_v12 = vpop.permute.xlu1 %2749  ;;  %4643 = vmatpush.bf16.msra.mxu2 %v4099_v26  ;;  %4644 = vmatpush.bf16.msra.mxu3 %v4099_v26 }
 0x270   : > { %2817 = vst.msk [vmem:[#allocation3 + $0x74] sm:$0xf] %vm2787_vm4, %v2750_v12  ;;  %v3185_v12 = vrot.slane %v3183_v57, 4  ;;  %4106 = vmatpush.bf16.msra.mxu0 %v4099_v26  ;;  %4642 = vmatpush.bf16.msra.mxu1 %v4099_v26  ;;  %v3416_v59 = vrot.slane %v3415_v21, 4  ;;  %v6403_v57 = vld [vmem:[#allocation2 + $0x94] sm:$0xf] }
 0x271   : > { %3482 = vrot.lane.b32.xlu2 %v3291_v24, %s4772_s8  ;;  %v3710_v24 = vrot.slane %v3708_v19, 4  ;;  %v3743_v10 = vrot.slane %v6403_v57, 5 }
 0x272   : > { %3468 = vrot.lane.b32.xlu0 %v3205_v28, %s4772_s8  ;;  %v3188_v28 = vrot.slane %v3186_v17, 5  ;;  %v3421_v31 = vsel %vm4922_vm11, %v3416_v59, %v3420_v61  ;;  %v3209_v17 = vrot.slane %v3207_v11, 4  ;;  %v6424_v59 = vld [vmem:[#allocation2 + $0x34] sm:$0xf] }
 0x273   : > { %v2888_v30 = vpop.permute.xlu2 %2887  ;;  %4646 = vmatpush.bf16.msra.mxu2 %v4617_v3  ;;  %4647 = vmatpush.bf16.msra.mxu3 %v4617_v3  ;;  %v3745_v4 = vrot.slane %v3743_v10, 4 }
 0x274   : > { %v2896_v56 = vpop.permute.xlu0 %2895  ;;  %2983 = vst.msk [vmem:[#allocation3 + $0x4] sm:$0xf] %vm2981_vm5, %v2888_v30  ;;  %v3189_v19 = vor.u32 %v3188_v28, %v3185_v12  ;;  %4107 = vmatpush.bf16.msra.mxu0 %v4617_v3  ;;  %4645 = vmatpush.bf16.msra.mxu1 %v4617_v3  ;;  %v2834_v12 = vld [vmem:[#allocation2 + $0x64] sm:$0xf]  ;;  %v3213_v28 = vor.u32 %v3212_v46, %v3209_v17  ;;  %v3619_v3 = vld [vmem:[#allocation2 + $0xc8] sm:$0x1] }
 0x275   : > { %2905 = vrot.lane.b32.xlu1 %v2831_v2, %s4771_s7  ;;  %2987 = vst.msk [vmem:[#allocation3 + $0x14] sm:$0xf] %vm2981_vm5, %v2896_v56  ;;  %v3315_v2 = vsel %vm4922_vm11, %v3310_v47, %v6349_v13  ;;  %v3712_v56 = vsel %vm5319_vm14, %v3710_v24, %v3711_v33  ;;  %v3399_v24 = vshrl.u32 %v3056_v23, 16  ;;  %v3402_v33 = vshll.u32 %v3056_v23, 16  ;;  %v3607_v46 = vld [vmem:[#allocation2 + $0x98] sm:$0x1] }
 0x276   : > { %v3190_v34 = vrot.slane %v3189_v19, 4 }
 0x277   : > { %v2886_v48 = vpop.permute.xlu1 %2885  ;;  %4649 = vmatpush.bf16.msra.mxu2 %v4616_v25  ;;  %4650 = vmatpush.bf16.msra.mxu3 %v4616_v25  ;;  %v3401_v61 = vrot.slane %v3399_v24, 4 }
 0x278   : > { %2982 = vst.msk [vmem:[#allocation3] sm:$0xf] %vm2981_vm5, %v2886_v48  ;;  %4108 = vmatpush.bf16.msra.mxu0 %v4616_v25  ;;  %4648 = vmatpush.bf16.msra.mxu1 %v4616_v25  ;;  %v3195_v16 = vsel %vm4922_vm11, %v3190_v34, %v6281_v51  ;;  %v3682_v51 = vrot.slane %v3680_v39, 4  ;;  %v3605_v39 = vld [vmem:[#allocation2 + $0x90] sm:$0xe]  ;;  %v3773_v34 = vrot.slane %v3771_v27, 4 }
 0x279   : > { %3500 = vrot.lane.b32.xlu2 %v3397_v38, %s4772_s8  ;;  %v3046_v38 = vld [vmem:[#allocation2 + $0x98] sm:$0x1]  ;;  %v4500_v53 = vrot.slane %v3605_v39, 9 }
 0x27a   : > { %3803 = vrot.lane.b32.xlu0 %v3709_v0, %s4773_s9  ;;  %v3318_v0 = vrot.slane %v3316_v43, 4 }
 0x27b   : > { %v2894_v20 = vpop.permute.xlu2 %2893 }
 0x27c   : > { %v2902_v40 = vpop.permute.xlu0 %2901  ;;  %2986 = vst.msk [vmem:[#allocation3 + $0x10] sm:$0xf] %vm2981_vm5, %v2894_v20  ;;  %v3319_v9 = vor.u32 %v3318_v0, %v6349_v13  ;;  %v6406_v13 = vld [vmem:[#allocation2 + $0x64] sm:$0xf] }
 0x27d   : > { %3452 = vrot.lane.b32.xlu1 %v3109_v55, %s4772_s8  ;;  %2990 = vst.msk [vmem:[#allocation3 + $0x20] sm:$0xf] %vm2981_vm5, %v2902_v40  ;;  %v3617_v55 = vld [vmem:[#allocation2 + $0xc0] sm:$0xe]  ;;  %v3322_v40 = vshll.u32 %v3046_v38, 16  ;;  %v3216_v26 = vshll.u32 %v6406_v13, 16 }
 0x27e   : > { %v4504_v60 = vrot.slane %v3617_v55, 9  ;;  %v6432_v38 = vld [vmem:[#allocation2 + $0x34] sm:$0xf]  ;;  %v3687_v55 = vrot.slane %v6424_v59, 5 }
 0x27f   : > { %v2892_v18 = vpop.permute.xlu1 %2891  ;;  %v6419_v19 = vrot.slane %v3216_v26, 5 }
 0x280   : > { %2985 = vst.msk [vmem:[#allocation3 + $0xc] sm:$0xf] %vm2981_vm5, %v2892_v18  ;;  %v3320_v18 = vrot.slane %v3319_v9, 4  ;;  %v3772_v50 = vsel %vm5319_vm14, %v4504_v60, %v3771_v27  ;;  %v3220_v9 = vshrl.u32 %v6406_v13, 16  ;;  %v3120_v60 = vshll.u32 %v6432_v38, 16 }
 0x281   : > { %3835 = vrot.lane.b32.xlu2 %v3765_v36, %s4773_s9  ;;  %v3684_v36 = vsel %vm5319_vm14, %v3682_v51, %v3683_v29  ;;  %v3689_v27 = vrot.slane %v3687_v55, 4 }
 0x282   : > { %2927 = vrot.lane.b32.xlu0 %v2842_v15, %s4771_s7  ;;  %v3324_v15 = vrot.slane %v3322_v40, 5 }
 0x283   : > { %v2900_v8 = vpop.permute.xlu2 %2899 }
 0x284   : > { %v2920_v42 = vpop.permute.xlu0 %2919  ;;  %2989 = vst.msk [vmem:[#allocation3 + $0x1c] sm:$0xf] %vm2981_vm5, %v2900_v8  ;;  %v3325_v49 = vsel %vm4922_vm11, %v3320_v18, %v3324_v15  ;;  %v2841_v8 = vld [vmem:[#allocation2 + $0x90] sm:$0xf]  ;;  %v6445_v18 = vrot.slane %v3120_v60, 5  ;;  %v3222_v15 = vrot.slane %v3220_v9, 4 }
 0x285   : > { %3787 = vrot.lane.b32.xlu1 %v3681_v58, %s4773_s9  ;;  %2999 = vst.msk [vmem:[#allocation3 + $0x44] sm:$0xf] %vm2981_vm5, %v2920_v42  ;;  %v3020_v42 = vld [vmem:[#allocation2 + $0x30] sm:$0xf]  ;;  %v6494_v60 = vld [vmem:[#allocation2 + $0xa0] sm:$0xf] }
 0x286   : > { %v3114_v21 = vshll.u32 %v3020_v42, 16 }
 0x287   : > { %v2898_v44 = vpop.permute.xlu1 %2897 }
 0x288   : > { %2988 = vst.msk [vmem:[#allocation3 + $0x18] sm:$0xf] %vm2981_vm5, %v2898_v44  ;;  %v3744_v44 = vsel %vm5319_vm14, %v4500_v53, %v3743_v10 }
 0x289   : > { %2907 = vrot.lane.b32.xlu2 %v2832_v7, %s4771_s7  ;;  %v3214_v7 = vrot.slane %v3213_v28, 4 }
 0x28a   : > { %3486 = vrot.lane.b32.xlu0 %v3315_v2, %s4772_s8  ;;  %v3111_v2 = vshrl.u32 %v3020_v42, 16 }
 0x28b   : > { %v2918_v48 = vpop.permute.xlu2 %2917 }
 0x28c   : > { %v3479_v30 = vpop.permute.xlu0 %3478  ;;  %2998 = vst.msk [vmem:[#allocation3 + $0x40] sm:$0xf] %vm2981_vm5, %v2918_v48  ;;  %v3774_v48 = vrot.slane %v3619_v3, 5  ;;  %v3113_v0 = vrot.slane %v3111_v2, 4  ;;  %v6477_v2 = vld [vmem:[#allocation2 + $0x64] sm:$0xf] }
 0x28d   : > { %3805 = vrot.lane.b32.xlu1 %v3712_v56, %s4773_s9  ;;  %3559 = vst.msk [vmem:[#allocation3 + $0x40] sm:$0xf] %vm3542_vm8, %v3479_v30  ;;  %v234_v56 = vsel %vm4846_vm3, 0, %v233_v6  ;;  %v3404_v30 = vrot.slane %v3402_v33, 5  ;;  %vm4048_vm3 = vcmask 293888   ;;  %v3124_v33 = vshrl.u32 %v6432_v38, 16 }
 0x28e   : > { %235 = vst [vmem:[#allocation2 + $0xcc] sm:$0x1] %v234_v56  ;;  %v3775_v14 = vsel %vm5319_vm14, %v3773_v34, %v3774_v48  ;;  %v2852_v48 = vld [vmem:[#allocation2 + $0xd0] sm:$0xf] }
 0x28f   : > { %v2904_v45 = vpop.permute.xlu1 %2903 }
 0x290   : > { %2991 = vst.msk [vmem:[#allocation3 + $0x24] sm:$0xf] %vm2981_vm5, %v2904_v45  ;;  %v3116_v45 = vrot.slane %v3114_v21, 5 }
 0x291   : > { %3466 = vrot.lane.b32.xlu2 %v3195_v16, %s4772_s8  ;;  %v2850_v16 = vld [vmem:[#allocation2 + $0xc4] sm:$0xf] }
 0x292   : > { %3504 = vrot.lane.b32.xlu0 %v3421_v31, %s4772_s8  ;;  %v3219_v31 = vsel %vm4922_vm11, %v3214_v7, %v6419_v19  ;;  %v3117_v40 = vor.u32 %v3116_v45, %v3113_v0  ;;  %v3060_v7 = vld [vmem:[#allocation2 + $0xd0] sm:$0xf] }
 0x293   : > { %v2936_v63 = vpop.permute.xlu2 %2935  ;;  %v3432_v45 = vshll.u32 %v3060_v7, 16 }
 0x294   : > { %v3497_v20 = vpop.permute.xlu0 %3496  ;;  %3007 = vst.msk [vmem:[#allocation3 + $0x64] sm:$0xf] %vm2981_vm5, %v2936_v63  ;;  %v3118_v63 = vrot.slane %v3117_v40, 4 }
 0x295   : > { %2941 = vrot.lane.b32.xlu1 %v2849_v5, %s4771_s7  ;;  %3568 = vst.msk [vmem:[#allocation3 + $0x64] sm:$0xf] %vm3542_vm8, %v3497_v20  ;;  %v3405_v5 = vor.u32 %v3404_v30, %v3401_v61  ;;  %v3690_v20 = vrot.slane %v3583_v32, 5  ;;  %v3715_v61 = vrot.slane %v6477_v2, 5  ;;  %v3022_v30 = vld [vmem:[#allocation2 + $0x38] sm:$0x1] }
 0x296   : > { %v3123_v17 = vsel %vm4922_vm11, %v3118_v63, %v6445_v18  ;;  %v3130_v38 = vshll.u32 %v3022_v30, 16  ;;  %v6491_v9 = vrot.slane %v3432_v45, 5 }
 0x297   : > { %v2934_v41 = vpop.permute.xlu1 %2933  ;;  %v3406_v51 = vrot.slane %v3405_v5, 4  ;;  %v3691_v37 = vsel %vm5319_vm14, %v3689_v27, %v3690_v20 }
 0x298   : > { %3006 = vst.msk [vmem:[#allocation3 + $0x60] sm:$0xf] %vm2981_vm5, %v2934_v41  ;;  %v289_v41 = vld [vmem:[#allocation2 + $0xd4] sm:$0x1]  ;;  %v3132_v20 = vrot.slane %v3130_v38, 5 }
 0x299   : > { %3789 = vrot.lane.b32.xlu2 %v3684_v36, %s4773_s9  ;;  %v3034_v36 = vld [vmem:[#allocation2 + $0x68] sm:$0x1]  ;;  %v290_v39 = vsel %vm4861_vm6, 0, %v289_v41  ;;  %v6548_v38 = vld [vmem:[#allocation2 + $0xd0] sm:$0xf] }
 0x29a   : > { %3839 = vrot.lane.b32.xlu0 %v3772_v50, %s4773_s9  ;;  %v3226_v13 = vshll.u32 %v3034_v36, 16  ;;  %291 = vst [vmem:[#allocation2 + $0xd4] sm:$0x1] %v290_v39  ;;  %v3581_v39 = vld [vmem:[#allocation2 + $0x30] sm:$0xe] }
 0x29b   : > { %v3495_v47 = vpop.permute.xlu2 %3494 }
 0x29c   : > { %v3832_v58 = vpop.permute.xlu0 %3831  ;;  %3567 = vst.msk [vmem:[#allocation3 + $0x60] sm:$0xf] %vm3542_vm8, %v3495_v47  ;;  %v3746_v47 = vrot.slane %v3607_v46, 5 }
 0x29d   : > { %3488 = vrot.lane.b32.xlu1 %v3325_v49, %s4772_s8  ;;  %3904 = vst.msk [vmem:[#allocation3 + $0x60] sm:$0xf] %vm3879_vm9, %v3832_v58  ;;  %v3411_v49 = vsel %vm4922_vm11, %v3406_v51, %v6351_v54  ;;  %v3223_v58 = vor.u32 %v3222_v15, %v6419_v19  ;;  %v3059_v54 = vld [vmem:[#allocation2 + $0xcc] sm:$0xf]  ;;  %v3126_v19 = vrot.slane %v3124_v33, 4 }
 0x29e   : > { %v3426_v24 = vshll.u32 %v3059_v54, 16  ;;  %v3747_v57 = vsel %vm5319_vm14, %v3745_v4, %v3746_v47  ;;  %v3024_v4 = vld [vmem:[#allocation2 + $0x40] sm:$0xf]  ;;  %v4492_v47 = vrot.slane %v3581_v39, 9 }
 0x29f   : > { %v3481_v52 = vpop.permute.xlu1 %3480  ;;  %v3224_v42 = vrot.slane %v3223_v58, 4  ;;  %v3148_v33 = vshrl.u32 %v3024_v4, 16 }
 0x2a0   : > { %3560 = vst.msk [vmem:[#allocation3 + $0x44] sm:$0xf] %vm3542_vm8, %v3481_v52  ;;  %v3228_v52 = vrot.slane %v3226_v13, 5  ;;  %v3428_v6 = vrot.slane %v3426_v24, 5  ;;  %v3144_v24 = vshll.u32 %v3024_v4, 16 }
 0x2a1   : > { %2925 = vrot.lane.b32.xlu2 %v2841_v8, %s4771_s7  ;;  %v3423_v8 = vshrl.u32 %v3059_v54, 16 }
 0x2a2   : > { %2911 = vrot.lane.b32.xlu0 %v2834_v12, %s4771_s7  ;;  %v2843_v12 = vld [vmem:[#allocation2 + $0x9c] sm:$0xf]  ;;  %v3229_v10 = vsel %vm4922_vm11, %v3224_v42, %v3228_v52 }
 0x2a3   : > { %v3818_v25 = vpop.permute.xlu2 %3817  ;;  %v3425_v21 = vrot.slane %v3423_v8, 4  ;;  %v3061_v8 = vld [vmem:[#allocation2 + $0xd4] sm:$0x1] }
 0x2a4   : > { %v3449_v43 = vpop.permute.xlu0 %3448  ;;  %3897 = vst.msk [vmem:[#allocation3 + $0x44] sm:$0xf] %vm3879_vm9, %v3818_v25  ;;  %v3047_v25 = vld [vmem:[#allocation2 + $0x9c] sm:$0xf] }
 0x2a5   : > { %3823 = vrot.lane.b32.xlu1 %v3744_v44, %s4773_s9  ;;  %3544 = vst.msk [vmem:[#allocation3 + $0x4] sm:$0xf] %vm3542_vm8, %v3449_v43  ;;  %v3593_v44 = vld [vmem:[#allocation2 + $0x60] sm:$0xe]  ;;  %v3429_v0 = vor.u32 %v3428_v6, %v3425_v21  ;;  %v3330_v5 = vshll.u32 %v3047_v25, 16  ;;  %v3442_v6 = vshll.u32 %v3061_v8, 16 }
 0x2a6   : > { %v4496_v43 = vrot.slane %v3593_v44, 9  ;;  %v3595_v44 = vld [vmem:[#allocation2 + $0x68] sm:$0x1]  ;;  %v3598_v8 = vld [vmem:[#allocation2 + $0x74] sm:$0x1] }
 0x2a7   : > { %v3816_v1 = vpop.permute.xlu1 %3815  ;;  %v3332_v63 = vrot.slane %v3330_v5, 5 }
 0x2a8   : > { %3896 = vst.msk [vmem:[#allocation3 + $0x40] sm:$0xf] %vm3879_vm9, %v3816_v1  ;;  %v2833_v1 = vld [vmem:[#allocation2 + $0x60] sm:$0xf]  ;;  %v3716_v32 = vsel %vm5319_vm14, %v4496_v43, %v3715_v61 }
 0x2a9   : > { %2943 = vrot.lane.b32.xlu2 %v2850_v16, %s4771_s7  ;;  %v3327_v16 = vshrl.u32 %v3047_v25, 16  ;;  %v3444_v25 = vrot.slane %v3442_v6, 5  ;;  %v3725_v6 = vrot.slane %v3598_v8, 5 }
 0x2aa   : > { %3470 = vrot.lane.b32.xlu0 %v3219_v31, %s4772_s8  ;;  %v3127_v31 = vor.u32 %v3126_v19, %v6445_v18  ;;  %v3025_v19 = vld [vmem:[#allocation2 + $0x44] sm:$0x1] }
 0x2ab   : > { %v3447_v29 = vpop.permute.xlu2 %3446  ;;  %v3154_v45 = vshll.u32 %v3025_v19, 16 }
 0x2ac   : > { %v3784_v35 = vpop.permute.xlu0 %3783  ;;  %3543 = vst.msk [vmem:[#allocation3] sm:$0xf] %vm3542_vm8, %v3447_v29  ;;  %v3128_v27 = vrot.slane %v3127_v31, 4  ;;  %v3329_v29 = vrot.slane %v3327_v16, 4 }
 0x2ad   : > { %3841 = vrot.lane.b32.xlu1 %v3775_v14, %s4773_s9  ;;  %3880 = vst.msk [vmem:[#allocation3] sm:$0xf] %vm3879_vm9, %v3784_v35  ;;  %v3430_v14 = vrot.slane %v3429_v0, 4  ;;  %v3156_v16 = vrot.slane %v3154_v45, 5 }
 0x2ae   : > { %v3133_v36 = vsel %vm4922_vm11, %v3128_v27, %v3132_v20  ;;  %v3333_v46 = vor.u32 %v3332_v63, %v3329_v29  ;;  %v3778_v27 = vrot.slane %v6548_v38, 5  ;;  %v3049_v20 = vld [vmem:[#allocation2 + $0xa4] sm:$0x1]  ;;  %v3035_v29 = vld [vmem:[#allocation2 + $0x6c] sm:$0xf] }
 0x2af   : > { %v3834_v50 = vpop.permute.xlu1 %3833  ;;  %v4608_v11 = vld [vmem:[#allocation3 + $0x40] sm:$0xff]  ;;  %v3435_v41 = vsel %vm4922_vm11, %v3430_v14, %v6491_v9 }
 0x2b0   : > { %3905 = vst.msk [vmem:[#allocation3 + $0x64] sm:$0xf] %vm3879_vm9, %v3834_v50  ;;  %4586 = vmatmul.msk.bf16.vlgmr.msra.gmra.mxu2 %vm4048_vm3, %v4608_v11  ;;  %v6501_v50 = vld [vmem:[#allocation2 + $0xa0] sm:$0xf]  ;;  %v3750_v11 = vrot.slane %v6494_v60, 5  ;;  %v3334_v42 = vrot.slane %v3333_v46, 4 }
 0x2b1   : > { %3502 = vrot.lane.b32.xlu2 %v3411_v49, %s4772_s8  ;;  %v2844_v49 = vld [vmem:[#allocation2 + $0xa0] sm:$0xf]  ;;  %v3336_v58 = vshll.u32 %v6501_v50, 16  ;;  %v3584_v63 = vld [vmem:[#allocation2 + $0x3c] sm:$0xe]  ;;  %v3780_v60 = vrot.slane %v3778_v27, 4 }
 0x2b2   : > { %3793 = vrot.lane.b32.xlu0 %v3691_v37, %s4773_s9  ;;  %v3610_v37 = vld [vmem:[#allocation2 + $0xa4] sm:$0x1]  ;;  %v3752_v13 = vrot.slane %v3750_v11, 4  ;;  %v4493_v39 = vrot.slane %v3584_v63, 9 }
 0x2b3   : > { %v3465_v23 = vpop.permute.xlu2 %3464  ;;  %v6516_v52 = vrot.slane %v3336_v58, 5  ;;  %v6568_v58 = vld [vmem:[#allocation2 + $0x70] sm:$0xf] }
 0x2b4   : > { %v3802_v53 = vpop.permute.xlu0 %3801  ;;  %3552 = vst.msk [vmem:[#allocation3 + $0x24] sm:$0xf] %vm3542_vm8, %v3465_v23 }
 0x2b5   : > { %3454 = vrot.lane.b32.xlu1 %v3123_v17, %s4772_s8  ;;  %3889 = vst.msk [vmem:[#allocation3 + $0x24] sm:$0xf] %vm3879_vm9, %v3802_v53  ;;  %v3436_v17 = vshrl.u32 %v3060_v7, 16  ;;  %v3753_v53 = vrot.slane %v3610_v37, 5  ;;  %v3150_v7 = vrot.slane %v3148_v33, 4 }
 0x2b6   : > { %v2836_v33 = vld [vmem:[#allocation2 + $0x70] sm:$0xf] }
 0x2b7   : > { %v3463_v28 = vpop.permute.xlu1 %3462  ;;  %v4612_v26 = vld [vmem:[#allocation3 + $0x60] sm:$0xff] }
 0x2b8   : > { %3551 = vst.msk [vmem:[#allocation3 + $0x20] sm:$0xf] %vm3542_vm8, %v3463_v28  ;;  %4590 = vmatmul.msk.bf16.vlgmr.msra.gmra.mxu3 %vm4048_vm3, %v4612_v26  ;;  %v3754_v26 = vsel %vm5319_vm14, %v3752_v13, %v3753_v53 }
 0x2b9   : > { %3825 = vrot.lane.b32.xlu2 %v3747_v57, %s4773_s9  ;;  %v3688_v57 = vsel %vm5319_vm14, %v4492_v47, %v3687_v55  ;;  %v3717_v55 = vrot.slane %v3715_v61, 4  ;;  %v3620_v61 = vld [vmem:[#allocation2 + $0xcc] sm:$0xe] }
 0x2ba   : > { %2929 = vrot.lane.b32.xlu0 %v2843_v12, %s4771_s7  ;;  %v3438_v12 = vrot.slane %v3436_v17, 4 }
 0x2bb   : > { %v3800_v56 = vpop.permute.xlu2 %3799 }
 0x2bc   : > { %v2938_v3 = vpop.permute.xlu0 %2937  ;;  %3888 = vst.msk [vmem:[#allocation3 + $0x20] sm:$0xf] %vm3879_vm9, %v3800_v56  ;;  %v3439_v21 = vor.u32 %v3438_v12, %v6491_v9  ;;  %v3718_v56 = vrot.slane %v3595_v44, 5 }
 0x2bd   : > { %3472 = vrot.lane.b32.xlu1 %v3229_v10, %s4772_s8  ;;  %3008 = vst.msk [vmem:[#allocation3 + $0x68] sm:$0xf] %vm2981_vm5, %v2938_v3  ;;  %v3339_v10 = vsel %vm4922_vm11, %v3334_v42, %v6516_v52  ;;  %v6532_v3 = vrot.slane %v3144_v24, 5 }
 0x2be   : > { %v3440_v30 = vrot.slane %v3439_v21, 4  ;;  %v3719_v31 = vsel %vm5319_vm14, %v3717_v55, %v3718_v56 }
 0x2bf   : > { %v3786_v34 = vpop.permute.xlu1 %3785  ;;  %v3151_v0 = vor.u32 %v3150_v7, %v6532_v3 }
 0x2c0   : > { %3881 = vst.msk [vmem:[#allocation3 + $0x4] sm:$0xf] %vm3879_vm9, %v3786_v34  ;;  %v3445_v2 = vsel %vm4922_vm11, %v3440_v30, %v3444_v25 }
 0x2c1   : > { %2909 = vrot.lane.b32.xlu2 %v2833_v1, %s4771_s7  ;;  %v3340_v1 = vshrl.u32 %v6501_v50, 16  ;;  %v3346_v50 = vshll.u32 %v3049_v20, 16 }
 0x2c2   : > { %2947 = vrot.lane.b32.xlu0 %v2852_v48, %s4771_s7  ;;  %v2835_v48 = vld [vmem:[#allocation2 + $0x6c] sm:$0xf] }
 0x2c3   : > { %v2924_v35 = vpop.permute.xlu2 %2923  ;;  %v4604_v51 = vld [vmem:[#allocation3 + $0x20] sm:$0xff]  ;;  %v3342_v14 = vrot.slane %v3340_v1, 4  ;;  %v3348_v53 = vrot.slane %v3346_v50, 5  ;;  %v3622_v1 = vld [vmem:[#allocation2 + $0xd4] sm:$0x1] }
 0x2c4   : > { %v3485_v40 = vpop.permute.xlu0 %3484  ;;  %3001 = vst.msk [vmem:[#allocation3 + $0x4c] sm:$0xf] %vm2981_vm5, %v2924_v35  ;;  %4582 = vmatmul.msk.bf16.vlgmr.msra.gmra.mxu1 %vm4048_vm3, %v4604_v51 }
 0x2c5   : > { %3807 = vrot.lane.b32.xlu1 %v3716_v32, %s4773_s9  ;;  %3562 = vst.msk [vmem:[#allocation3 + $0x4c] sm:$0xf] %vm3542_vm8, %v3485_v40  ;;  %v3152_v32 = vrot.slane %v3151_v0, 4  ;;  %v4505_v40 = vrot.slane %v3620_v61, 9 }
 0x2c7   : > { %v2922_v18 = vpop.permute.xlu1 %2921  ;;  %v4600_v15 = vld [vmem:[#allocation3] sm:$0xff]  ;;  %v3157_v51 = vsel %vm4922_vm11, %v3152_v32, %v3156_v16  ;;  %v3779_v37 = vsel %vm5319_vm14, %v4505_v40, %v3778_v27 }
 0x2c8   : > { %3000 = vst.msk [vmem:[#allocation3 + $0x48] sm:$0xf] %vm2981_vm5, %v2922_v18  ;;  %4578 = vmatmul.msk.bf16.vlgmr.msra.gmra.mxu0 %vm4048_vm3, %v4600_v15  ;;  %v6558_v18 = vld [vmem:[#allocation2 + $0x40] sm:$0xf]  ;;  %v2851_v15 = vld [vmem:[#allocation2 + $0xcc] sm:$0xf] }
 0x2c9   : > { %3456 = vrot.lane.b32.xlu2 %v3133_v36, %s4772_s8  ;;  %v3231_v36 = vshrl.u32 %v3035_v29, 16  ;;  %v3694_v17 = vrot.slane %v6558_v18, 5  ;;  %v3037_v18 = vld [vmem:[#allocation2 + $0x74] sm:$0x1] }
 0x2ca   : > { %3506 = vrot.lane.b32.xlu0 %v3435_v41, %s4772_s8  ;;  %v3343_v41 = vor.u32 %v3342_v14, %v6516_v52 }
 0x2cb   : > { %v3483_v23 = vpop.permute.xlu2 %3482  ;;  %v3233_v47 = vrot.slane %v3231_v36, 4  ;;  %v3695_v12 = vsel %vm5319_vm14, %v4493_v39, %v3694_v17  ;;  %v3250_v36 = vshll.u32 %v3037_v18, 16 }
 0x2cc   : > { %v3820_v54 = vpop.permute.xlu0 %3819  ;;  %3561 = vst.msk [vmem:[#allocation3 + $0x48] sm:$0xf] %vm3542_vm8, %v3483_v23  ;;  %v3344_v13 = vrot.slane %v3343_v41, 4 }
 0x2cd   : > { %2931 = vrot.lane.b32.xlu1 %v2844_v49, %s4771_s7  ;;  %3898 = vst.msk [vmem:[#allocation3 + $0x48] sm:$0xf] %vm3879_vm9, %v3820_v54  ;;  %v3234_v49 = vshll.u32 %v3035_v29, 16 }
 0x2ce   : > { %v3349_v24 = vsel %vm4922_vm11, %v3344_v13, %v3348_v53 }
 0x2cf   : > { %v2940_v28 = vpop.permute.xlu1 %2939  ;;  %v3236_v23 = vrot.slane %v3234_v49, 5 }
 0x2d0   : > { %3009 = vst.msk [vmem:[#allocation3 + $0x6c] sm:$0xf] %vm2981_vm5, %v2940_v28  ;;  %v3036_v28 = vld [vmem:[#allocation2 + $0x70] sm:$0xf] }
 0x2d1   : > { %3791 = vrot.lane.b32.xlu2 %v3688_v57, %s4773_s9  ;;  %v3608_v57 = vld [vmem:[#allocation2 + $0x9c] sm:$0xe]  ;;  %v3240_v44 = vshll.u32 %v3036_v28, 16  ;;  %v3244_v40 = vshrl.u32 %v3036_v28, 16 }
 0x2d2   : > { %3829 = vrot.lane.b32.xlu0 %v3754_v26, %s4773_s9  ;;  %v3722_v26 = vrot.slane %v6568_v58, 5 }
 0x2d3   : > { %v3501_v43 = vpop.permute.xlu2 %3500  ;;  %v3242_v56 = vrot.slane %v3240_v44, 5  ;;  %v3246_v29 = vrot.slane %v3244_v40, 4 }
 0x2d4   : > { %v3838_v59 = vpop.permute.xlu0 %3837  ;;  %3570 = vst.msk [vmem:[#allocation3 + $0x6c] sm:$0xf] %vm3542_vm8, %v3501_v43  ;;  %v3724_v21 = vrot.slane %v3722_v26, 4  ;;  %v3023_v43 = vld [vmem:[#allocation2 + $0x3c] sm:$0xf] }
 0x2d5   : > { %3490 = vrot.lane.b32.xlu1 %v3339_v10, %s4772_s8  ;;  %3907 = vst.msk [vmem:[#allocation3 + $0x6c] sm:$0xf] %vm3879_vm9, %v3838_v59  ;;  %v3237_v10 = vor.u32 %v3236_v23, %v3233_v47  ;;  %v4501_v59 = vrot.slane %v3608_v57, 9  ;;  %v3138_v0 = vshll.u32 %v3023_v43, 16 }
 0x2d6   : > { %v3726_v25 = vsel %vm5319_vm14, %v3724_v21, %v3725_v6 }
 0x2d7   : > { %v3499_v34 = vpop.permute.xlu1 %3498  ;;  %v3238_v55 = vrot.slane %v3237_v10, 4  ;;  %v3140_v32 = vrot.slane %v3138_v0, 5 }
 0x2d8   : > { %3569 = vst.msk [vmem:[#allocation3 + $0x68] sm:$0xf] %vm3542_vm8, %v3499_v34  ;;  %v3751_v34 = vsel %vm5319_vm14, %v4501_v59, %v3750_v11  ;;  %v3781_v11 = vrot.slane %v3622_v1, 5 }
 0x2d9   : > { %3809 = vrot.lane.b32.xlu2 %v3719_v31, %s4773_s9  ;;  %v3243_v45 = vsel %vm4922_vm11, %v3238_v55, %v3242_v56  ;;  %v3586_v31 = vld [vmem:[#allocation2 + $0x44] sm:$0x1] }
 0x2da   : > { %2913 = vrot.lane.b32.xlu0 %v2835_v48, %s4771_s7  ;;  %v3135_v48 = vshrl.u32 %v3023_v43, 16  ;;  %v3697_v14 = vrot.slane %v3586_v31, 5  ;;  %v3782_v20 = vsel %vm5319_vm14, %v3780_v60, %v3781_v11 }
 0x2db   : > { %v3836_v9 = vpop.permute.xlu2 %3835 }
 0x2dc   : > { %v3451_v5 = vpop.permute.xlu0 %3450  ;;  %3906 = vst.msk [vmem:[#allocation3 + $0x68] sm:$0xf] %vm3879_vm9, %v3836_v9  ;;  %v3137_v61 = vrot.slane %v3135_v48, 4 }
 0x2dd   : > { %3508 = vrot.lane.b32.xlu1 %v3445_v2, %s4772_s8  ;;  %3545 = vst.msk [vmem:[#allocation3 + $0x8] sm:$0xf] %vm3542_vm8, %v3451_v5  ;;  %v3696_v5 = vrot.slane %v3694_v17, 4  ;;  %v3252_v17 = vrot.slane %v3250_v36, 5 }
 0x2df   : > { %v3822_v35 = vpop.permute.xlu1 %3821  ;;  %v3698_v38 = vsel %vm5319_vm14, %v3696_v5, %v3697_v14 }
 0x2e0   : > { %3899 = vst.msk [vmem:[#allocation3 + $0x4c] sm:$0xf] %vm3879_vm9, %v3822_v35  ;;  %v3141_v35 = vor.u32 %v3140_v32, %v3137_v61 }
 0x2e1   : > { %2945 = vrot.lane.b32.xlu2 %v2851_v15, %s4771_s7 }
 0x2e2   : > { %3460 = vrot.lane.b32.xlu0 %v3157_v51, %s4772_s8  ;;  %v3142_v51 = vrot.slane %v3141_v35, 4 }
 0x2e3   : > { %v2908_v54 = vpop.permute.xlu2 %2907  ;;  %v4613_v4 = vld [vmem:[#allocation3 + $0x68] sm:$0xff] }
 0x2e4   : > { %v3469_v46 = vpop.permute.xlu0 %3468  ;;  %2993 = vst.msk [vmem:[#allocation3 + $0x2c] sm:$0xf] %vm2981_vm5, %v2908_v54  ;;  %4591 = vmatmul.msk.bf16.gmra.mxu3 %vm4048_vm3, %v4613_v4  ;;  %v3147_v50 = vsel %vm4922_vm11, %v3142_v51, %v6532_v3  ;;  %v3596_v54 = vld [vmem:[#allocation2 + $0x6c] sm:$0xe] }
 0x2e5   : > { %3843 = vrot.lane.b32.xlu1 %v3779_v37, %s4773_s9  ;;  %3554 = vst.msk [vmem:[#allocation3 + $0x2c] sm:$0xf] %vm3542_vm8, %v3469_v46  ;;  %v3247_v37 = vor.u32 %v3246_v29, %v3242_v56  ;;  %v4497_v47 = vrot.slane %v3596_v54, 9 }
 0x2e7   : > { %v2906_v42 = vpop.permute.xlu1 %2905  ;;  %v4609_v52 = vld [vmem:[#allocation3 + $0x48] sm:$0xff]  ;;  %v3248_v39 = vrot.slane %v3247_v37, 4 }
 0x2e8   : > { %2992 = vst.msk [vmem:[#allocation3 + $0x28] sm:$0xf] %vm2981_vm5, %v2906_v42  ;;  %4587 = vmatmul.msk.bf16.gmra.mxu2 %vm4048_vm3, %v4609_v52  ;;  %v3723_v52 = vsel %vm5319_vm14, %v4497_v47, %v3722_v26 }
 0x2e9   : > { %3492 = vrot.lane.b32.xlu2 %v3349_v24, %s4772_s8  ;;  %v3253_v3 = vsel %vm4922_vm11, %v3248_v39, %v3252_v17 }
 0x2ea   : > { %3795 = vrot.lane.b32.xlu0 %v3695_v12, %s4773_s9 }
 0x2eb   : > { %v3467_v19 = vpop.permute.xlu2 %3466 }
 0x2ec   : > { %v3804_v7 = vpop.permute.xlu0 %3803  ;;  %3553 = vst.msk [vmem:[#allocation3 + $0x28] sm:$0xf] %vm3542_vm8, %v3467_v19 }
 0x2ed   : > { %2915 = vrot.lane.b32.xlu1 %v2836_v33, %s4771_s7  ;;  %3890 = vst.msk [vmem:[#allocation3 + $0x28] sm:$0xf] %vm3879_vm9, %v3804_v7  ;;  %s4385_s7 = scalar_lea.hbm %s6761_s3, %s4618_s4 }
 0x2ee   : > { %s4388_s16 = sshll.u32 %s4385_s7, 4  ;;  %s4389_s16 = int_to_ptr.hbm [resolvable:$true] %s4388_s16 }
 0x2ef   : > { %v3453_v30 = vpop.permute.xlu1 %3452  ;;  %s4715_s10 = sshra.s32 %s4389_s16, 4  ;;  %s4716_s10 = int_to_ptr.hbm [resolvable:$true] %s4715_s10 }
 0x2f0   : > { %3546 = vst.msk [vmem:[#allocation3 + $0xc] sm:$0xf] %vm3542_vm8, %v3453_v30  ;;  %s4717_s11 = scalar_lea.hbm %s4716_s10, 32  ;;  %p4722_p0 = scmp.lt.s32.totalorder %s4716_s10, %s6761_s3 }
 0x2f1   : > { %3827 = vrot.lane.b32.xlu2 %v3751_v34, %s4773_s9  ;;  %p4718_p11 = scmp.ne.s32.totalorder %s4716_s10, %s4717_s11  ;;  %p4723_p1 = scmp.lt.s32.totalorder %s4721_s20, %s4717_s11 }
 0x2f2   : > { %3813 = vrot.lane.b32.xlu0 %v3726_v25, %s4773_s9 }
 0x2f3   : > { %v3790_v16 = vpop.permute.xlu2 %3789  ;;  %p4719_p12 = pnand %p4718_p11, %p4833_p5  ;;  %p4724_p2 = por %p4723_p1, %p4722_p0 }
 0x2f4   : > { %v2928_v2 = vpop.permute.xlu0 %2927  ;;  %3883 = vst.msk [vmem:[#allocation3 + $0xc] sm:$0xf] %vm3879_vm9, %v3790_v16 }
 0x2f5   : > { %3474 = vrot.lane.b32.xlu1 %v3243_v45, %s4772_s8  ;;  %3003 = vst.msk [vmem:[#allocation3 + $0x54] sm:$0xf] %vm2981_vm5, %v2928_v2  ;;  %p4720_p13 = pneg %p4719_p12 }
 0x2f7   : > { %v3788_v9 = vpop.permute.xlu1 %3787  ;;  %p4725_p3 = pnand %p4724_p2, %p4720_p13 }
 0x2f8   : > { %3882 = vst.msk [vmem:[#allocation3 + $0x8] sm:$0xf] %vm3879_vm9, %v3788_v9 }
 0x2f9   : > { %3845 = vrot.lane.b32.xlu2 %v3782_v20, %s4773_s9 }
 0x2fb   : > { %v2926_v63 = vpop.permute.xlu2 %2925 }
 0x2fc   : > { %v3487_v27 = vpop.permute.xlu0 %3486  ;;  %3002 = vst.msk [vmem:[#allocation3 + $0x50] sm:$0xf] %vm2981_vm5, %v2926_v63 }
 0x2fd   : > { %3797 = vrot.lane.b32.xlu1 %v3698_v38, %s4773_s9  ;;  %3563 = vst.msk [vmem:[#allocation3 + $0x50] sm:$0xf] %vm3542_vm8, %v3487_v27  ;;  %v6673_v38 = vld [vmem:[%s6760_s2] ss:$0 sm:$0xff] }
 0x2ff   : > { %v3806_v15 = vpop.permute.xlu1 %3805  ;;  %v4601_v41 = vld [vmem:[#allocation3 + $0x8] sm:$0xff] }
 0x300   : > { %3891 = vst.msk [vmem:[#allocation3 + $0x2c] sm:$0xf] %vm3879_vm9, %v3806_v15  ;;  %4579 = vmatmul.msk.bf16.gmra.mxu0 %vm4048_vm3, %v4601_v41 }
 0x301   : > { %3458 = vrot.lane.b32.xlu2 %v3147_v50, %s4772_s8 }
 0x303   : > { %v2944_v46 = vpop.permute.xlu2 %2943 }
 0x304   : > { %v3505_v49 = vpop.permute.xlu0 %3504  ;;  %3011 = vst.msk [vmem:[#allocation3 + $0x74] sm:$0xf] %vm2981_vm5, %v2944_v46 }
 0x305   : > { %3572 = vst.msk [vmem:[#allocation3 + $0x74] sm:$0xf] %vm3542_vm8, %v3505_v49 }
 0x307   : > { %v2942_v13 = vpop.permute.xlu1 %2941  ;;  %v4605_v53 = vld [vmem:[#allocation3 + $0x28] sm:$0xff] }
 0x308   : > { %3010 = vst.msk [vmem:[#allocation3 + $0x70] sm:$0xf] %vm2981_vm5, %v2942_v13  ;;  %4583 = vmatmul.msk.bf16.gmra.mxu1 %vm4048_vm3, %v4605_v53 }
 0x309   : > { %3476 = vrot.lane.b32.xlu2 %v3253_v3, %s4772_s8  ;;  %s4386_s8 = sshll.u32 %s6713_s30, 4  ;;  %s4387_s8 = int_to_ptr.vmem [resolvable:$true] %s4386_s8 }
 0x30b   : > { %v3503_v23 = vpop.permute.xlu2 %3502 }
 0x30c   : > { %v3840_v4 = vpop.permute.xlu0 %3839  ;;  %3571 = vst.msk [vmem:[#allocation3 + $0x70] sm:$0xf] %vm3542_vm8, %v3503_v23 }
 0x30d   : > { %3908 = vst.msk [vmem:[#allocation3 + $0x70] sm:$0xf] %vm3879_vm9, %v3840_v4 }
 0x30f   : > { %v3489_v42 = vpop.permute.xlu1 %3488 }
 0x310   : > { %3564 = vst.msk [vmem:[#allocation3 + $0x54] sm:$0xf] %vm3542_vm8, %v3489_v42 }
 0x311   : > { %3811 = vrot.lane.b32.xlu2 %v3723_v52, %s4773_s9  ;;  %s4374_s9 = scalar_lea.sflag [#allocation6], %s161_s27 }
 0x313   : > { %v3826_v12 = vpop.permute.xlu2 %3825 }
 0x314   : > { %v2912_v62 = vpop.permute.xlu0 %2911  ;;  %3901 = vst.msk [vmem:[#allocation3 + $0x54] sm:$0xf] %vm3879_vm9, %v3826_v12 }
 0x315   : > { %2995 = vst.msk [vmem:[#allocation3 + $0x34] sm:$0xf] %vm2981_vm5, %v2912_v62 }
 0x317   : > { %v3824_v28 = vpop.permute.xlu1 %3823 }
 0x318   : > { %3900 = vst.msk [vmem:[#allocation3 + $0x50] sm:$0xf] %vm3879_vm9, %v3824_v28 }
 0x31b   : > { %v2910_v24 = vpop.permute.xlu2 %2909 }
 0x31c   : > { %v3471_v8 = vpop.permute.xlu0 %3470  ;;  %2994 = vst.msk [vmem:[#allocation3 + $0x30] sm:$0xf] %vm2981_vm5, %v2910_v24 }
 0x31d   : > { %3555 = vst.msk [vmem:[#allocation3 + $0x30] sm:$0xf] %vm3542_vm8, %v3471_v8 }
 0x31f   : > { %v3842_v58 = vpop.permute.xlu1 %3841  ;;  %v4610_v22 = vld [vmem:[#allocation3 + $0x50] sm:$0xff] }
 0x320   : > { %3909 = vst.msk [vmem:[#allocation3 + $0x74] sm:$0xf] %vm3879_vm9, %v3842_v58  ;;  %4588 = vmatmul.msk.bf16.gmra.mxu2 %vm4048_vm3, %v4610_v22 }
 0x323   : > { %v3457_v33 = vpop.permute.xlu2 %3456 }
 0x324   : > { %v3794_v26 = vpop.permute.xlu0 %3793  ;;  %3548 = vst.msk [vmem:[#allocation3 + $0x14] sm:$0xf] %vm3542_vm8, %v3457_v33 }
 0x325   : > { %3885 = vst.msk [vmem:[#allocation3 + $0x14] sm:$0xf] %vm3879_vm9, %v3794_v26 }
 0x327   : > { %v3455_v57 = vpop.permute.xlu1 %3454  ;;  %v4614_v10 = vld [vmem:[#allocation3 + $0x70] sm:$0xff] }
 0x328   : > { %3547 = vst.msk [vmem:[#allocation3 + $0x10] sm:$0xf] %vm3542_vm8, %v3455_v57  ;;  %4592 = vmatmul.msk.bf16.gmra.mxu3 %vm4048_vm3, %v4614_v10 }
 0x32b   : > { %v3792_v21 = vpop.permute.xlu2 %3791 }
 0x32c   : > { %v2930_v44 = vpop.permute.xlu0 %2929  ;;  %3884 = vst.msk [vmem:[#allocation3 + $0x10] sm:$0xf] %vm3879_vm9, %v3792_v21 }
 0x32d   : > { %3004 = vst.msk [vmem:[#allocation3 + $0x58] sm:$0xf] %vm2981_vm5, %v2930_v44 }
 0x32f   : > { %v3473_v6 = vpop.permute.xlu1 %3472 }
 0x330   : > { %3556 = vst.msk [vmem:[#allocation3 + $0x34] sm:$0xf] %vm3542_vm8, %v3473_v6 }
 0x333   : > { %v3810_v59 = vpop.permute.xlu2 %3809  ;;  %v4602_v19 = vld [vmem:[#allocation3 + $0x10] sm:$0xff]  ;;  %v4150_v16 = vpop.f32.mrf.mxu2 }
 0x334   : > { %v2948_v7 = vpop.permute.xlu0 %2947  ;;  %3893 = vst.msk [vmem:[#allocation3 + $0x34] sm:$0xf] %vm3879_vm9, %v3810_v59  ;;  %4580 = vmatmul.msk.bf16.gmra.mxu0 %vm4048_vm3, %v4602_v19  ;;  %v4151_v18 = vadd.f32 %v6673_v38, %v4150_v16 }
 0x335   : > { %3013 = vst.msk [vmem:[#allocation3 + $0x7c] sm:$0xf] %vm2981_vm5, %v2948_v7 }
 0x336   : > { %v4238_v49 = vmul.f32 0.3, %v4151_v18  ;;  %vm4206_vm10 = vcmp.ge.f32.partialorder %v4151_v18, 0.0 }
 0x337   : > { %v3808_v55 = vpop.permute.xlu1 %3807 }
 0x338   : > { %3892 = vst.msk [vmem:[#allocation3 + $0x30] sm:$0xf] %vm3879_vm9, %v3808_v55  ;;  %v4270_v47 = vsel %vm4206_vm10, %v4151_v18, %v4238_v49 }
 0x33b   : > { %v2946_v43 = vpop.permute.xlu2 %2945  ;;  %v4170_v32 = vpop.f32.mrf.mxu3 }
 0x33c   : > { %v3507_v56 = vpop.permute.xlu0 %3506  ;;  %3012 = vst.msk [vmem:[#allocation3 + $0x78] sm:$0xf] %vm2981_vm5, %v2946_v43  ;;  %v4152_v35 = vpop.f32.mrf.mxu2  ;;  %v4171_v63 = vadd.f32 %v6673_v38, %v4170_v32 }
 0x33d   : > { %3573 = vst.msk [vmem:[#allocation3 + $0x78] sm:$0xf] %vm3542_vm8, %v3507_v56  ;;  %v4153_v23 = vadd.f32 %v6673_v38, %v4152_v35 }
 0x33e   : > { %v4246_v41 = vmul.f32 0.3, %v4171_v63  ;;  %vm4214_vm6 = vcmp.ge.f32.partialorder %v4171_v63, 0.0 }
 0x33f   : > { %v2932_v30 = vpop.permute.xlu1 %2931  ;;  %v4606_v25 = vld [vmem:[#allocation3 + $0x30] sm:$0xff]  ;;  %v4239_v22 = vmul.f32 0.3, %v4153_v23  ;;  %vm4207_vm14 = vcmp.ge.f32.partialorder %v4153_v23, 0.0 }
 0x340   : > { %3005 = vst.msk [vmem:[#allocation3 + $0x5c] sm:$0xf] %vm2981_vm5, %v2932_v30  ;;  %4584 = vmatmul.msk.bf16.gmra.mxu1 %vm4048_vm3, %v4606_v25  ;;  %v4278_v3 = vsel %vm4214_vm6, %v4171_v63, %v4246_v41 }
 0x341   : > { %v4130_v8 = vpop.f32.mrf.mxu1  ;;  %v4271_v59 = vsel %vm4207_vm14, %v4153_v23, %v4239_v22 }
 0x343   : > { %v3493_v48 = vpop.permute.xlu2 %3492  ;;  %v4172_v20 = vpop.f32.mrf.mxu3 }
 0x344   : > { %v3830_v34 = vpop.permute.xlu0 %3829  ;;  %3566 = vst.msk [vmem:[#allocation3 + $0x5c] sm:$0xf] %vm3542_vm8, %v3493_v48  ;;  %v4173_v54 = vadd.f32 %v6673_v38, %v4172_v20 }
 0x345   : > { %3903 = vst.msk [vmem:[#allocation3 + $0x5c] sm:$0xf] %vm3879_vm9, %v3830_v34  ;;  %v4110_v50 = vpop.f32.mrf.mxu0 }
 0x346   : > { %v4247_v28 = vmul.f32 0.3, %v4173_v54  ;;  %vm4215_vm13 = vcmp.ge.f32.partialorder %v4173_v54, 0.0  ;;  %v4111_v43 = vadd.f32 %v6673_v38, %v4110_v50 }
 0x347   : > { %v3491_v0 = vpop.permute.xlu1 %3490 }
 0x348   : > { %3565 = vst.msk [vmem:[#allocation3 + $0x58] sm:$0xf] %vm3542_vm8, %v3491_v0  ;;  %v4279_v6 = vsel %vm4215_vm13, %v4173_v54, %v4247_v28  ;;  %v4222_v34 = vmul.f32 0.3, %v4111_v43  ;;  %vm4190_vm0 = vcmp.ge.f32.partialorder %v4111_v43, 0.0 }
 0x349   : > { %v4132_v30 = vpop.f32.mrf.mxu1 }
 0x34b   : > { %v3828_v1 = vpop.permute.xlu2 %3827 }
 0x34c   : > { %v2914_v45 = vpop.permute.xlu0 %2913  ;;  %3902 = vst.msk [vmem:[#allocation3 + $0x58] sm:$0xf] %vm3879_vm9, %v3828_v1  ;;  %v4254_v1 = vsel %vm4190_vm0, %v4111_v43, %v4222_v34 }
 0x34d   : > { %2996 = vst.msk [vmem:[#allocation3 + $0x38] sm:$0xf] %vm2981_vm5, %v2914_v45  ;;  %v4112_v33 = vpop.f32.mrf.mxu0  ;;  %v4131_v45 = vadd.f32 %v6673_v38, %v4130_v8 }
 0x34f   : > { %v3509_v31 = vpop.permute.xlu1 %3508  ;;  %vm4198_vm4 = vcmp.ge.f32.partialorder %v4131_v45, 0.0 }
 0x350   : > { %3574 = vst.msk [vmem:[#allocation3 + $0x7c] sm:$0xf] %vm3542_vm8, %v3509_v31  ;;  %v4113_v31 = vadd.f32 %v6673_v38, %v4112_v33 }
 0x352   : > { %v4223_v16 = vmul.f32 0.3, %v4113_v31 }
 0x353   : > { %v3846_v60 = vpop.permute.xlu2 %3845  ;;  %v4611_v11 = vld [vmem:[#allocation3 + $0x58] sm:$0xff] }
 0x354   : > { %v3461_v2 = vpop.permute.xlu0 %3460  ;;  %3911 = vst.msk [vmem:[#allocation3 + $0x7c] sm:$0xf] %vm3879_vm9, %v3846_v60  ;;  %4589 = vmatmul.msk.bf16.gmra.mxu2 %vm4048_vm3, %v4611_v11  ;;  %v4230_v11 = vmul.f32 0.3, %v4131_v45 }
 0x355   : > { %3550 = vst.msk [vmem:[#allocation3 + $0x1c] sm:$0xf] %vm3542_vm8, %v3461_v2 }
 0x356   : > { %v4262_v20 = vsel %vm4198_vm4, %v4131_v45, %v4230_v11 }
 0x357   : > { %v3844_v61 = vpop.permute.xlu1 %3843 }
 0x358   : > { %3910 = vst.msk [vmem:[#allocation3 + $0x78] sm:$0xf] %vm3879_vm9, %v3844_v61 }
 0x35b   : > { %v3459_v14 = vpop.permute.xlu2 %3458 }
 0x35c   : > { %v3796_v5 = vpop.permute.xlu0 %3795  ;;  %3549 = vst.msk [vmem:[#allocation3 + $0x18] sm:$0xf] %vm3542_vm8, %v3459_v14 }
 0x35d   : > { %3886 = vst.msk [vmem:[#allocation3 + $0x18] sm:$0xf] %vm3879_vm9, %v3796_v5 }
 0x35f   : > { %v2916_v9 = vpop.permute.xlu1 %2915  ;;  %v4615_v40 = vld [vmem:[#allocation3 + $0x78] sm:$0xff] }
 0x360   : > { %2997 = vst.msk [vmem:[#allocation3 + $0x3c] sm:$0xf] %vm2981_vm5, %v2916_v9  ;;  %4593 = vmatmul.msk.bf16.gmra.mxu3 %vm4048_vm3, %v4615_v40  ;;  %vm4191_vm5 = vcmp.ge.f32.partialorder %v4113_v31, 0.0 }
 0x361   : > { %v4255_v35 = vsel %vm4191_vm5, %v4113_v31, %v4223_v16 }
 0x363   : > { %v3477_v27 = vpop.permute.xlu2 %3476 }
 0x364   : > { %v3814_v51 = vpop.permute.xlu0 %3813  ;;  %3558 = vst.msk [vmem:[#allocation3 + $0x3c] sm:$0xf] %vm3542_vm8, %v3477_v27  ;;  %v4133_v27 = vadd.f32 %v6673_v38, %v4132_v30 }
 0x365   : > { %3895 = vst.msk [vmem:[#allocation3 + $0x3c] sm:$0xf] %vm3879_vm9, %v3814_v51 }
 0x366   : > { %v4231_v41 = vmul.f32 0.3, %v4133_v27 }
 0x367   : > { %v3475_v29 = vpop.permute.xlu1 %3474  ;;  %v4175_v15 = vpop.f32.mrf.mxu3 }
 0x368   : > { %3557 = vst.msk [vmem:[#allocation3 + $0x38] sm:$0xf] %vm3542_vm8, %v3475_v29  ;;  %v4176_v36 = vadd.f32 %v6673_v38, %v4175_v15 }
 0x36a   : > { %vm4216_vm11 = vcmp.ge.f32.partialorder %v4176_v36, 0.0  ;;  %v4248_v17 = vmul.f32 0.3, %v4176_v36 }
 0x36b   : > { %v4155_v37 = vpop.f32.mrf.mxu2  ;;  %v3812_v46 = vpop.permute.xlu2 %3811 }
 0x36c   : > { %v4156_v39 = vadd.f32 %v6673_v38, %v4155_v37  ;;  %3894 = vst.msk [vmem:[#allocation3 + $0x38] sm:$0xf] %vm3879_vm9, %v3812_v46  ;;  %v4280_v4 = vsel %vm4216_vm11, %v4176_v36, %v4248_v17 }
 0x36d   : > { %v4298_v52 = vmax.f32 %v4278_v3, %v4280_v4 }
 0x36e   : > { %vm4208_vm12 = vcmp.ge.f32.partialorder %v4156_v39, 0.0  ;;  %v4240_v13 = vmul.f32 0.3, %v4156_v39 }
 0x36f   : > { %v3798_v53 = vpop.permute.xlu1 %3797  ;;  %4314 = vst [vmem:[#allocation4 + $0x60] sm:$0xff] %v4298_v52  ;;  %v4177_v12 = vpop.f32.mrf.mxu3 }
 0x370   : > { %3887 = vst.msk [vmem:[#allocation3 + $0x1c] sm:$0xf] %vm3879_vm9, %v3798_v53  ;;  %v4272_v42 = vsel %vm4208_vm12, %v4156_v39, %v4240_v13  ;;  %v4178_v58 = vadd.f32 %v6673_v38, %v4177_v12  ;;  %vm4199_vm9 = vcmp.ge.f32.partialorder %v4133_v27, 0.0 }
 0x371   : > { %v4294_v62 = vmax.f32 %v4270_v47, %v4272_v42  ;;  %v4263_v36 = vsel %vm4199_vm9, %v4133_v27, %v4231_v41 }
 0x372   : > { %vm4217_vm15 = vcmp.ge.f32.partialorder %v4178_v58, 0.0  ;;  %v4249_v57 = vmul.f32 0.3, %v4178_v58 }
 0x373   : > { %4310 = vst [vmem:[#allocation4 + $0x40] sm:$0xff] %v4294_v62  ;;  %v4157_v24 = vpop.f32.mrf.mxu2  ;;  %v4607_v10 = vld [vmem:[#allocation3 + $0x38] sm:$0xff] }
 0x374   : > { %v4158_v26 = vadd.f32 %v6673_v38, %v4157_v24  ;;  %v4281_v7 = vsel %vm4217_vm15, %v4178_v58, %v4249_v57  ;;  %4585 = vmatmul.msk.bf16.gmra.mxu1 %vm4048_vm3, %v4607_v10 }
 0x375   : > { %v4299_v55 = vmax.f32 %v4279_v6, %v4281_v7 }
 0x376   : > { %vm4209_vm1 = vcmp.ge.f32.partialorder %v4158_v26, 0.0  ;;  %v4241_v44 = vmul.f32 0.3, %v4158_v26 }
 0x377   : > { %v4603_v21 = vld [vmem:[#allocation3 + $0x18] sm:$0xff]  ;;  %4315 = vst [vmem:[#allocation4 + $0x68] sm:$0xff] %v4299_v55 }
 0x378   : > { %v4273_v19 = vsel %vm4209_vm1, %v4158_v26, %v4241_v44  ;;  %4581 = vmatmul.msk.bf16.gmra.mxu0 %vm4048_vm3, %v4603_v21 }
 0x379   : > { %v4295_v56 = vmax.f32 %v4271_v59, %v4273_v19 }
 0x37b   : > { %4311 = vst [vmem:[#allocation4 + $0x48] sm:$0xff] %v4295_v56 }
 0x37d   : > { %v4115_v25 = vpop.f32.mrf.mxu0 }
 0x37e   : > { %v4116_v48 = vadd.f32 %v6673_v38, %v4115_v25 }
 0x380   : > { %vm4192_vm2 = vcmp.ge.f32.partialorder %v4116_v48, 0.0  ;;  %v4224_v0 = vmul.f32 0.3, %v4116_v48 }
 0x382   : > { %v4256_v2 = vsel %vm4192_vm2, %v4116_v48, %v4224_v0  ;;  %v4342_v31 = vld [vmem:[#allocation4 + $0x41] ss:$2 sm:$0xff] }
 0x383   : > { %v4286_v60 = vmax.f32 %v4254_v1, %v4256_v2  ;;  %v4326_v1 = vld [vmem:[#allocation4 + $0x40] ss:$2 sm:$0xff] }
 0x385   : > { %4302 = vst [vmem:[#allocation4] sm:$0xff] %v4286_v60  ;;  %v4117_v61 = vpop.f32.mrf.mxu0  ;;  %v4135_v32 = vpop.f32.mrf.mxu1 }
 0x386   : > { %v4118_v5 = vadd.f32 %v6673_v38, %v4117_v61  ;;  %v4136_v14 = vadd.f32 %v6673_v38, %v4135_v32 }
 0x388   : > { %vm4193_vm7 = vcmp.ge.f32.partialorder %v4118_v5, 0.0  ;;  %v4225_v9 = vmul.f32 0.3, %v4118_v5  ;;  %vm4200_vm8 = vcmp.ge.f32.partialorder %v4136_v14, 0.0  ;;  %v4232_v40 = vmul.f32 0.3, %v4136_v14 }
 0x38a   : > { %v4257_v51 = vsel %vm4193_vm7, %v4118_v5, %v4225_v9  ;;  %v4264_v29 = vsel %vm4200_vm8, %v4136_v14, %v4232_v40  ;;  %v4353_v14 = vmax.f32 %v4326_v1, %v4342_v31 }
 0x38b   : > { %v4287_v63 = vmax.f32 %v4255_v35, %v4257_v51  ;;  %v4290_v18 = vmax.f32 %v4262_v20, %v4264_v29 }
 0x38d   : > { %4303 = vst [vmem:[#allocation4 + $0x8] sm:$0xff] %v4287_v63  ;;  %v4137_v15 = vpop.f32.mrf.mxu1 }
 0x38e   : > { %4306 = vst [vmem:[#allocation4 + $0x20] sm:$0xff] %v4290_v18  ;;  %v4138_v50 = vadd.f32 %v6673_v38, %v4137_v15  ;;  %v4330_v15 = vld [vmem:[#allocation4 + $0x60] ss:$2 sm:$0xff] }
 0x390   : > { %vm4201_vm3 = vcmp.ge.f32.partialorder %v4138_v50, 0.0  ;;  %v4233_v37 = vmul.f32 0.3, %v4138_v50 }
 0x392   : > { %v4265_v49 = vsel %vm4201_vm3, %v4138_v50, %v4233_v37  ;;  %v4346_v50 = vld [vmem:[#allocation4 + $0x61] ss:$2 sm:$0xff] }
 0x393   : > { %v4291_v39 = vmax.f32 %v4263_v36, %v4265_v49 }
 0x395   : > { %4307 = vst [vmem:[#allocation4 + $0x28] sm:$0xff] %v4291_v39 }
 0x3a3   : > { %v4160_v17 = vpop.f32.mrf.mxu2 }
 0x3a4   : > { %v4161_v53 = vadd.f32 %v6673_v38, %v4160_v17 }
 0x3a6   : > { %v4242_v54 = vmul.f32 0.3, %v4161_v53  ;;  %vm4210_vm6 = vcmp.ge.f32.partialorder %v4161_v53, 0.0 }
 0x3a8   : > { %v4274_v42 = vsel %vm4210_vm6, %v4161_v53, %v4242_v54 }
 0x3ab   : > { %v4180_v46 = vpop.f32.mrf.mxu3  ;;  %v4162_v13 = vpop.f32.mrf.mxu2 }
 0x3ac   : > { %v4163_v52 = vadd.f32 %v6673_v38, %v4162_v13  ;;  %v4181_v12 = vadd.f32 %v6673_v38, %v4180_v46 }
 0x3ae   : > { %v4243_v58 = vmul.f32 0.3, %v4163_v52  ;;  %vm4211_vm11 = vcmp.ge.f32.partialorder %v4163_v52, 0.0  ;;  %v4250_v57 = vmul.f32 0.3, %v4181_v12  ;;  %vm4218_vm12 = vcmp.ge.f32.partialorder %v4181_v12, 0.0 }
 0x3b0   : > { %v4275_v6 = vsel %vm4211_vm11, %v4163_v52, %v4243_v58  ;;  %v4282_v59 = vsel %vm4218_vm12, %v4181_v12, %v4250_v57 }
 0x3b1   : > { %v4120_v22 = vpop.f32.mrf.mxu0 }
 0x3b2   : > { %v4121_v5 = vadd.f32 %v6673_v38, %v4120_v22 }
 0x3b3   : > { %v4182_v4 = vpop.f32.mrf.mxu3 }
 0x3b4   : > { %v4183_v19 = vadd.f32 %v6673_v38, %v4182_v4  ;;  %v4226_v29 = vmul.f32 0.3, %v4121_v5  ;;  %vm4194_vm2 = vcmp.ge.f32.partialorder %v4121_v5, 0.0  ;;  %v4355_v4 = vmax.f32 %v4330_v15, %v4346_v50 }
 0x3b6   : > { %v4251_v25 = vmul.f32 0.3, %v4183_v19  ;;  %vm4219_vm15 = vcmp.ge.f32.partialorder %v4183_v19, 0.0  ;;  %v4258_v39 = vsel %vm4194_vm2, %v4121_v5, %v4226_v29 }
 0x3b8   : > { %v4283_v2 = vsel %vm4219_vm15, %v4183_v19, %v4251_v25 }
 0x3b9   : > { %v4122_v0 = vpop.f32.mrf.mxu0 }
 0x3ba   : > { %v4123_v17 = vadd.f32 %v6673_v38, %v4122_v0 }
 0x3bc   : > { %vm4195_vm8 = vcmp.ge.f32.partialorder %v4123_v17, 0.0 }
 0x3bd   : > { %v4140_v8 = vpop.f32.mrf.mxu1 }
 0x3be   : > { %v4141_v11 = vadd.f32 %v6673_v38, %v4140_v8 }
 0x3c0   : > { %v4234_v35 = vmul.f32 0.3, %v4141_v11  ;;  %vm4202_vm0 = vcmp.ge.f32.partialorder %v4141_v11, 0.0 }
 0x3c2   : > { %v4266_v37 = vsel %vm4202_vm0, %v4141_v11, %v4234_v35 }
 0x3c5   : > { %v4142_v34 = vpop.f32.mrf.mxu1 }
 0x3c6   : > { %v4143_v36 = vadd.f32 %v6673_v38, %v4142_v34 }
 0x3c8   : > { %vm4203_vm7 = vcmp.ge.f32.partialorder %v4143_v36, 0.0 }
 0x3d7   : > { %v4165_v3 = vpop.f32.mrf.mxu2 }
 0x3d8   : > { %v4166_v47 = vadd.f32 %v6673_v38, %v4165_v3 }
 0x3da   : > { %vm4212_vm10 = vcmp.ge.f32.partialorder %v4166_v47, 0.0  ;;  %v4244_v23 = vmul.f32 0.3, %v4166_v47 }
 0x3dc   : > { %v4276_v62 = vsel %vm4212_vm10, %v4166_v47, %v4244_v23 }
 0x3dd   : > { %v4296_v28 = vmax.f32 %v4274_v42, %v4276_v62  ;;  %v4235_v42 = vmul.f32 0.3, %v4143_v36 }
 0x3df   : > { %4312 = vst [vmem:[#allocation4 + $0x50] sm:$0xff] %v4296_v28  ;;  %v4167_v24 = vpop.f32.mrf.mxu2  ;;  %v4227_v28 = vmul.f32 0.3, %v4123_v17  ;;  %v4267_v22 = vsel %vm4203_vm7, %v4143_v36, %v4235_v42 }
 0x3e0   : > { %v4168_v26 = vadd.f32 %v6673_v38, %v4167_v24 }
 0x3e2   : > { %vm4213_vm13 = vcmp.ge.f32.partialorder %v4168_v26, 0.0  ;;  %v4245_v44 = vmul.f32 0.3, %v4168_v26 }
 0x3e3   : > { %v4185_v33 = vpop.f32.mrf.mxu3 }
 0x3e4   : > { %v4186_v10 = vadd.f32 %v6673_v38, %v4185_v33  ;;  %v4277_v7 = vsel %vm4213_vm13, %v4168_v26, %v4245_v44  ;;  %v4259_v33 = vsel %vm4195_vm8, %v4123_v17, %v4227_v28 }
 0x3e5   : > { %v4297_v55 = vmax.f32 %v4275_v6, %v4277_v7  ;;  %v4338_v6 = vld [vmem:[#allocation4 + $0x21] ss:$2 sm:$0xff] }
 0x3e6   : > { %vm4220_vm14 = vcmp.ge.f32.partialorder %v4186_v10, 0.0  ;;  %v4252_v21 = vmul.f32 0.3, %v4186_v10  ;;  %v4334_v7 = vld [vmem:[#allocation4 + $0x1] ss:$2 sm:$0xff] }
 0x3e7   : > { %4313 = vst [vmem:[#allocation4 + $0x58] sm:$0xff] %v4297_v55 }
 0x3e8   : > { %v4284_v56 = vsel %vm4220_vm14, %v4186_v10, %v4252_v21  ;;  %v4322_v21 = vld [vmem:[#allocation4 + $0x20] ss:$2 sm:$0xff] }
 0x3e9   : > { %v4300_v43 = vmax.f32 %v4282_v59, %v4284_v56 }
 0x3eb   : > { %4316 = vst [vmem:[#allocation4 + $0x70] sm:$0xff] %v4300_v43  ;;  %v4187_v30 = vpop.f32.mrf.mxu3  ;;  %v4351_v43 = vmax.f32 %v4322_v21, %v4338_v6 }
 0x3ec   : > { %v4188_v48 = vadd.f32 %v6673_v38, %v4187_v30 }
 0x3ee   : > { %vm4221_vm1 = vcmp.ge.f32.partialorder %v4188_v48, 0.0  ;;  %v4253_v45 = vmul.f32 0.3, %v4188_v48  ;;  %v4328_v32 = vld [vmem:[#allocation4 + $0x50] ss:$2 sm:$0xff] }
 0x3ef   : > { %v4344_v16 = vld [vmem:[#allocation4 + $0x51] ss:$2 sm:$0xff] }
 0x3f0   : > { %v4285_v60 = vsel %vm4221_vm1, %v4188_v48, %v4253_v45  ;;  %v4354_v9 = vmax.f32 %v4328_v32, %v4344_v16 }
 0x3f1   : > { %v4301_v61 = vmax.f32 %v4283_v2, %v4285_v60  ;;  %v4145_v40 = vpop.f32.mrf.mxu1 }
 0x3f2   : > { %v4632_v20 = vpack.c.bf16 %v4354_v9, %v4353_v14  ;;  %v4146_v51 = vadd.f32 %v6673_v38, %v4145_v40 }
 0x3f3   : > { %4317 = vst [vmem:[#allocation4 + $0x78] sm:$0xff] %v4301_v61 }
 0x3f4   : > { %4640 = vst [vmem:[%s6713_s30 + $0x10] sm:$0xff] %v4632_v20   ;;  %vm4204_vm4 = vcmp.ge.f32.partialorder %v4146_v51, 0.0  ;;  %v4236_v18 = vmul.f32 0.3, %v4146_v51 }
 0x3f5   : > { %v4125_v27 = vpop.f32.mrf.mxu0 }
 0x3f6   : > { %v4126_v63 = vadd.f32 %v6673_v38, %v4125_v27  ;;  %v4268_v49 = vsel %vm4204_vm4, %v4146_v51, %v4236_v18 }
 0x3f7   : > { %v4292_v13 = vmax.f32 %v4266_v37, %v4268_v49 }
 0x3f8   : > { %vm4196_vm5 = vcmp.ge.f32.partialorder %v4126_v63, 0.0  ;;  %v4228_v41 = vmul.f32 0.3, %v4126_v63 }
 0x3f9   : > { %4308 = vst [vmem:[#allocation4 + $0x30] sm:$0xff] %v4292_v13  ;;  %v4147_v23 = vpop.f32.mrf.mxu1 }
 0x3fa   : > { %v4260_v46 = vsel %vm4196_vm5, %v4126_v63, %v4228_v41  ;;  %v4332_v53 = vld [vmem:[#allocation4 + $0x70] ss:$2 sm:$0xff]  ;;  %v4348_v3 = vld [vmem:[#allocation4 + $0x71] ss:$2 sm:$0xff]  ;;  %v4148_v62 = vadd.f32 %v6673_v38, %v4147_v23 }
 0x3fb   : > { %v4288_v54 = vmax.f32 %v4258_v39, %v4260_v46  ;;  %v4356_v47 = vmax.f32 %v4332_v53, %v4348_v3 }
 0x3fc   : > { %vm4205_vm9 = vcmp.ge.f32.partialorder %v4148_v62, 0.0  ;;  %v4237_v24 = vmul.f32 0.3, %v4148_v62 }
 0x3fd   : > { %4304 = vst [vmem:[#allocation4 + $0x10] sm:$0xff] %v4288_v54  ;;  %v4127_v52 = vpop.f32.mrf.mxu0  ;;  %v4637_v12 = vpack.c.bf16 %v4356_v47, %v4355_v4 }
 0x3fe   : > { %v4128_v8 = vadd.f32 %v6673_v38, %v4127_v52  ;;  %v4269_v26 = vsel %vm4205_vm9, %v4148_v62, %v4237_v24  ;;  %v4318_v38 = vld [vmem:[#allocation4] ss:$2 sm:$0xff] }
 0x3ff   : > { %4641 = vst [vmem:[%s6713_s30 + $0x18] sm:$0xff] %v4637_v12   ;;  %v4293_v10 = vmax.f32 %v4267_v22, %v4269_v26  ;;  %v4349_v25 = vmax.f32 %v4318_v38, %v4334_v7 }
 0x400   : > { %vm4197_vm3 = vcmp.ge.f32.partialorder %v4128_v8, 0.0  ;;  %v4229_v58 = vmul.f32 0.3, %v4128_v8 }
 0x401   : > { %4309 = vst [vmem:[#allocation4 + $0x38] sm:$0xff] %v4293_v10 }
 0x402   : > { %v4261_v57 = vsel %vm4197_vm3, %v4128_v8, %v4229_v58 }
 0x403   : > { %v4289_v44 = vmax.f32 %v4259_v33, %v4261_v57 }
 0x405   : > { %4305 = vst [vmem:[#allocation4 + $0x18] sm:$0xff] %v4289_v44 }
 0x408   : > { %v4324_v59 = vld [vmem:[#allocation4 + $0x30] ss:$2 sm:$0xff]  ;;  %v4340_v19 = vld [vmem:[#allocation4 + $0x31] ss:$2 sm:$0xff] }
 0x409   : > { %v4352_v30 = vmax.f32 %v4324_v59, %v4340_v19 }
 0x40b   : > { %v4627_v48 = vpack.c.bf16 %v4352_v30, %v4351_v43 }
 0x40c   : > { %v4320_v55 = vld [vmem:[#allocation4 + $0x10] ss:$2 sm:$0xff]  ;;  %v4336_v56 = vld [vmem:[#allocation4 + $0x11] ss:$2 sm:$0xff] }
 0x40d   : > { %v4350_v34 = vmax.f32 %v4320_v55, %v4336_v56  ;;  %4639 = vst [vmem:[%s6713_s30 + $0x8] sm:$0xff] %v4627_v48  }
 0x40f   : > { %v4622_v0 = vpack.c.bf16 %v4350_v34, %v4349_v25 }
 0x411   : > { %4623 = vst [vmem:[%s6713_s30] sm:$0xff] %v4622_v0  }
 0x412   : > { %4728 = shalt.err (!%p4725_p3)
}
 0x413   : > { %s4774_s26 = smov 64  }
 0x414   : > { %4651 = dma.vmem_to_hbm [thread:$0]  (%p4833_p5), %s4387_s8, 512, %s4389_s16, %s4374_s9, %s4774_s26, %s4774_s26, %s4766_s29  }
 0x415 PF: > { %p4657_p4 = scmp.ge.s32.totalorder %s4763_s15, 2  ;;  %s4403_s27 = sand.u32 1, %s4751_s12  }
 0x416   : > { %s4404_s28 = scalar_lea.sflag [#allocation6], %s4403_s27 }
 0x417   : > { %p4654_p7 = pnand %p4657_p4, %p4837_p6 }
 0x419   : > { %p4655_p8 = pneg %p4654_p7 }
 0x41b   : > { %4746 = dma.done.wait (%p4655_p8), %s4404_s28, 512  }
 0x41c   : > { %4748 = vsyncadd (%p4655_p8), %s4404_s28, 4294966784  ;;  %p13_p9 = scmp.ge.s32.totalorder %s4820_s18, 4   ;;  %s6776_s12 = smov %s4755_s13 }
 0x41d   : > { %s6777_s13 = smov %s4759_s14  ;;  %s6778_s14 = smov %s4831_s21 }
 0x41e   : > { %s6779_s15 = smov %s4820_s18  ;;  %15 = sbr.rel (!%p13_p9) target bundleno = 3 (0x3), region = 85 }
 0x423   :  { %4410 = vsyncpa [#allocation6], 1 }
 0x424   :  { %4412 = vsyncpa [#allocation6 + $0x1], 1 }

</bundles_post_ra>
